<compile_context>
chip_gen: v5e
topology: v5e:2x2
jax: 0.10.0
libtpu: 0.0.40
codegen_flags: <defaults>
</compile_context>

<pallas_src>
import jax
import jax.numpy as jnp
from jax.experimental import pallas as pl
from jax.experimental.pallas import tpu as pltpu

BN_EPS = 1e-5
LANE = 128


def _round_up(x, m):
    return ((x + m - 1) // m) * m


# --------------------------------------------------------------------------- #
# Kernel: 7 chained matmuls, weights fully resident in VMEM, batch tiled.
# --------------------------------------------------------------------------- #
def deepnoma_kernel(x_ref, w0_ref, b0_ref, wh_ref, bh_ref, wo_ref, bo_ref, out_ref):
    cdt = w0_ref.dtype  # MXU operand / inter-layer storage dtype (bf16)

    # layer 0: Linear (+ folded BN), NO ReLU — matches the PyTorch forward().
    # Bias add in f32; store result in bf16 between layers.
    h = jnp.dot(x_ref[...], w0_ref[...],
                preferred_element_type=jnp.float32) + b0_ref[...]
    x = h.astype(cdt)

    # hidden layers 1..5: Linear (+ folded BN) -> ReLU (Dropout = identity, eval)
    for i in range(5):
        h = jnp.dot(x, wh_ref[i],
                    preferred_element_type=jnp.float32) + bh_ref[i, :]
        x = jnp.maximum(h, 0.0).astype(cdt)   # ReLU in f32 (v5e VPU), store bf16

    # output layer: Linear only
    y = jnp.dot(x, wo_ref[...],
                preferred_element_type=jnp.float32) + bo_ref[...]
    out_ref[...] = y.astype(out_ref.dtype)


# --------------------------------------------------------------------------- #
# Wrapper-side parameter prep: fold BN, pad hidden/output lanes, cast to bf16.
# --------------------------------------------------------------------------- #
def prepare_params(p, compute_dtype=jnp.bfloat16):
    il, hl = p["w0"].shape
    nl = p["wo"].shape[1]
    hl_p, nl_p = _round_up(hl, LANE), _round_up(nl, LANE)
    # NOTE: the input-feature axis (il) is intentionally NOT padded — the layer-0
    # contraction dim stays at the true input width (no zero-work / extra DMA).

    def fold(w, b, i):
        # BN(xW + b) = (xW + b - mu) * gamma*rsqrt(var+eps) + beta
        s = p["bn_gamma"][i] * jax.lax.rsqrt(p["bn_var"][i] + BN_EPS)
        return w * s[None, :], (b - p["bn_mean"][i]) * s + p["bn_beta"][i]

    def pad_cols(w, c):
        return jnp.pad(w, ((0, 0), (0, c - w.shape[1])))

    def pad2(w, r, c):
        return jnp.pad(w, ((0, r - w.shape[0]), (0, c - w.shape[1])))

    def pad1(b, c):
        return jnp.pad(b, (0, c - b.shape[0]))

    w0, b0 = fold(p["w0"], p["b0"][0], 0)
    wh_list, bh_list = [], []
    for i in range(5):
        w, b = fold(p["wh"][i], p["bh"][i], i + 1)
        wh_list.append(pad2(w, hl_p, hl_p))
        bh_list.append(pad1(b, hl_p))

    return {
        "w0": pad_cols(w0, hl_p).astype(compute_dtype),              # (il, hl_p)
        "b0": pad1(b0, hl_p).reshape(1, hl_p).astype(jnp.float32),   # (1, hl_p)
        "wh": jnp.stack(wh_list).astype(compute_dtype),              # (5, hl_p, hl_p)
        "bh": jnp.stack(bh_list).astype(jnp.float32),                # (5, hl_p)
        "wo": pad2(p["wo"], hl_p, nl_p).astype(compute_dtype),       # (hl_p, nl_p)
        "bo": pad1(p["bo"][0], nl_p).reshape(1, nl_p).astype(jnp.float32),
        "dims": (il, hl, nl, hl_p, nl_p),
    }


def _pick_tb(B):
    """Batch tile: multiple of 16 (bf16 sublane packing), large enough to
    amortize ~0.35 us/grid-step, and giving a grid of >= 2 even steps so v7x's
    second TensorCore gets balanced work (v5e/v6e have 1 TC and are indifferent)."""
    TB_MAX = 1024
    if B <= 16:
        return 16
    return min(TB_MAX, _round_up((B + 1) // 2, 16))


# --------------------------------------------------------------------------- #
# pallas_call wrapper
# --------------------------------------------------------------------------- #
def deepnoma_forward(x, kp):
    il, hl, nl, hl_p, nl_p = kp["dims"]
    B = x.shape[0]
    cdt = kp["w0"].dtype
    out_dtype = cdt  # bf16 output halves HBM writeback; lane width stays 128.

    tb = _pick_tb(B)
    B_pad = _round_up(B, tb)

    # batch-only pad, fused with the bf16 cast (no zeros+scatter materialization)
    xp = jnp.pad(x.astype(cdt), ((0, B_pad - B), (0, 0)))

    weight_args = (kp["w0"], kp["b0"], kp["wh"], kp["bh"], kp["wo"], kp["bo"])

    def weight_specs(single_buffer):
        specs = []
        for a in weight_args:
            nd = a.ndim
            idx = lambda i, _nd=nd: (0,) * _nd   # grid-invariant: fetched once
            if single_buffer:
                specs.append(pl.BlockSpec(a.shape, idx, pipeline_mode=pl.Buffered(1)))
            else:
                specs.append(pl.BlockSpec(a.shape, idx))
        return specs

    # VMEM requirement (weights kept resident, x/out tiles double-buffered);
    # budget 2x weights to stay safe if single-buffering is unavailable.
    w_bytes = sum(int(a.size) * a.dtype.itemsize for a in weight_args)
    x_bytes = tb * il * cdt.itemsize
    o_bytes = tb * nl_p * jnp.dtype(out_dtype).itemsize
    act_bytes = 4 * tb * hl_p * 4
    need = 2 * w_bytes + 2 * (x_bytes + o_bytes) + act_bytes
    vmem_limit = int(min(48 << 20, max(16 << 20, 2 * need)))

    # Advisory cost estimate for XLA scheduling around the fused call.
    flops = 2 * B_pad * (il * hl_p + 5 * hl_p * hl_p + hl_p * nl_p)
    bytes_accessed = (B_pad * il * cdt.itemsize + w_bytes
                      + B_pad * nl_p * jnp.dtype(out_dtype).itemsize)
    cost = pl.CostEstimate(flops=flops, transcendentals=0,
                           bytes_accessed=bytes_accessed)

    def build(single_buffer):
        in_specs = [pl.BlockSpec((tb, il), lambda i: (i, 0))] + weight_specs(single_buffer)
        return pl.pallas_call(
            deepnoma_kernel,
            out_shape=jax.ShapeDtypeStruct((B_pad, nl_p), out_dtype),
            grid_spec=pltpu.PrefetchScalarGridSpec(
                num_scalar_prefetch=0,
                grid=(B_pad // tb,),
                in_specs=in_specs,
                out_specs=pl.BlockSpec((tb, nl_p), lambda i: (i, 0)),
            ),
            compiler_params=pltpu.CompilerParams(
                dimension_semantics=("parallel",),
                vmem_limit_bytes=vmem_limit,
            ),
            cost_estimate=cost,
        )

    try:
        out = jax.block_until_ready(build(True)(xp, *weight_args))
    except Exception:
        # TODO(synk): pl.Buffered(1) single-buffering of grid-invariant weights
        # is not supported on every jax/libtpu build; fall back to default
        # double-buffering (only matters for very large hidden sizes on v7x).
        out = build(False)(xp, *weight_args)

    return out[:B, :nl]


# --------------------------------------------------------------------------- #
# Synthetic init (kaiming-uniform-style bounds) + pure-JAX references
# --------------------------------------------------------------------------- #
def init_params(key, il, hl, nl):
    ks = jax.random.split(key, 12)

    def lin(k, fan_in, fan_out):
        bound = jnp.sqrt(6.0 / fan_in)
        kw, kb = jax.random.split(k)
        w = jax.random.uniform(kw, (fan_in, fan_out), jnp.float32, -bound, bound)
        b = jax.random.uniform(kb, (1, fan_out), jnp.float32,
                               -1.0 / jnp.sqrt(fan_in), 1.0 / jnp.sqrt(fan_in))
        return w, b

    w0, b0 = lin(ks[0], il, hl)
    wh_list, bh_list = [], []
    for i in range(5):
        w, b = lin(ks[1 + i], hl, hl)
        wh_list.append(w)
        bh_list.append(b[0])
    wo, bo = lin(ks[6], hl, nl)

    bn_gamma = jnp.ones((6, hl), jnp.float32)
    bn_beta = jnp.zeros((6, hl), jnp.float32)
    bn_mean = 0.1 * jax.random.normal(ks[7], (6, hl), jnp.float32)
    bn_var = jax.random.uniform(ks[8], (6, hl), jnp.float32, 0.5, 1.5)

    return {
        "w0": w0, "b0": b0,
        "wh": jnp.stack(wh_list), "bh": jnp.stack(bh_list),
        "bn_gamma": bn_gamma, "bn_beta": bn_beta,
        "bn_mean": bn_mean, "bn_var": bn_var,
        "wo": wo, "bo": bo,
    }


def deepnoma_reference(x, p):
    """Full-f32 reference with explicit BatchNorm (eval) — the PyTorch semantics."""
    def bn(z, i):
        inv = jax.lax.rsqrt(p["bn_var"][i] + BN_EPS)
        return (z - p["bn_mean"][i]) * (inv * p["bn_gamma"][i]) + p["bn_beta"][i]

    x = bn(x @ p["w0"] + p["b0"], 0)
    for i in range(5):
        x = jnp.maximum(bn(x @ p["wh"][i] + p["bh"][i], i + 1), 0.0)
    return x @ p["wo"] + p["bo"]


def deepnoma_reference_prepared(x, kp):
    """Reference on folded/padded/cast params — same precision path as the kernel
    (bf16 inter-layer storage, f32 accumulation and elementwise)."""
    il, hl, nl, hl_p, nl_p = kp["dims"]
    cdt = kp["w0"].dtype
    xp = x.astype(cdt)

    def mm(a, w):
        return jax.lax.dot(a, w, preferred_element_type=jnp.float32)

    h = (mm(xp, kp["w0"]) + kp["b0"]).astype(cdt)
    for i in range(5):
        h = jnp.maximum(mm(h, kp["wh"][i]) + kp["bh"][i], 0.0).astype(cdt)
    y = mm(h, kp["wo"]) + kp["bo"]
    return y[:, :nl]


if __name__ == "__main__":
    # Small shapes consistent with the module (il = hl = input_features, free num_labels).
    B, IL, HL, NL = 512, 32, 32, 16

    key = jax.random.PRNGKey(0)
    kx, kpk = jax.random.split(key)
    x = jax.random.normal(kx, (B, IL), jnp.float32)
    params = init_params(kpk, IL, HL, NL)

    # 1) validate BN-folding + lane-padding algebra in pure f32
    kparams_f32 = prepare_params(params, compute_dtype=jnp.float32)
    folded_f32 = deepnoma_reference_prepared(x, kparams_f32)
    full_f32 = deepnoma_reference(x, params)
    assert jnp.allclose(folded_f32, full_f32, atol=1e-4, rtol=1e-4), \
        "BN folding / padding mismatch vs explicit-BN f32 reference"

    # 2) run the optimized bf16 kernel and compare against the matched-precision reference
    kparams = prepare_params(params, compute_dtype=jnp.bfloat16)
    out = deepnoma_forward(x, kparams)
    out = jax.block_until_ready(out)
    assert out.shape == (B, NL)
    assert out.dtype == jnp.bfloat16

    ref = deepnoma_reference_prepared(x, kparams).astype(jnp.bfloat16)
    assert jnp.allclose(out.astype(jnp.float32), ref.astype(jnp.float32),
                        atol=1e-2, rtol=1e-2), \
        "kernel mismatch vs matched bf16 reference"

    print("KERNEL_OK")
</pallas_src>

<mosaic_0001>
module attributes {stable_mosaic.version = 11 : i64} {
  func.func @deepnoma_kernel(%arg0: i32, %arg1: memref<256x32xbf16, #tpu.memory_space<vmem>>, %arg2: memref<32x128xbf16, #tpu.memory_space<vmem>>, %arg3: memref<1x128xf32, #tpu.memory_space<vmem>>, %arg4: memref<5x128x128xbf16, #tpu.memory_space<vmem>>, %arg5: memref<5x128xf32, #tpu.memory_space<vmem>>, %arg6: memref<128x128xbf16, #tpu.memory_space<vmem>>, %arg7: memref<1x128xf32, #tpu.memory_space<vmem>>, %arg8: memref<256x128xbf16, #tpu.memory_space<vmem>>) attributes {dimension_semantics = [#tpu.dimension_semantics<parallel>], iteration_bounds = array<i64: 2>, scalar_prefetch = 0 : i64, scratch_operands = 0 : i64, tpu.core_type = #tpu.core_type<tc>, window_params = [{transform_indices = @transform_0, window_bounds = array<i64: 256, 32>}, {pipeline_mode = #tpu.pipeline_mode<synchronous>, transform_indices = @transform_1, window_bounds = array<i64: 32, 128>}, {pipeline_mode = #tpu.pipeline_mode<synchronous>, transform_indices = @transform_2, window_bounds = array<i64: 1, 128>}, {pipeline_mode = #tpu.pipeline_mode<synchronous>, transform_indices = @transform_3, window_bounds = array<i64: 5, 128, 128>}, {pipeline_mode = #tpu.pipeline_mode<synchronous>, transform_indices = @transform_4, window_bounds = array<i64: 5, 128>}, {pipeline_mode = #tpu.pipeline_mode<synchronous>, transform_indices = @transform_5, window_bounds = array<i64: 128, 128>}, {pipeline_mode = #tpu.pipeline_mode<synchronous>, transform_indices = @transform_6, window_bounds = array<i64: 1, 128>}, {transform_indices = @transform_7, window_bounds = array<i64: 256, 128>}]} {
    %c0 = arith.constant 0 : index
    %c0_0 = arith.constant 0 : index
    %0 = vector.load %arg1[%c0, %c0_0] : memref<256x32xbf16, #tpu.memory_space<vmem>>, vector<256x32xbf16>
    %c0_1 = arith.constant 0 : index
    %c0_2 = arith.constant 0 : index
    %1 = vector.load %arg2[%c0_1, %c0_2] : memref<32x128xbf16, #tpu.memory_space<vmem>>, vector<32x128xbf16>
    %cst = arith.constant dense<0.000000e+00> : vector<256x128xf32>
    %2 = tpu.matmul %0, %1, %cst {dimension_numbers = #tpu.dot_dimension_numbers<[1], [0], [0], [1], [0, 0, 1, 1], [], []>} : vector<256x32xbf16>, vector<32x128xbf16>, vector<256x128xf32> -> vector<256x128xf32>
    %c0_3 = arith.constant 0 : index
    %c0_4 = arith.constant 0 : index
    %3 = vector.load %arg3[%c0_3, %c0_4] : memref<1x128xf32, #tpu.memory_space<vmem>>, vector<1x128xf32>
    %4 = vector.broadcast %3 : vector<1x128xf32> to vector<256x128xf32>
    %5 = arith.addf %2, %4 : vector<256x128xf32>
    %6 = arith.truncf %5 : vector<256x128xf32> to vector<256x128xbf16>
    %c0_5 = arith.constant 0 : index
    %c0_6 = arith.constant 0 : index
    %c0_7 = arith.constant 0 : index
    %7 = vector.load %arg4[%c0_5, %c0_6, %c0_7] : memref<5x128x128xbf16, #tpu.memory_space<vmem>>, vector<1x128x128xbf16>
    %8 = vector.shape_cast %7 : vector<1x128x128xbf16> to vector<128x128xbf16>
    %cst_8 = arith.constant dense<0.000000e+00> : vector<256x128xf32>
    %9 = tpu.matmul %6, %8, %cst_8 {dimension_numbers = #tpu.dot_dimension_numbers<[1], [0], [0], [1], [0, 0, 1, 1], [], []>} : vector<256x128xbf16>, vector<128x128xbf16>, vector<256x128xf32> -> vector<256x128xf32>
    %c0_9 = arith.constant 0 : index
    %c0_10 = arith.constant 0 : index
    %10 = vector.load %arg5[%c0_9, %c0_10] : memref<5x128xf32, #tpu.memory_space<vmem>>, vector<1x128xf32>
    %11 = vector.shape_cast %10 : vector<1x128xf32> to vector<128xf32>
    %12 = vector.shape_cast %11 : vector<128xf32> to vector<1x128xf32>
    %13 = vector.broadcast %12 : vector<1x128xf32> to vector<256x128xf32>
    %14 = arith.addf %9, %13 : vector<256x128xf32>
    %cst_11 = arith.constant 0.000000e+00 : f32
    %15 = vector.broadcast %cst_11 : f32 to vector<256x128xf32>
    %16 = arith.maximumf %14, %15 : vector<256x128xf32>
    %17 = arith.truncf %16 : vector<256x128xf32> to vector<256x128xbf16>
    %c1 = arith.constant 1 : index
    %c0_12 = arith.constant 0 : index
    %c0_13 = arith.constant 0 : index
    %18 = vector.load %arg4[%c1, %c0_12, %c0_13] : memref<5x128x128xbf16, #tpu.memory_space<vmem>>, vector<1x128x128xbf16>
    %19 = vector.shape_cast %18 : vector<1x128x128xbf16> to vector<128x128xbf16>
    %cst_14 = arith.constant dense<0.000000e+00> : vector<256x128xf32>
    %20 = tpu.matmul %17, %19, %cst_14 {dimension_numbers = #tpu.dot_dimension_numbers<[1], [0], [0], [1], [0, 0, 1, 1], [], []>} : vector<256x128xbf16>, vector<128x128xbf16>, vector<256x128xf32> -> vector<256x128xf32>
    %c1_15 = arith.constant 1 : index
    %c0_16 = arith.constant 0 : index
    %21 = vector.load %arg5[%c1_15, %c0_16] : memref<5x128xf32, #tpu.memory_space<vmem>>, vector<1x128xf32>
    %22 = vector.shape_cast %21 : vector<1x128xf32> to vector<128xf32>
    %23 = vector.shape_cast %22 : vector<128xf32> to vector<1x128xf32>
    %24 = vector.broadcast %23 : vector<1x128xf32> to vector<256x128xf32>
    %25 = arith.addf %20, %24 : vector<256x128xf32>
    %cst_17 = arith.constant 0.000000e+00 : f32
    %26 = vector.broadcast %cst_17 : f32 to vector<256x128xf32>
    %27 = arith.maximumf %25, %26 : vector<256x128xf32>
    %28 = arith.truncf %27 : vector<256x128xf32> to vector<256x128xbf16>
    %c2 = arith.constant 2 : index
    %c0_18 = arith.constant 0 : index
    %c0_19 = arith.constant 0 : index
    %29 = vector.load %arg4[%c2, %c0_18, %c0_19] : memref<5x128x128xbf16, #tpu.memory_space<vmem>>, vector<1x128x128xbf16>
    %30 = vector.shape_cast %29 : vector<1x128x128xbf16> to vector<128x128xbf16>
    %cst_20 = arith.constant dense<0.000000e+00> : vector<256x128xf32>
    %31 = tpu.matmul %28, %30, %cst_20 {dimension_numbers = #tpu.dot_dimension_numbers<[1], [0], [0], [1], [0, 0, 1, 1], [], []>} : vector<256x128xbf16>, vector<128x128xbf16>, vector<256x128xf32> -> vector<256x128xf32>
    %c2_21 = arith.constant 2 : index
    %c0_22 = arith.constant 0 : index
    %32 = vector.load %arg5[%c2_21, %c0_22] : memref<5x128xf32, #tpu.memory_space<vmem>>, vector<1x128xf32>
    %33 = vector.shape_cast %32 : vector<1x128xf32> to vector<128xf32>
    %34 = vector.shape_cast %33 : vector<128xf32> to vector<1x128xf32>
    %35 = vector.broadcast %34 : vector<1x128xf32> to vector<256x128xf32>
    %36 = arith.addf %31, %35 : vector<256x128xf32>
    %cst_23 = arith.constant 0.000000e+00 : f32
    %37 = vector.broadcast %cst_23 : f32 to vector<256x128xf32>
    %38 = arith.maximumf %36, %37 : vector<256x128xf32>
    %39 = arith.truncf %38 : vector<256x128xf32> to vector<256x128xbf16>
    %c3 = arith.constant 3 : index
    %c0_24 = arith.constant 0 : index
    %c0_25 = arith.constant 0 : index
    %40 = vector.load %arg4[%c3, %c0_24, %c0_25] : memref<5x128x128xbf16, #tpu.memory_space<vmem>>, vector<1x128x128xbf16>
    %41 = vector.shape_cast %40 : vector<1x128x128xbf16> to vector<128x128xbf16>
    %cst_26 = arith.constant dense<0.000000e+00> : vector<256x128xf32>
    %42 = tpu.matmul %39, %41, %cst_26 {dimension_numbers = #tpu.dot_dimension_numbers<[1], [0], [0], [1], [0, 0, 1, 1], [], []>} : vector<256x128xbf16>, vector<128x128xbf16>, vector<256x128xf32> -> vector<256x128xf32>
    %c3_27 = arith.constant 3 : index
    %c0_28 = arith.constant 0 : index
    %43 = vector.load %arg5[%c3_27, %c0_28] : memref<5x128xf32, #tpu.memory_space<vmem>>, vector<1x128xf32>
    %44 = vector.shape_cast %43 : vector<1x128xf32> to vector<128xf32>
    %45 = vector.shape_cast %44 : vector<128xf32> to vector<1x128xf32>
    %46 = vector.broadcast %45 : vector<1x128xf32> to vector<256x128xf32>
    %47 = arith.addf %42, %46 : vector<256x128xf32>
    %cst_29 = arith.constant 0.000000e+00 : f32
    %48 = vector.broadcast %cst_29 : f32 to vector<256x128xf32>
    %49 = arith.maximumf %47, %48 : vector<256x128xf32>
    %50 = arith.truncf %49 : vector<256x128xf32> to vector<256x128xbf16>
    %c4 = arith.constant 4 : index
    %c0_30 = arith.constant 0 : index
    %c0_31 = arith.constant 0 : index
    %51 = vector.load %arg4[%c4, %c0_30, %c0_31] : memref<5x128x128xbf16, #tpu.memory_space<vmem>>, vector<1x128x128xbf16>
    %52 = vector.shape_cast %51 : vector<1x128x128xbf16> to vector<128x128xbf16>
    %cst_32 = arith.constant dense<0.000000e+00> : vector<256x128xf32>
    %53 = tpu.matmul %50, %52, %cst_32 {dimension_numbers = #tpu.dot_dimension_numbers<[1], [0], [0], [1], [0, 0, 1, 1], [], []>} : vector<256x128xbf16>, vector<128x128xbf16>, vector<256x128xf32> -> vector<256x128xf32>
    %c4_33 = arith.constant 4 : index
    %c0_34 = arith.constant 0 : index
    %54 = vector.load %arg5[%c4_33, %c0_34] : memref<5x128xf32, #tpu.memory_space<vmem>>, vector<1x128xf32>
    %55 = vector.shape_cast %54 : vector<1x128xf32> to vector<128xf32>
    %56 = vector.shape_cast %55 : vector<128xf32> to vector<1x128xf32>
    %57 = vector.broadcast %56 : vector<1x128xf32> to vector<256x128xf32>
    %58 = arith.addf %53, %57 : vector<256x128xf32>
    %cst_35 = arith.constant 0.000000e+00 : f32
    %59 = vector.broadcast %cst_35 : f32 to vector<256x128xf32>
    %60 = arith.maximumf %58, %59 : vector<256x128xf32>
    %61 = arith.truncf %60 : vector<256x128xf32> to vector<256x128xbf16>
    %c0_36 = arith.constant 0 : index
    %c0_37 = arith.constant 0 : index
    %62 = vector.load %arg6[%c0_36, %c0_37] : memref<128x128xbf16, #tpu.memory_space<vmem>>, vector<128x128xbf16>
    %cst_38 = arith.constant dense<0.000000e+00> : vector<256x128xf32>
    %63 = tpu.matmul %61, %62, %cst_38 {dimension_numbers = #tpu.dot_dimension_numbers<[1], [0], [0], [1], [0, 0, 1, 1], [], []>} : vector<256x128xbf16>, vector<128x128xbf16>, vector<256x128xf32> -> vector<256x128xf32>
    %c0_39 = arith.constant 0 : index
    %c0_40 = arith.constant 0 : index
    %64 = vector.load %arg7[%c0_39, %c0_40] : memref<1x128xf32, #tpu.memory_space<vmem>>, vector<1x128xf32>
    %65 = vector.broadcast %64 : vector<1x128xf32> to vector<256x128xf32>
    %66 = arith.addf %63, %65 : vector<256x128xf32>
    %67 = arith.truncf %66 : vector<256x128xf32> to vector<256x128xbf16>
    %c0_41 = arith.constant 0 : index
    %c0_42 = arith.constant 0 : index
    %68 = vector.load %arg8[%c0_41, %c0_42] : memref<256x128xbf16, #tpu.memory_space<vmem>>, vector<256x128xbf16>
    tpu.vector_store %arg8[%c0_41, %c0_42], %67 {strides = array<i32>} : memref<256x128xbf16, #tpu.memory_space<vmem>>, vector<256x128xbf16>,
    return
  }
  func.func @transform_0(%arg0: i32) -> (i32, i32) {
    %c0_i32 = arith.constant 0 : i32
    %c0_i32_0 = arith.constant 0 : i32
    return %arg0, %c0_i32 : i32, i32
  }
  func.func @transform_1(%arg0: i32) -> (i32, i32) {
    %c0_i32 = arith.constant 0 : i32
    %c0_i32_0 = arith.constant 0 : i32
    %c0_i32_1 = arith.constant 0 : i32
    return %c0_i32, %c0_i32_0 : i32, i32
  }
  func.func @transform_2(%arg0: i32) -> (i32, i32) {
    %c0_i32 = arith.constant 0 : i32
    %c0_i32_0 = arith.constant 0 : i32
    %c0_i32_1 = arith.constant 0 : i32
    return %c0_i32, %c0_i32_0 : i32, i32
  }
  func.func @transform_3(%arg0: i32) -> (i32, i32, i32) {
    %c0_i32 = arith.constant 0 : i32
    %c0_i32_0 = arith.constant 0 : i32
    %c0_i32_1 = arith.constant 0 : i32
    %c0_i32_2 = arith.constant 0 : i32
    return %c0_i32, %c0_i32_0, %c0_i32_1 : i32, i32, i32
  }
  func.func @transform_4(%arg0: i32) -> (i32, i32) {
    %c0_i32 = arith.constant 0 : i32
    %c0_i32_0 = arith.constant 0 : i32
    %c0_i32_1 = arith.constant 0 : i32
    return %c0_i32, %c0_i32_0 : i32, i32
  }
  func.func @transform_5(%arg0: i32) -> (i32, i32) {
    %c0_i32 = arith.constant 0 : i32
    %c0_i32_0 = arith.constant 0 : i32
    %c0_i32_1 = arith.constant 0 : i32
    return %c0_i32, %c0_i32_0 : i32, i32
  }
  func.func @transform_6(%arg0: i32) -> (i32, i32) {
    %c0_i32 = arith.constant 0 : i32
    %c0_i32_0 = arith.constant 0 : i32
    %c0_i32_1 = arith.constant 0 : i32
    return %c0_i32, %c0_i32_0 : i32, i32
  }
  func.func @transform_7(%arg0: i32) -> (i32, i32) {
    %c0_i32 = arith.constant 0 : i32
    %c0_i32_0 = arith.constant 0 : i32
    return %arg0, %c0_i32 : i32, i32
  }
}

module attributes {stable_mosaic.version = 11 : i64} {
  func.func @deepnoma_kernel(%arg0: i32, %arg1: memref<256x32xbf16, #tpu.memory_space<vmem>>, %arg2: memref<32x128xbf16, #tpu.memory_space<vmem>>, %arg3: memref<1x128xf32, #tpu.memory_space<vmem>>, %arg4: memref<5x128x128xbf16, #tpu.memory_space<vmem>>, %arg5: memref<5x128xf32, #tpu.memory_space<vmem>>, %arg6: memref<128x128xbf16, #tpu.memory_space<vmem>>, %arg7: memref<1x128xf32, #tpu.memory_space<vmem>>, %arg8: memref<256x128xbf16, #tpu.memory_space<vmem>>) attributes {dimension_semantics = [#tpu.dimension_semantics<parallel>], iteration_bounds = array<i64: 2>, scalar_prefetch = 0 : i64, scratch_operands = 0 : i64, tpu.core_type = #tpu.core_type<tc>, window_params = [{transform_indices = @transform_0, window_bounds = array<i64: 256, 32>}, {pipeline_mode = #tpu.pipeline_mode<synchronous>, transform_indices = @transform_1, window_bounds = array<i64: 32, 128>}, {pipeline_mode = #tpu.pipeline_mode<synchronous>, transform_indices = @transform_2, window_bounds = array<i64: 1, 128>}, {pipeline_mode = #tpu.pipeline_mode<synchronous>, transform_indices = @transform_3, window_bounds = array<i64: 5, 128, 128>}, {pipeline_mode = #tpu.pipeline_mode<synchronous>, transform_indices = @transform_4, window_bounds = array<i64: 5, 128>}, {pipeline_mode = #tpu.pipeline_mode<synchronous>, transform_indices = @transform_5, window_bounds = array<i64: 128, 128>}, {pipeline_mode = #tpu.pipeline_mode<synchronous>, transform_indices = @transform_6, window_bounds = array<i64: 1, 128>}, {transform_indices = @transform_7, window_bounds = array<i64: 256, 128>}]} {
    %c0 = arith.constant 0 : index
    %c0_0 = arith.constant 0 : index
    %0 = vector.load %arg1[%c0, %c0_0] : memref<256x32xbf16, #tpu.memory_space<vmem>>, vector<256x32xbf16>
    %c0_1 = arith.constant 0 : index
    %c0_2 = arith.constant 0 : index
    %1 = vector.load %arg2[%c0_1, %c0_2] : memref<32x128xbf16, #tpu.memory_space<vmem>>, vector<32x128xbf16>
    %cst = arith.constant dense<0.000000e+00> : vector<256x128xf32>
    %2 = tpu.matmul %0, %1, %cst {dimension_numbers = #tpu.dot_dimension_numbers<[1], [0], [0], [1], [0, 0, 1, 1], [], []>} : vector<256x32xbf16>, vector<32x128xbf16>, vector<256x128xf32> -> vector<256x128xf32>
    %c0_3 = arith.constant 0 : index
    %c0_4 = arith.constant 0 : index
    %3 = vector.load %arg3[%c0_3, %c0_4] : memref<1x128xf32, #tpu.memory_space<vmem>>, vector<1x128xf32>
    %4 = vector.broadcast %3 : vector<1x128xf32> to vector<256x128xf32>
    %5 = arith.addf %2, %4 : vector<256x128xf32>
    %6 = arith.truncf %5 : vector<256x128xf32> to vector<256x128xbf16>
    %c0_5 = arith.constant 0 : index
    %c0_6 = arith.constant 0 : index
    %c0_7 = arith.constant 0 : index
    %7 = vector.load %arg4[%c0_5, %c0_6, %c0_7] : memref<5x128x128xbf16, #tpu.memory_space<vmem>>, vector<1x128x128xbf16>
    %8 = vector.shape_cast %7 : vector<1x128x128xbf16> to vector<128x128xbf16>
    %cst_8 = arith.constant dense<0.000000e+00> : vector<256x128xf32>
    %9 = tpu.matmul %6, %8, %cst_8 {dimension_numbers = #tpu.dot_dimension_numbers<[1], [0], [0], [1], [0, 0, 1, 1], [], []>} : vector<256x128xbf16>, vector<128x128xbf16>, vector<256x128xf32> -> vector<256x128xf32>
    %c0_9 = arith.constant 0 : index
    %c0_10 = arith.constant 0 : index
    %10 = vector.load %arg5[%c0_9, %c0_10] : memref<5x128xf32, #tpu.memory_space<vmem>>, vector<1x128xf32>
    %11 = vector.shape_cast %10 : vector<1x128xf32> to vector<128xf32>
    %12 = vector.shape_cast %11 : vector<128xf32> to vector<1x128xf32>
    %13 = vector.broadcast %12 : vector<1x128xf32> to vector<256x128xf32>
    %14 = arith.addf %9, %13 : vector<256x128xf32>
    %cst_11 = arith.constant 0.000000e+00 : f32
    %15 = vector.broadcast %cst_11 : f32 to vector<256x128xf32>
    %16 = arith.maximumf %14, %15 : vector<256x128xf32>
    %17 = arith.truncf %16 : vector<256x128xf32> to vector<256x128xbf16>
    %c1 = arith.constant 1 : index
    %c0_12 = arith.constant 0 : index
    %c0_13 = arith.constant 0 : index
    %18 = vector.load %arg4[%c1, %c0_12, %c0_13] : memref<5x128x128xbf16, #tpu.memory_space<vmem>>, vector<1x128x128xbf16>
    %19 = vector.shape_cast %18 : vector<1x128x128xbf16> to vector<128x128xbf16>
    %cst_14 = arith.constant dense<0.000000e+00> : vector<256x128xf32>
    %20 = tpu.matmul %17, %19, %cst_14 {dimension_numbers = #tpu.dot_dimension_numbers<[1], [0], [0], [1], [0, 0, 1, 1], [], []>} : vector<256x128xbf16>, vector<128x128xbf16>, vector<256x128xf32> -> vector<256x128xf32>
    %c1_15 = arith.constant 1 : index
    %c0_16 = arith.constant 0 : index
    %21 = vector.load %arg5[%c1_15, %c0_16] : memref<5x128xf32, #tpu.memory_space<vmem>>, vector<1x128xf32>
    %22 = vector.shape_cast %21 : vector<1x128xf32> to vector<128xf32>
    %23 = vector.shape_cast %22 : vector<128xf32> to vector<1x128xf32>
    %24 = vector.broadcast %23 : vector<1x128xf32> to vector<256x128xf32>
    %25 = arith.addf %20, %24 : vector<256x128xf32>
    %cst_17 = arith.constant 0.000000e+00 : f32
    %26 = vector.broadcast %cst_17 : f32 to vector<256x128xf32>
    %27 = arith.maximumf %25, %26 : vector<256x128xf32>
    %28 = arith.truncf %27 : vector<256x128xf32> to vector<256x128xbf16>
    %c2 = arith.constant 2 : index
    %c0_18 = arith.constant 0 : index
    %c0_19 = arith.constant 0 : index
    %29 = vector.load %arg4[%c2, %c0_18, %c0_19] : memref<5x128x128xbf16, #tpu.memory_space<vmem>>, vector<1x128x128xbf16>
    %30 = vector.shape_cast %29 : vector<1x128x128xbf16> to vector<128x128xbf16>
    %cst_20 = arith.constant dense<0.000000e+00> : vector<256x128xf32>
    %31 = tpu.matmul %28, %30, %cst_20 {dimension_numbers = #tpu.dot_dimension_numbers<[1], [0], [0], [1], [0, 0, 1, 1], [], []>} : vector<256x128xbf16>, vector<128x128xbf16>, vector<256x128xf32> -> vector<256x128xf32>
    %c2_21 = arith.constant 2 : index
    %c0_22 = arith.constant 0 : index
    %32 = vector.load %arg5[%c2_21, %c0_22] : memref<5x128xf32, #tpu.memory_space<vmem>>, vector<1x128xf32>
    %33 = vector.shape_cast %32 : vector<1x128xf32> to vector<128xf32>
    %34 = vector.shape_cast %33 : vector<128xf32> to vector<1x128xf32>
    %35 = vector.broadcast %34 : vector<1x128xf32> to vector<256x128xf32>
    %36 = arith.addf %31, %35 : vector<256x128xf32>
    %cst_23 = arith.constant 0.000000e+00 : f32
    %37 = vector.broadcast %cst_23 : f32 to vector<256x128xf32>
    %38 = arith.maximumf %36, %37 : vector<256x128xf32>
    %39 = arith.truncf %38 : vector<256x128xf32> to vector<256x128xbf16>
    %c3 = arith.constant 3 : index
    %c0_24 = arith.constant 0 : index
    %c0_25 = arith.constant 0 : index
    %40 = vector.load %arg4[%c3, %c0_24, %c0_25] : memref<5x128x128xbf16, #tpu.memory_space<vmem>>, vector<1x128x128xbf16>
    %41 = vector.shape_cast %40 : vector<1x128x128xbf16> to vector<128x128xbf16>
    %cst_26 = arith.constant dense<0.000000e+00> : vector<256x128xf32>
    %42 = tpu.matmul %39, %41, %cst_26 {dimension_numbers = #tpu.dot_dimension_numbers<[1], [0], [0], [1], [0, 0, 1, 1], [], []>} : vector<256x128xbf16>, vector<128x128xbf16>, vector<256x128xf32> -> vector<256x128xf32>
    %c3_27 = arith.constant 3 : index
    %c0_28 = arith.constant 0 : index
    %43 = vector.load %arg5[%c3_27, %c0_28] : memref<5x128xf32, #tpu.memory_space<vmem>>, vector<1x128xf32>
    %44 = vector.shape_cast %43 : vector<1x128xf32> to vector<128xf32>
    %45 = vector.shape_cast %44 : vector<128xf32> to vector<1x128xf32>
    %46 = vector.broadcast %45 : vector<1x128xf32> to vector<256x128xf32>
    %47 = arith.addf %42, %46 : vector<256x128xf32>
    %cst_29 = arith.constant 0.000000e+00 : f32
    %48 = vector.broadcast %cst_29 : f32 to vector<256x128xf32>
    %49 = arith.maximumf %47, %48 : vector<256x128xf32>
    %50 = arith.truncf %49 : vector<256x128xf32> to vector<256x128xbf16>
    %c4 = arith.constant 4 : index
    %c0_30 = arith.constant 0 : index
    %c0_31 = arith.constant 0 : index
    %51 = vector.load %arg4[%c4, %c0_30, %c0_31] : memref<5x128x128xbf16, #tpu.memory_space<vmem>>, vector<1x128x128xbf16>
    %52 = vector.shape_cast %51 : vector<1x128x128xbf16> to vector<128x128xbf16>
    %cst_32 = arith.constant dense<0.000000e+00> : vector<256x128xf32>
    %53 = tpu.matmul %50, %52, %cst_32 {dimension_numbers = #tpu.dot_dimension_numbers<[1], [0], [0], [1], [0, 0, 1, 1], [], []>} : vector<256x128xbf16>, vector<128x128xbf16>, vector<256x128xf32> -> vector<256x128xf32>
    %c4_33 = arith.constant 4 : index
    %c0_34 = arith.constant 0 : index
    %54 = vector.load %arg5[%c4_33, %c0_34] : memref<5x128xf32, #tpu.memory_space<vmem>>, vector<1x128xf32>
    %55 = vector.shape_cast %54 : vector<1x128xf32> to vector<128xf32>
    %56 = vector.shape_cast %55 : vector<128xf32> to vector<1x128xf32>
    %57 = vector.broadcast %56 : vector<1x128xf32> to vector<256x128xf32>
    %58 = arith.addf %53, %57 : vector<256x128xf32>
    %cst_35 = arith.constant 0.000000e+00 : f32
    %59 = vector.broadcast %cst_35 : f32 to vector<256x128xf32>
    %60 = arith.maximumf %58, %59 : vector<256x128xf32>
    %61 = arith.truncf %60 : vector<256x128xf32> to vector<256x128xbf16>
    %c0_36 = arith.constant 0 : index
    %c0_37 = arith.constant 0 : index
    %62 = vector.load %arg6[%c0_36, %c0_37] : memref<128x128xbf16, #tpu.memory_space<vmem>>, vector<128x128xbf16>
    %cst_38 = arith.constant dense<0.000000e+00> : vector<256x128xf32>
    %63 = tpu.matmul %61, %62, %cst_38 {dimension_numbers = #tpu.dot_dimension_numbers<[1], [0], [0], [1], [0, 0, 1, 1], [], []>} : vector<256x128xbf16>, vector<128x128xbf16>, vector<256x128xf32> -> vector<256x128xf32>
    %c0_39 = arith.constant 0 : index
    %c0_40 = arith.constant 0 : index
    %64 = vector.load %arg7[%c0_39, %c0_40] : memref<1x128xf32, #tpu.memory_space<vmem>>, vector<1x128xf32>
    %65 = vector.broadcast %64 : vector<1x128xf32> to vector<256x128xf32>
    %66 = arith.addf %63, %65 : vector<256x128xf32>
    %67 = arith.truncf %66 : vector<256x128xf32> to vector<256x128xbf16>
    %c0_41 = arith.constant 0 : index
    %c0_42 = arith.constant 0 : index
    %68 = vector.load %arg8[%c0_41, %c0_42] : memref<256x128xbf16, #tpu.memory_space<vmem>>, vector<256x128xbf16>
    tpu.vector_store %arg8[%c0_41, %c0_42], %67 {strides = array<i32>} : memref<256x128xbf16, #tpu.memory_space<vmem>>, vector<256x128xbf16>,
    return
  }
  func.func @transform_0(%arg0: i32) -> (i32, i32) {
    %c0_i32 = arith.constant 0 : i32
    %c0_i32_0 = arith.constant 0 : i32
    return %arg0, %c0_i32 : i32, i32
  }
  func.func @transform_1(%arg0: i32) -> (i32, i32) {
    %c0_i32 = arith.constant 0 : i32
    %c0_i32_0 = arith.constant 0 : i32
    %c0_i32_1 = arith.constant 0 : i32
    return %c0_i32, %c0_i32_0 : i32, i32
  }
  func.func @transform_2(%arg0: i32) -> (i32, i32) {
    %c0_i32 = arith.constant 0 : i32
    %c0_i32_0 = arith.constant 0 : i32
    %c0_i32_1 = arith.constant 0 : i32
    return %c0_i32, %c0_i32_0 : i32, i32
  }
  func.func @transform_3(%arg0: i32) -> (i32, i32, i32) {
    %c0_i32 = arith.constant 0 : i32
    %c0_i32_0 = arith.constant 0 : i32
    %c0_i32_1 = arith.constant 0 : i32
    %c0_i32_2 = arith.constant 0 : i32
    return %c0_i32, %c0_i32_0, %c0_i32_1 : i32, i32, i32
  }
  func.func @transform_4(%arg0: i32) -> (i32, i32) {
    %c0_i32 = arith.constant 0 : i32
    %c0_i32_0 = arith.constant 0 : i32
    %c0_i32_1 = arith.constant 0 : i32
    return %c0_i32, %c0_i32_0 : i32, i32
  }
  func.func @transform_5(%arg0: i32) -> (i32, i32) {
    %c0_i32 = arith.constant 0 : i32
    %c0_i32_0 = arith.constant 0 : i32
    %c0_i32_1 = arith.constant 0 : i32
    return %c0_i32, %c0_i32_0 : i32, i32
  }
  func.func @transform_6(%arg0: i32) -> (i32, i32) {
    %c0_i32 = arith.constant 0 : i32
    %c0_i32_0 = arith.constant 0 : i32
    %c0_i32_1 = arith.constant 0 : i32
    return %c0_i32, %c0_i32_0 : i32, i32
  }
  func.func @transform_7(%arg0: i32) -> (i32, i32) {
    %c0_i32 = arith.constant 0 : i32
    %c0_i32_0 = arith.constant 0 : i32
    return %arg0, %c0_i32 : i32, i32
  }
}

</mosaic_0001>

<bundles_post_ra>
// kernel: tpu_custom_call.1
= control target key start
LH: loop header
LB: loop body
LE: loop exit
PB: predicated region body
PF: predicated region fallthrough
CT: control target
= control target key end

     0   :  { %12 = vsyncpa [#allocation3], 0  ;;  %s3351_s0 = inlined_call_operand.vmem [shape: bf16[512,32], index: 0, kind: input, shape index: {}]   ;;  %s3352_s1 = inlined_call_operand.hbm [shape: bf16[32,128], index: 1, kind: input, shape index: {}]   ;;  %s3353_s2 = inlined_call_operand.vmem [shape: f32[1,128], index: 2, kind: input, shape index: {}]   ;;  %s3354_s3 = inlined_call_operand.vmem [shape: bf16[5,128,128], index: 3, kind: input, shape index: {}]   ;;  %s3355_s4 = inlined_call_operand.hbm [shape: f32[5,128], index: 4, kind: input, shape index: {}]   ;;  %s3356_s5 = inlined_call_operand.hbm [shape: bf16[128,128], index: 5, kind: input, shape index: {}]   ;;  %s3357_s6 = inlined_call_operand.vmem [shape: f32[1,128], index: 6, kind: input, shape index: {}]   ;;  %s3358_s7 = inlined_call_operand.hbm [shape: bf16[512,128], index: 7, kind: output, shape index: {}]  }
   0x1   :  { %13 = vsyncpa [#allocation6], 0 }
   0x2   :  { %14 = vsyncpa [#allocation4], 0 }
   0x3   :  { %16 = vsyncpa [#allocation4 + $0x1], 0  ;;  %s2796_s24 = smov 0   ;;  %s2798_s25 = smov 0  }
   0x4   :  { %s2800_s26 = smov 0   ;;  %s2802_s27 = smov 0  }
   0x5 LB: > { %s2817_s28 = sadd.s32 4294967295, %s2747_s27   ;;  %s1964_s29 = sadd.s32 4294967294, %s2747_s27   ;;  %s2747_s27 = sphi %s2802_s27, %s3366_s27   ;;  %s2743_s26 = sphi %s2800_s26, %s3365_s26   ;;  %s2739_s25 = sphi %s2798_s25, %s3364_s25   ;;  %s2735_s24 = sphi %s2796_s24, %s3363_s24  }
   0x6   : > { %s2821_s30 = sadd.s32 1, %s2747_s27   ;;  %s181_s8 = sadd.s32 1, %s2743_s26 }
   0x7   : > { %s178_s9 = ssub.s32 %s2747_s27, %s2821_s30  ;;  %p191_p0 = scmp.ne.s32.totalorder %s2743_s26, %s2739_s25 }
   0x8   : > { %p179_p1 = scmp.eq.s32.totalorder %s178_s9, 0  ;;  %p192_p2 = scmp.eq.s32.totalorder %s2817_s28, 1 }
   0x9   : > { %p197_p3 = scmp.ne.s32.totalorder %s2739_s25, %s2735_s24  ;;  %p198_p4 = scmp.eq.s32.totalorder %s1964_s29, 1 }
   0xa   : > { %s2832_s10 = scalar_select %p179_p1, %s2743_s26, %s181_s8  }
   0xb   : > { %p2834_p5 = por %p192_p2, %p191_p0  ;;  %p2838_p6 = por %p198_p4, %p197_p3 }
   0xc   : > { %p1965_p7 = scmp.ge.s32.totalorder %s2747_s27, 1  ;;  %p205_p8 = scmp.lt.s32.totalorder %s2747_s27, 3 }
   0xd   : > { %p2534_p9 = scmp.eq.s32.totalorder %s2817_s28, 0  ;;  %s237_s16 = sshll.u32 %s3355_s4, 4  ;;  %s238_s16 = int_to_ptr.hbm [resolvable:$true] %s237_s16 }
   0xe   : > { %p2845_p10 = pnand %p1965_p7, %p205_p8  ;;  %s2749_s17 = smov [#allocation5]  }
   0xf   : > { %s239_s18 = sshll.u32 %s2749_s17, 4  ;;  %s216_s21 = sshll.u32 %s3352_s1, 4  ;;  %s240_s18 = int_to_ptr.vmem [resolvable:$true] %s239_s18  ;;  %s217_s21 = int_to_ptr.hbm [resolvable:$true] %s216_s21 }
  0x10   : > { %p2520_p11 = pneg %p2845_p10  ;;  %s2750_s23 = smov [#allocation2]  }
  0x11   : > { %s218_s29 = sshll.u32 %s2750_s23, 4  ;;  %s2751_s8 = smov 64   ;;  %s219_s29 = int_to_ptr.vmem [resolvable:$true] %s218_s29 }
  0x12   : > { %p2859_p12 = pnand %p2534_p9, %p2520_p11  ;;  %s2752_s9 = smov 4  }
  0x13   : > { %s248_s17 = sshll.u32 %s3356_s5, 4  ;;  %s2753_s19 = smov [#allocation7]   ;;  %s249_s17 = int_to_ptr.hbm [resolvable:$true] %s248_s17 }
  0x14   : > { %2526 = dma.hbm_to_vmem [thread:$0]  (!%p2859_p12), %s238_s16, 128, %s240_s18, [#allocation6]  }
  0x15   : > { %2523 = dma.hbm_to_vmem [thread:$0]  (!%p2859_p12), %s217_s21, 256, %s219_s29, [#allocation3], %s2751_s8, %s2751_s8, %s2752_s9  }
  0x16   : > { %s250_s20 = sshll.u32 %s2753_s19, 4  ;;  %278 = sbr.rel (%p2845_p10) target bundleno = 1392 (0x570), region = 48  ;;  %s251_s20 = int_to_ptr.vmem [resolvable:$true] %s250_s20 }
  0x17   : > { %2529 = dma.hbm_to_vmem [thread:$0]  (!%p2859_p12), %s249_s17, 1024, %s251_s20, [#allocation6], %s2751_s8, %s2751_s8, %s2752_s9  }
  0x1b   : > { %2722 = dma.done.wait (%p2534_p9), [#allocation3], 256  }
  0x1c   : > { %2724 = vsyncadd (%p2534_p9), [#allocation3], 4294967040 }
  0x1d   : > { %2726 = dma.done.wait (%p2534_p9), [#allocation6], 1152  }
  0x1e   : > { %2728 = vsyncadd (%p2534_p9), [#allocation6], 4294966144  ;;  %s1975_s16 = sshll.u32 %s2817_s28, 5  ;;  %v2343_v0 = vld [vmem:[#allocation2 + $0x8] sm:$0xff]  ;;  %v2342_v1 = vld [vmem:[#allocation2] sm:$0xff]  ;;  %vm461_vm0 = vcmask 261120  }
  0x1f   : > { %p322_p13 = scmp.lt.s32.totalorder %s1975_s16, 63  ;;  %516 = vmatpush.bf16.msra.mxu0 %v2343_v0  ;;  %2488 = vmatpush.bf16.msra.mxu3 %v2343_v0  ;;  %v2351_v7 = vld [vmem:[%s3354_s3 + $0x38] sm:$0xff]  ;;  %v2350_v8 = vld [vmem:[%s3354_s3 + $0x30] sm:$0xff]  ;;  %v2349_v10 = vld [vmem:[%s3354_s3 + $0x28] sm:$0xff]  ;;  %s318_s21 = sand.u32 1, %s2739_s25  }
  0x20   : > { %681 = vmatpush.bf16.msra.mxu1 %v2351_v7  ;;  %v2348_v11 = vld [vmem:[%s3354_s3 + $0x20] sm:$0xff]  ;;  %v2347_v12 = vld [vmem:[%s3354_s3 + $0x18] sm:$0xff]  ;;  %v2346_v14 = vld [vmem:[%s3354_s3 + $0x10] sm:$0xff]  ;;  %s1974_s8 = sshll.u32 %s318_s21, 7  ;;  %s2392_s14 = sshll.u32 %s2817_s28, 7 }
  0x21   : > { %s3368_s16 = smov (!%p322_p13, %s1975_s16), 63  ;;  %v2345_v15 = vld [vmem:[%s3354_s3 + $0x8] sm:$0xff]  ;;  %v2344_v16 = vld [vmem:[%s3354_s3] sm:$0xff]  ;;  %v2359_v54 = vld [vmem:[%s3354_s3 + $0x78] sm:$0xff]  ;;  %s3257_s9 = scalar_lea.vmem [#allocation8], %s1974_s8 }
  0x22   : > { %s1976_s18 = sshll.u32 %s3368_s16, 2  ;;  %v2933_v20 = vld [vmem:[%s3353_s2] ss:$0 sm:$0xff]  ;;  %885 = vmatpush.bf16.msra.mxu2 %v2359_v54  ;;  %v2358_v58 = vld [vmem:[%s3354_s3 + $0x70] sm:$0xff]  ;;  %v2357_v60 = vld [vmem:[%s3354_s3 + $0x68] sm:$0xff]  ;;  %s1868_s19 = sshll.u32 %s3257_s9, 4  ;;  %s1869_s19 = int_to_ptr.vmem [resolvable:$true] %s1868_s19 }
  0x23   : > { %s2886_s22 = scalar_lea.vmem %s3351_s0, %s1976_s18  ;;  %517 = vmatpush.bf16.msra.mxu0 %v2342_v1  ;;  %2489 = vmatpush.bf16.msra.mxu3 %v2342_v1  ;;  %v2356_v61 = vld [vmem:[%s3354_s3 + $0x60] sm:$0xff]  ;;  %v2355_v63 = vld [vmem:[%s3354_s3 + $0x58] sm:$0xff]  ;;  %s1856_s16 = scalar_lea.sflag [#allocation4], %s318_s21 }
  0x24   : > { %v2326_v2 = vld [vmem:[%s2886_s22] sm:$0xff]  ;;  %v2327_v3 = vld [vmem:[%s2886_s22 + $0x8] sm:$0xff]  ;;  %v2328_v4 = vld [vmem:[%s2886_s22 + $0x10] sm:$0xff]  ;;  %682 = vmatpush.bf16.msra.mxu1 %v2350_v8  ;;  %s2697_s29 = scalar_lea.hbm %s3358_s7, 256 }
  0x25   : > { %v2329_v5 = vld [vmem:[%s2886_s22 + $0x18] sm:$0xff]  ;;  %v2330_v6 = vld [vmem:[%s2886_s22 + $0x20] sm:$0xff]  ;;  %v2331_v9 = vld [vmem:[%s2886_s22 + $0x28] sm:$0xff] }
  0x26   : > { %2049 = vmatmul.msk.bf16.vlgmr.msra.gmra.mxu0 %vm461_vm0, %v2326_v2  ;;  %v2332_v13 = vld [vmem:[%s2886_s22 + $0x30] sm:$0xff]  ;;  %v2333_v17 = vld [vmem:[%s2886_s22 + $0x38] sm:$0xff]  ;;  %v2334_v18 = vld [vmem:[%s2886_s22 + $0x40] sm:$0xff]  ;;  %886 = vmatpush.bf16.msra.mxu2 %v2358_v58 }
  0x27   : > { %2490 = vmatpush.bf16.msrb.mxu3 %v2351_v7  ;;  %v2335_v25 = vld [vmem:[%s2886_s22 + $0x48] sm:$0xff]  ;;  %v2336_v31 = vld [vmem:[%s2886_s22 + $0x50] sm:$0xff]  ;;  %v2337_v38 = vld [vmem:[%s2886_s22 + $0x58] sm:$0xff] }
  0x28   : > { %683 = vmatpush.bf16.msra.mxu1 %v2349_v10  ;;  %v2339_v33 = vld [vmem:[%s2886_s22 + $0x68] sm:$0xff]  ;;  %v2340_v40 = vld [vmem:[%s2886_s22 + $0x70] sm:$0xff]  ;;  %v2338_v45 = vld [vmem:[%s2886_s22 + $0x60] sm:$0xff] }
  0x29   : > { %2062 = vmatmul.msk.bf16.vlgmr.msra.gmra.mxu3 %vm461_vm0, %v2339_v33  ;;  %v2341_v47 = vld [vmem:[%s2886_s22 + $0x78] sm:$0xff]  ;;  %s1867_s22 = scalar_lea.hbm %s3358_s7, %s2392_s14 }
  0x2a   : > { %887 = vmatpush.bf16.msra.mxu2 %v2357_v60  ;;  %s1870_s20 = sshll.u32 %s1867_s22, 4  ;;  %s1871_s20 = int_to_ptr.hbm [resolvable:$true] %s1870_s20 }
  0x2b   : > { %2491 = vmatpush.bf16.msrb.mxu3 %v2350_v8  ;;  %s2691_s18 = sshra.s32 %s1871_s20, 4  ;;  %s2692_s18 = int_to_ptr.hbm [resolvable:$true] %s2691_s18 }
  0x2c   : > { %684 = vmatpush.bf16.msra.mxu1 %v2348_v11  ;;  %s2693_s28 = scalar_lea.hbm %s2692_s18, 128  ;;  %p2698_p3 = scmp.lt.s32.totalorder %s2692_s18, %s3358_s7 }
  0x2d   : > { %p2694_p0 = scmp.ne.s32.totalorder %s2692_s18, %s2693_s28  ;;  %p2699_p4 = scmp.lt.s32.totalorder %s2697_s29, %s2693_s28 }
  0x2e   : > { %888 = vmatpush.bf16.msra.mxu2 %v2356_v61 }
  0x2f   : > { %2492 = vmatpush.bf16.msrb.mxu3 %v2349_v10  ;;  %p2695_p1 = pnand %p2694_p0, %p2834_p5  ;;  %p2700_p7 = por %p2699_p4, %p2698_p3 }
  0x30   : > { %685 = vmatpush.bf16.msra.mxu1 %v2347_v12 }
  0x31   : > { %p2696_p2 = pneg %p2695_p1 }
  0x32   : > { %889 = vmatpush.bf16.msra.mxu2 %v2355_v63 }
  0x33   : > { %2493 = vmatpush.bf16.msrb.mxu3 %v2348_v11  ;;  %p2701_p8 = pnand %p2700_p7, %p2696_p2 }
  0x34   : > { %686 = vmatpush.bf16.msra.mxu1 %v2346_v14 }
  0x36   : > { %2050 = vmatmul.msk.bf16.gmra.mxu0 %vm461_vm0, %v2327_v3  ;;  %v2354_v3 = vld [vmem:[%s3354_s3 + $0x50] sm:$0xff] }
  0x37   : > { %2494 = vmatpush.bf16.msrb.mxu3 %v2347_v12  ;;  %890 = vmatpush.bf16.msra.mxu2 %v2354_v3 }
  0x38   : > { %687 = vmatpush.bf16.msra.mxu1 %v2345_v15 }
  0x39   : > { %2063 = vmatmul.msk.bf16.gmra.mxu3 %vm461_vm0, %v2340_v40 }
  0x3b   : > { %2495 = vmatpush.bf16.msrb.mxu3 %v2346_v14 }
  0x3c   : > { %688 = vmatpush.bf16.msra.mxu1 %v2344_v16 }
  0x3f   : > { %2496 = vmatpush.bf16.msrb.mxu3 %v2345_v15 }
  0x43   : > { %2497 = vmatpush.bf16.msrb.mxu3 %v2344_v16 }
  0x46   : > { %2051 = vmatmul.msk.bf16.gmra.mxu0 %vm461_vm0, %v2328_v4 }
  0x47   : > { %2498 = vmatpush.bf16.msra.mxu3 %v2359_v54 }
  0x49   : > { %2064 = vmatmul.msk.bf16.gmra.mxu3 %vm461_vm0, %v2341_v47 }
  0x4b   : > { %2499 = vmatpush.bf16.msra.mxu3 %v2358_v58 }
  0x4f   : > { %2500 = vmatpush.bf16.msra.mxu3 %v2357_v60 }
  0x53   : > { %2501 = vmatpush.bf16.msra.mxu3 %v2356_v61 }
  0x56   : > { %2052 = vmatmul.msk.bf16.gmra.mxu0 %vm461_vm0, %v2329_v5  ;;  %v2353_v5 = vld [vmem:[%s3354_s3 + $0x48] sm:$0xff] }
  0x57   : > { %2502 = vmatpush.bf16.msra.mxu3 %v2355_v63  ;;  %891 = vmatpush.bf16.msra.mxu2 %v2353_v5 }
  0x5b   : > { %2503 = vmatpush.bf16.msra.mxu3 %v2354_v3 }
  0x5f   : > { %2504 = vmatpush.bf16.msra.mxu3 %v2353_v5 }
  0x66   : > { %2053 = vmatmul.msk.bf16.gmra.mxu0 %vm461_vm0, %v2330_v6  ;;  %v2352_v6 = vld [vmem:[%s3354_s3 + $0x40] sm:$0xff] }
  0x67   : > { %892 = vmatpush.bf16.msra.mxu2 %v2352_v6  ;;  %2505 = vmatpush.bf16.msra.mxu3 %v2352_v6 }
  0x76   : > { %2054 = vmatmul.msk.bf16.gmra.mxu0 %vm461_vm0, %v2331_v9 }
  0x86   : > { %2055 = vmatmul.msk.bf16.gmra.mxu0 %vm461_vm0, %v2332_v13 }
  0x96   : > { %2056 = vmatmul.msk.bf16.gmra.mxu0 %vm461_vm0, %v2333_v17  ;;  %v2991_v17 = vld [vmem:[#allocation5] ss:$0 sm:$0xff] }
  0xa3   : > { %v519_v19 = vpop.f32.mrf.mxu0 }
  0xa4   : > { %v520_v22 = vadd.f32 %v2933_v20, %v519_v19 }
  0xa6   : > { %2057 = vmatmul.msk.bf16.gmra.mxu0 %vm461_vm0, %v2334_v18 }
  0xab   : > { %v521_v21 = vpop.f32.mrf.mxu0 }
  0xac   : > { %v522_v23 = vadd.f32 %v2933_v20, %v521_v21  ;;  %v584_v58 = vpop.f32.mrf.mxu3 }
  0xae   : > { %v599_v24 = vpack.c.bf16 %v522_v23, %v520_v22 }
  0xb0   : > { %689 = vmatmul.bf16.vlgmr.msra.gmra.mxu1 %v599_v24 }
  0xb3   : > { %v524_v26 = vpop.f32.mrf.mxu0 }
  0xb4   : > { %v525_v28 = vadd.f32 %v2933_v20, %v524_v26 }
  0xb6   : > { %2058 = vmatmul.msk.bf16.gmra.mxu0 %vm461_vm0, %v2335_v25 }
  0xbb   : > { %v526_v27 = vpop.f32.mrf.mxu0 }
  0xbc   : > { %v527_v29 = vadd.f32 %v2933_v20, %v526_v27 }
  0xbe   : > { %v600_v30 = vpack.c.bf16 %v527_v29, %v525_v28 }
  0xc0   : > { %694 = vmatmul.bf16.gmra.mxu1 %v600_v30 }
  0xc3   : > { %v529_v32 = vpop.f32.mrf.mxu0 }
  0xc4   : > { %v530_v35 = vadd.f32 %v2933_v20, %v529_v32 }
  0xc6   : > { %2059 = vmatmul.msk.bf16.gmra.mxu0 %vm461_vm0, %v2336_v31 }
  0xcb   : > { %v531_v34 = vpop.f32.mrf.mxu0 }
  0xcc   : > { %v532_v36 = vadd.f32 %v2933_v20, %v531_v34 }
  0xce   : > { %v601_v37 = vpack.c.bf16 %v532_v36, %v530_v35 }
  0xd0   : > { %699 = vmatmul.bf16.gmra.mxu1 %v601_v37 }
  0xd3   : > { %v534_v39 = vpop.f32.mrf.mxu0 }
  0xd4   : > { %v535_v42 = vadd.f32 %v2933_v20, %v534_v39 }
  0xd6   : > { %2060 = vmatmul.msk.bf16.gmra.mxu0 %vm461_vm0, %v2337_v38 }
  0xdb   : > { %v536_v41 = vpop.f32.mrf.mxu0 }
  0xdc   : > { %v537_v43 = vadd.f32 %v2933_v20, %v536_v41 }
  0xde   : > { %v602_v44 = vpack.c.bf16 %v537_v43, %v535_v42 }
  0xe0   : > { %704 = vmatmul.bf16.gmra.mxu1 %v602_v44 }
  0xe3   : > { %v539_v46 = vpop.f32.mrf.mxu0 }
  0xe4   : > { %v540_v49 = vadd.f32 %v2933_v20, %v539_v46 }
  0xe6   : > { %2061 = vmatmul.msk.bf16.gmra.mxu0 %vm461_vm0, %v2338_v45 }
  0xeb   : > { %v541_v48 = vpop.f32.mrf.mxu0 }
  0xec   : > { %v542_v50 = vadd.f32 %v2933_v20, %v541_v48 }
  0xee   : > { %v603_v51 = vpack.c.bf16 %v542_v50, %v540_v49 }
  0xf0   : > { %709 = vmatmul.bf16.gmra.mxu1 %v603_v51 }
  0xf3   : > { %v544_v52 = vpop.f32.mrf.mxu0 }
  0xf4   : > { %v545_v55 = vadd.f32 %v2933_v20, %v544_v52 }
  0xfb   : > { %v546_v53 = vpop.f32.mrf.mxu0 }
  0xfc   : > { %v547_v56 = vadd.f32 %v2933_v20, %v546_v53 }
  0xfe   : > { %v604_v57 = vpack.c.bf16 %v547_v56, %v545_v55 }
 0x100   : > { %714 = vmatmul.bf16.gmra.mxu1 %v604_v57 }
 0x103   : > { %v549_v59 = vpop.f32.mrf.mxu0 }
 0x104   : > { %v550_v0 = vadd.f32 %v2933_v20, %v549_v59 }
 0x10b   : > { %v551_v62 = vpop.f32.mrf.mxu0 }
 0x10c   : > { %v552_v1 = vadd.f32 %v2933_v20, %v551_v62 }
 0x10e   : > { %v605_v2 = vpack.c.bf16 %v552_v1, %v550_v0 }
 0x110   : > { %719 = vmatmul.bf16.gmra.mxu1 %v605_v2 }
 0x113   : > { %v554_v4 = vpop.f32.mrf.mxu0 }
 0x114   : > { %v555_v8 = vadd.f32 %v2933_v20, %v554_v4  ;;  %v586_v4 = vpop.f32.mrf.mxu3 }
 0x11b   : > { %v556_v7 = vpop.f32.mrf.mxu0 }
 0x11c   : > { %v557_v9 = vadd.f32 %v2933_v20, %v556_v7 }
 0x11e   : > { %v606_v10 = vpack.c.bf16 %v557_v9, %v555_v8 }
 0x120   : > { %724 = vmatmul.bf16.gmra.mxu1 %v606_v10  ;;  %v589_v10 = vpop.f32.mrf.mxu3 }
 0x123   : > { %v559_v11 = vpop.f32.mrf.mxu0 }
 0x124   : > { %v560_v13 = vadd.f32 %v2933_v20, %v559_v11  ;;  %v585_v11 = vadd.f32 %v2933_v20, %v584_v58 }
 0x12b   : > { %v561_v12 = vpop.f32.mrf.mxu0 }
 0x12c   : > { %v562_v14 = vadd.f32 %v2933_v20, %v561_v12  ;;  %v587_v12 = vadd.f32 %v2933_v20, %v586_v4  ;;  %v2367_v4 = vld [vmem:[%s3354_s3 + $0xb8] sm:$0xff] }
 0x12d   : > { %v690_v15 = vpop.f32.mrf.mxu1 }
 0x12e   : > { %v607_v16 = vpack.c.bf16 %v562_v14, %v560_v13  ;;  %v691_v19 = vadd.f32 %v2991_v17, %v690_v15  ;;  %v612_v15 = vpack.c.bf16 %v587_v12, %v585_v11  ;;  %v2366_v12 = vld [vmem:[%s3354_s3 + $0xb0] sm:$0xff] }
 0x130   : > { %729 = vmatmul.bf16.gmra.mxu1 %v607_v16  ;;  %v770_v23 = vmax.f32 %v691_v19, 0.0  ;;  %v591_v16 = vpop.f32.mrf.mxu3 }
 0x133   : > { %v564_v18 = vpop.f32.mrf.mxu0 }
 0x134   : > { %v565_v27 = vadd.f32 %v2933_v20, %v564_v18 }
 0x135   : > { %v692_v21 = vpop.f32.mrf.mxu1 }
 0x136   : > { %v693_v22 = vadd.f32 %v2991_v17, %v692_v21 }
 0x138   : > { %v771_v24 = vmax.f32 %v693_v22, 0.0 }
 0x13a   : > { %v802_v25 = vpack.c.bf16 %v771_v24, %v770_v23  ;;  %v590_v24 = vadd.f32 %v2933_v20, %v589_v10 }
 0x13b   : > { %v566_v26 = vpop.f32.mrf.mxu0 }
 0x13c   : > { %v567_v28 = vadd.f32 %v2933_v20, %v566_v26  ;;  %893 = vmatmul.bf16.vlgmr.msra.gmra.mxu2 %v802_v25  ;;  %v592_v25 = vadd.f32 %v2933_v20, %v591_v16  ;;  %v2364_v16 = vld [vmem:[%s3354_s3 + $0xa0] sm:$0xff] }
 0x13d   : > { %v695_v29 = vpop.f32.mrf.mxu1 }
 0x13e   : > { %v608_v30 = vpack.c.bf16 %v567_v28, %v565_v27  ;;  %v696_v32 = vadd.f32 %v2991_v17, %v695_v29  ;;  %v594_v27 = vpop.f32.mrf.mxu3  ;;  %v613_v29 = vpack.c.bf16 %v592_v25, %v590_v24 }
 0x140   : > { %734 = vmatmul.bf16.gmra.mxu1 %v608_v30  ;;  %v772_v35 = vmax.f32 %v696_v32, 0.0 }
 0x143   : > { %v569_v31 = vpop.f32.mrf.mxu0 }
 0x144   : > { %v570_v39 = vadd.f32 %v2933_v20, %v569_v31 }
 0x145   : > { %v697_v33 = vpop.f32.mrf.mxu1 }
 0x146   : > { %v698_v34 = vadd.f32 %v2991_v17, %v697_v33  ;;  %v596_v33 = vpop.f32.mrf.mxu3 }
 0x148   : > { %v773_v36 = vmax.f32 %v698_v34, 0.0 }
 0x14a   : > { %v803_v37 = vpack.c.bf16 %v773_v36, %v772_v35  ;;  %v595_v36 = vadd.f32 %v2933_v20, %v594_v27 }
 0x14b   : > { %v571_v38 = vpop.f32.mrf.mxu0 }
 0x14c   : > { %v572_v40 = vadd.f32 %v2933_v20, %v571_v38  ;;  %898 = vmatmul.bf16.gmra.mxu2 %v803_v37  ;;  %v597_v37 = vadd.f32 %v2933_v20, %v596_v33 }
 0x14d   : > { %v700_v41 = vpop.f32.mrf.mxu1 }
 0x14e   : > { %v609_v42 = vpack.c.bf16 %v572_v40, %v570_v39  ;;  %v701_v44 = vadd.f32 %v2991_v17, %v700_v41  ;;  %v614_v40 = vpack.c.bf16 %v597_v37, %v595_v36  ;;  %v2361_v36 = vld [vmem:[%s3354_s3 + $0x88] sm:$0xff] }
 0x150   : > { %739 = vmatmul.bf16.gmra.mxu1 %v609_v42  ;;  %v774_v47 = vmax.f32 %v701_v44, 0.0 }
 0x153   : > { %v574_v43 = vpop.f32.mrf.mxu0 }
 0x154   : > { %v575_v51 = vadd.f32 %v2933_v20, %v574_v43 }
 0x155   : > { %v702_v45 = vpop.f32.mrf.mxu1 }
 0x156   : > { %v703_v46 = vadd.f32 %v2991_v17, %v702_v45 }
 0x158   : > { %v775_v48 = vmax.f32 %v703_v46, 0.0 }
 0x15a   : > { %v804_v49 = vpack.c.bf16 %v775_v48, %v774_v47 }
 0x15b   : > { %v576_v50 = vpop.f32.mrf.mxu0 }
 0x15c   : > { %v577_v52 = vadd.f32 %v2933_v20, %v576_v50  ;;  %903 = vmatmul.bf16.gmra.mxu2 %v804_v49 }
 0x15d   : > { %v705_v53 = vpop.f32.mrf.mxu1 }
 0x15e   : > { %v610_v54 = vpack.c.bf16 %v577_v52, %v575_v51  ;;  %v706_v56 = vadd.f32 %v2991_v17, %v705_v53 }
 0x160   : > { %744 = vmatmul.bf16.gmra.mxu1 %v610_v54  ;;  %v776_v60 = vmax.f32 %v706_v56, 0.0 }
 0x163   : > { %v579_v55 = vpop.f32.mrf.mxu0 }
 0x164   : > { %v580_v0 = vadd.f32 %v2933_v20, %v579_v55 }
 0x165   : > { %v707_v57 = vpop.f32.mrf.mxu1 }
 0x166   : > { %v708_v59 = vadd.f32 %v2991_v17, %v707_v57 }
 0x168   : > { %v777_v61 = vmax.f32 %v708_v59, 0.0 }
 0x16a   : > { %v805_v62 = vpack.c.bf16 %v777_v61, %v776_v60 }
 0x16b   : > { %v581_v63 = vpop.f32.mrf.mxu0 }
 0x16c   : > { %v582_v1 = vadd.f32 %v2933_v20, %v581_v63  ;;  %908 = vmatmul.bf16.gmra.mxu2 %v805_v62 }
 0x16d   : > { %v710_v2 = vpop.f32.mrf.mxu1 }
 0x16e   : > { %v611_v3 = vpack.c.bf16 %v582_v1, %v580_v0  ;;  %v711_v5 = vadd.f32 %v2991_v17, %v710_v2 }
 0x170   : > { %749 = vmatmul.bf16.vlgmr.msrb.gmra.mxu3 %v611_v3  ;;  %v778_v8 = vmax.f32 %v711_v5, 0.0 }
 0x171   : > { %1089 = vmatpush.bf16.msrb.mxu3 %v2367_v4 }
 0x175   : > { %v712_v6 = vpop.f32.mrf.mxu1  ;;  %1090 = vmatpush.bf16.msrb.mxu3 %v2366_v12 }
 0x176   : > { %v713_v7 = vadd.f32 %v2991_v17, %v712_v6 }
 0x178   : > { %v779_v9 = vmax.f32 %v713_v7, 0.0 }
 0x17a   : > { %v806_v13 = vpack.c.bf16 %v779_v9, %v778_v8  ;;  %v2375_v8 = vld [vmem:[%s3354_s3 + $0xf8] sm:$0xff] }
 0x17b   : > { %1293 = vmatpush.bf16.msrb.mxu0 %v2375_v8 }
 0x17c   : > { %913 = vmatmul.bf16.gmra.mxu2 %v806_v13  ;;  %v2365_v13 = vld [vmem:[%s3354_s3 + $0xa8] sm:$0xff] }
 0x17d   : > { %v715_v14 = vpop.f32.mrf.mxu1  ;;  %1091 = vmatpush.bf16.msrb.mxu3 %v2365_v13 }
 0x17e   : > { %v716_v18 = vadd.f32 %v2991_v17, %v715_v14 }
 0x180   : > { %754 = vmatmul.bf16.gmra.mxu3 %v612_v15  ;;  %v780_v22 = vmax.f32 %v716_v18, 0.0 }
 0x181   : > { %1092 = vmatpush.bf16.msrb.mxu3 %v2364_v16 }
 0x185   : > { %v717_v19 = vpop.f32.mrf.mxu1 }
 0x186   : > { %v718_v21 = vadd.f32 %v2991_v17, %v717_v19 }
 0x188   : > { %v781_v23 = vmax.f32 %v718_v21, 0.0 }
 0x18a   : > { %v807_v26 = vpack.c.bf16 %v781_v23, %v780_v22  ;;  %v2374_v23 = vld [vmem:[%s3354_s3 + $0xf0] sm:$0xff] }
 0x18b   : > { %1294 = vmatpush.bf16.msrb.mxu0 %v2374_v23 }
 0x18c   : > { %918 = vmatmul.bf16.gmra.mxu2 %v807_v26  ;;  %v2363_v26 = vld [vmem:[%s3354_s3 + $0x98] sm:$0xff] }
 0x18d   : > { %v720_v28 = vpop.f32.mrf.mxu1  ;;  %1093 = vmatpush.bf16.msrb.mxu3 %v2363_v26 }
 0x18e   : > { %v721_v30 = vadd.f32 %v2991_v17, %v720_v28 }
 0x190   : > { %759 = vmatmul.bf16.gmra.mxu3 %v613_v29  ;;  %v782_v34 = vmax.f32 %v721_v30, 0.0  ;;  %v2362_v30 = vld [vmem:[%s3354_s3 + $0x90] sm:$0xff] }
 0x191   : > { %1094 = vmatpush.bf16.msrb.mxu3 %v2362_v30  ;;  %v2383_v30 = vld [vmem:[%s3354_s3 + $0x138] sm:$0xff] }
 0x192   : > { %1497 = vmatpush.bf16.msrb.mxu1 %v2383_v30  ;;  %v2380_v30 = vld [vmem:[%s3354_s3 + $0x120] sm:$0xff] }
 0x195   : > { %v722_v31 = vpop.f32.mrf.mxu1  ;;  %1095 = vmatpush.bf16.msrb.mxu3 %v2361_v36 }
 0x196   : > { %v723_v32 = vadd.f32 %v2991_v17, %v722_v31 }
 0x198   : > { %v783_v35 = vmax.f32 %v723_v32, 0.0 }
 0x19a   : > { %v808_v38 = vpack.c.bf16 %v783_v35, %v782_v34 }
 0x19c   : > { %923 = vmatmul.bf16.gmra.mxu2 %v808_v38 }
 0x19d   : > { %v725_v39 = vpop.f32.mrf.mxu1 }
 0x19e   : > { %v726_v41 = vadd.f32 %v2991_v17, %v725_v39 }
 0x1a0   : > { %764 = vmatmul.bf16.gmra.mxu3 %v614_v40  ;;  %v784_v44 = vmax.f32 %v726_v41, 0.0  ;;  %v2373_v40 = vld [vmem:[%s3354_s3 + $0xe8] sm:$0xff]  ;;  %v2360_v41 = vld [vmem:[%s3354_s3 + $0x80] sm:$0xff] }
 0x1a1   : > { %1295 = vmatpush.bf16.msrb.mxu0 %v2373_v40  ;;  %1096 = vmatpush.bf16.msrb.mxu3 %v2360_v41 }
 0x1a5   : > { %v727_v42 = vpop.f32.mrf.mxu1 }
 0x1a6   : > { %v728_v43 = vadd.f32 %v2991_v17, %v727_v42 }
 0x1a8   : > { %v785_v45 = vmax.f32 %v728_v43, 0.0 }
 0x1aa   : > { %v809_v46 = vpack.c.bf16 %v785_v45, %v784_v44 }
 0x1ac   : > { %928 = vmatmul.bf16.gmra.mxu2 %v809_v46 }
 0x1ad   : > { %v730_v47 = vpop.f32.mrf.mxu1 }
 0x1ae   : > { %v731_v48 = vadd.f32 %v2991_v17, %v730_v47 }
 0x1b0   : > { %v786_v50 = vmax.f32 %v731_v48, 0.0 }
 0x1b5   : > { %v732_v49 = vpop.f32.mrf.mxu1 }
 0x1b6   : > { %v733_v20 = vadd.f32 %v2991_v17, %v732_v49 }
 0x1b8   : > { %v787_v51 = vmax.f32 %v733_v20, 0.0 }
 0x1ba   : > { %v810_v52 = vpack.c.bf16 %v787_v51, %v786_v50 }
 0x1bc   : > { %933 = vmatmul.bf16.gmra.mxu2 %v810_v52 }
 0x1bd   : > { %v735_v53 = vpop.f32.mrf.mxu1 }
 0x1be   : > { %v736_v54 = vadd.f32 %v2991_v17, %v735_v53 }
 0x1bf   : > { %v894_v24 = vpop.f32.mrf.mxu2 }
 0x1c0   : > { %v788_v57 = vmax.f32 %v736_v54, 0.0 }
 0x1c5   : > { %v737_v55 = vpop.f32.mrf.mxu1 }
 0x1c6   : > { %v738_v56 = vadd.f32 %v2991_v17, %v737_v55 }
 0x1c7   : > { %v896_v28 = vpop.f32.mrf.mxu2 }
 0x1c8   : > { %v789_v58 = vmax.f32 %v738_v56, 0.0  ;;  %v2372_v56 = vld [vmem:[%s3354_s3 + $0xe0] sm:$0xff] }
 0x1c9   : > { %1296 = vmatpush.bf16.msrb.mxu0 %v2372_v56 }
 0x1ca   : > { %v811_v59 = vpack.c.bf16 %v789_v58, %v788_v57  ;;  %v3075_v57 = vld [vmem:[#allocation5 + $0x1] ss:$0 sm:$0xff] }
 0x1cb   : > { %v897_v58 = vadd.f32 %v3075_v57, %v896_v28 }
 0x1cc   : > { %938 = vmatmul.bf16.gmra.mxu2 %v811_v59  ;;  %v895_v59 = vadd.f32 %v3075_v57, %v894_v24 }
 0x1cd   : > { %v740_v60 = vpop.f32.mrf.mxu1 }
 0x1ce   : > { %v741_v61 = vadd.f32 %v2991_v17, %v740_v60 }
 0x1cf   : > { %v899_v37 = vpop.f32.mrf.mxu2 }
 0x1d0   : > { %v790_v0 = vmax.f32 %v741_v61, 0.0  ;;  %v975_v61 = vmax.f32 %v897_v58, 0.0 }
 0x1d5   : > { %v742_v62 = vpop.f32.mrf.mxu1 }
 0x1d6   : > { %v743_v63 = vadd.f32 %v2991_v17, %v742_v62  ;;  %v974_v62 = vmax.f32 %v895_v59, 0.0 }
 0x1d7   : > { %v901_v44 = vpop.f32.mrf.mxu2 }
 0x1d8   : > { %v791_v1 = vmax.f32 %v743_v63, 0.0 }
 0x1da   : > { %v812_v2 = vpack.c.bf16 %v791_v1, %v790_v0  ;;  %v902_v0 = vadd.f32 %v3075_v57, %v901_v44  ;;  %v900_v1 = vadd.f32 %v3075_v57, %v899_v37 }
 0x1dc   : > { %943 = vmatmul.bf16.gmra.mxu2 %v812_v2  ;;  %v2371_v2 = vld [vmem:[%s3354_s3 + $0xd8] sm:$0xff]  ;;  %v976_v4 = vmax.f32 %v900_v1, 0.0 }
 0x1dd   : > { %v745_v3 = vpop.f32.mrf.mxu1  ;;  %1297 = vmatpush.bf16.msrb.mxu0 %v2371_v2 }
 0x1de   : > { %v746_v5 = vadd.f32 %v2991_v17, %v745_v3  ;;  %v977_v3 = vmax.f32 %v902_v0, 0.0 }
 0x1df   : > { %v904_v49 = vpop.f32.mrf.mxu2 }
 0x1e0   : > { %v792_v9 = vmax.f32 %v746_v5, 0.0 }
 0x1e5   : > { %v747_v6 = vpop.f32.mrf.mxu1 }
 0x1e6   : > { %v748_v7 = vadd.f32 %v2991_v17, %v747_v6  ;;  %v1007_v6 = vpack.c.bf16 %v977_v3, %v976_v4 }
 0x1e7   : > { %v906_v55 = vpop.f32.mrf.mxu2 }
 0x1e8   : > { %v793_v10 = vmax.f32 %v748_v7, 0.0  ;;  %v907_v7 = vadd.f32 %v3075_v57, %v906_v55 }
 0x1ea   : > { %v813_v11 = vpack.c.bf16 %v793_v10, %v792_v9  ;;  %v905_v9 = vadd.f32 %v3075_v57, %v904_v49  ;;  %v979_v10 = vmax.f32 %v907_v7, 0.0  ;;  %v2368_v49 = vld [vmem:[%s3354_s3 + $0xc0] sm:$0xff] }
 0x1ec   : > { %948 = vmatmul.bf16.gmra.mxu2 %v813_v11  ;;  %v978_v11 = vmax.f32 %v905_v9, 0.0 }
 0x1ee   : > { %v1008_v12 = vpack.c.bf16 %v979_v10, %v978_v11 }
 0x1ef   : > { %v909_v60 = vpop.f32.mrf.mxu2 }
 0x1f0   : > { %v910_v16 = vadd.f32 %v3075_v57, %v909_v60 }
 0x1f3   : > { %v750_v14 = vpop.f32.mrf.mxu3 }
 0x1f4   : > { %v751_v15 = vadd.f32 %v2991_v17, %v750_v14 }
 0x1f6   : > { %v794_v21 = vmax.f32 %v751_v15, 0.0  ;;  %v2370_v15 = vld [vmem:[%s3354_s3 + $0xd0] sm:$0xff] }
 0x1f7   : > { %v911_v63 = vpop.f32.mrf.mxu2  ;;  %1298 = vmatpush.bf16.msrb.mxu0 %v2370_v15 }
 0x1f8   : > { %v912_v14 = vadd.f32 %v3075_v57, %v911_v63 }
 0x1fb   : > { %v752_v18 = vpop.f32.mrf.mxu3 }
 0x1fc   : > { %v753_v19 = vadd.f32 %v2991_v17, %v752_v18  ;;  %v981_v18 = vmax.f32 %v912_v14, 0.0 }
 0x1fe   : > { %v795_v22 = vmax.f32 %v753_v19, 0.0 }
 0x1ff   : > { %v914_v5 = vpop.f32.mrf.mxu2 }
 0x200   : > { %v814_v25 = vpack.c.bf16 %v795_v22, %v794_v21  ;;  %v980_v21 = vmax.f32 %v910_v16, 0.0 }
 0x202   : > { %953 = vmatmul.bf16.vlgmr.msra.gmra.mxu3 %v814_v25  ;;  %v1009_v22 = vpack.c.bf16 %v981_v18, %v980_v21  ;;  %v915_v25 = vadd.f32 %v3075_v57, %v914_v5 }
 0x203   : > { %v755_v27 = vpop.f32.mrf.mxu3 }
 0x204   : > { %v756_v29 = vadd.f32 %v2991_v17, %v755_v27  ;;  %v982_v27 = vmax.f32 %v915_v25, 0.0 }
 0x206   : > { %v796_v33 = vmax.f32 %v756_v29, 0.0  ;;  %v2369_v29 = vld [vmem:[%s3354_s3 + $0xc8] sm:$0xff] }
 0x207   : > { %v916_v8 = vpop.f32.mrf.mxu2  ;;  %1299 = vmatpush.bf16.msrb.mxu0 %v2369_v29  ;;  %v3133_v29 = vld [vmem:[#allocation5 + $0x2] ss:$0 sm:$0xff] }
 0x208   : > { %v917_v24 = vadd.f32 %v3075_v57, %v916_v8  ;;  %v2381_v8 = vld [vmem:[%s3354_s3 + $0x128] sm:$0xff] }
 0x20a   : > { %v983_v26 = vmax.f32 %v917_v24, 0.0 }
 0x20b   : > { %v757_v31 = vpop.f32.mrf.mxu3  ;;  %1300 = vmatpush.bf16.msrb.mxu0 %v2368_v49 }
 0x20c   : > { %v758_v32 = vadd.f32 %v2991_v17, %v757_v31  ;;  %v1010_v28 = vpack.c.bf16 %v983_v26, %v982_v27 }
 0x20e   : > { %v797_v34 = vmax.f32 %v758_v32, 0.0 }
 0x20f   : > { %v919_v13 = vpop.f32.mrf.mxu2 }
 0x210   : > { %v815_v35 = vpack.c.bf16 %v797_v34, %v796_v33  ;;  %v920_v34 = vadd.f32 %v3075_v57, %v919_v13 }
 0x212   : > { %958 = vmatmul.bf16.gmra.mxu3 %v815_v35 }
 0x213   : > { %v760_v38 = vpop.f32.mrf.mxu3 }
 0x214   : > { %v761_v39 = vadd.f32 %v2991_v17, %v760_v38 }
 0x216   : > { %v798_v45 = vmax.f32 %v761_v39, 0.0  ;;  %v984_v39 = vmax.f32 %v920_v34, 0.0 }
 0x217   : > { %v921_v19 = vpop.f32.mrf.mxu2 }
 0x218   : > { %v922_v33 = vadd.f32 %v3075_v57, %v921_v19 }
 0x21a   : > { %v985_v36 = vmax.f32 %v922_v33, 0.0 }
 0x21b   : > { %v762_v42 = vpop.f32.mrf.mxu3 }
 0x21c   : > { %v763_v43 = vadd.f32 %v2991_v17, %v762_v42 }
 0x21e   : > { %v799_v46 = vmax.f32 %v763_v43, 0.0  ;;  %v1011_v43 = vpack.c.bf16 %v985_v36, %v984_v39 }
 0x21f   : > { %v924_v23 = vpop.f32.mrf.mxu2 }
 0x220   : > { %v816_v47 = vpack.c.bf16 %v799_v46, %v798_v45 }
 0x222   : > { %963 = vmatmul.bf16.gmra.mxu3 %v816_v47 }
 0x223   : > { %v765_v48 = vpop.f32.mrf.mxu3 }
 0x224   : > { %v766_v20 = vadd.f32 %v2991_v17, %v765_v48  ;;  %v2382_v48 = vld [vmem:[%s3354_s3 + $0x130] sm:$0xff] }
 0x225   : > { %1498 = vmatpush.bf16.msrb.mxu1 %v2382_v48 }
 0x226   : > { %v800_v52 = vmax.f32 %v766_v20, 0.0  ;;  %v925_v20 = vadd.f32 %v3075_v57, %v924_v23 }
 0x227   : > { %v926_v31 = vpop.f32.mrf.mxu2 }
 0x228   : > { %v927_v47 = vadd.f32 %v3075_v57, %v926_v31 }
 0x229   : > { %1499 = vmatpush.bf16.msrb.mxu1 %v2381_v8 }
 0x22b   : > { %v767_v50 = vpop.f32.mrf.mxu3 }
 0x22c   : > { %v768_v51 = vadd.f32 %v2991_v17, %v767_v50  ;;  %v1006_v17 = vpack.c.bf16 %v975_v61, %v974_v62  ;;  %v987_v50 = vmax.f32 %v927_v47, 0.0 }
 0x22d   : > { %1500 = vmatpush.bf16.msrb.mxu1 %v2380_v30 }
 0x22e   : > { %v801_v53 = vmax.f32 %v768_v51, 0.0 }
 0x22f   : > { %v929_v35 = vpop.f32.mrf.mxu2 }
 0x230   : > { %v817_v54 = vpack.c.bf16 %v801_v53, %v800_v52  ;;  %v986_v53 = vmax.f32 %v925_v20, 0.0  ;;  %v930_v63 = vadd.f32 %v3075_v57, %v929_v35 }
 0x232   : > { %968 = vmatmul.bf16.gmra.mxu3 %v817_v54  ;;  %v1012_v59 = vpack.c.bf16 %v987_v50, %v986_v53  ;;  %v988_v3 = vmax.f32 %v930_v63, 0.0 }
 0x237   : > { %v931_v45 = vpop.f32.mrf.mxu2 }
 0x238   : > { %v932_v62 = vadd.f32 %v3075_v57, %v931_v45 }
 0x23a   : > { %v989_v0 = vmax.f32 %v932_v62, 0.0 }
 0x23c   : > { %v1013_v7 = vpack.c.bf16 %v989_v0, %v988_v3 }
 0x23f   : > { %v934_v55 = vpop.f32.mrf.mxu2 }
 0x240   : > { %v935_v13 = vadd.f32 %v3075_v57, %v934_v55 }
 0x242   : > { %1097 = vmatmul.bf16.vlgmr.msrb.gmra.mxu3 %v1006_v17  ;;  %v990_v19 = vmax.f32 %v935_v13, 0.0 }
 0x247   : > { %v936_v17 = vpop.f32.mrf.mxu2 }
 0x24f   : > { %v939_v10 = vpop.f32.mrf.mxu2 }
 0x250   : > { %v940_v31 = vadd.f32 %v3075_v57, %v939_v10 }
 0x252   : > { %1102 = vmatmul.bf16.gmra.mxu3 %v1007_v6  ;;  %v992_v35 = vmax.f32 %v940_v31, 0.0 }
 0x257   : > { %v941_v16 = vpop.f32.mrf.mxu2 }
 0x25f   : > { %v944_v27 = vpop.f32.mrf.mxu2 }
 0x260   : > { %v945_v45 = vadd.f32 %v3075_v57, %v944_v27 }
 0x262   : > { %1107 = vmatmul.bf16.gmra.mxu3 %v1008_v12  ;;  %v937_v12 = vadd.f32 %v3075_v57, %v936_v17  ;;  %v994_v20 = vmax.f32 %v945_v45, 0.0  ;;  %v2389_v45 = vld [vmem:[#allocation7 + $0x28] sm:$0xff] }
 0x264   : > { %v991_v14 = vmax.f32 %v937_v12, 0.0 }
 0x266   : > { %v1014_v24 = vpack.c.bf16 %v991_v14, %v990_v19 }
 0x272   : > { %1112 = vmatmul.bf16.gmra.mxu3 %v1009_v22 }
 0x282   : > { %1117 = vmatmul.bf16.gmra.mxu3 %v1010_v28  ;;  %v942_v28 = vadd.f32 %v3075_v57, %v941_v16 }
 0x285   : > { %v954_v32 = vpop.f32.mrf.mxu3 }
 0x286   : > { %v955_v37 = vadd.f32 %v3075_v57, %v954_v32  ;;  %v993_v32 = vmax.f32 %v942_v28, 0.0 }
 0x288   : > { %v998_v41 = vmax.f32 %v955_v37, 0.0  ;;  %v1015_v39 = vpack.c.bf16 %v993_v32, %v992_v35 }
 0x28d   : > { %v956_v38 = vpop.f32.mrf.mxu3 }
 0x28e   : > { %v957_v40 = vadd.f32 %v3075_v57, %v956_v38 }
 0x290   : > { %v999_v42 = vmax.f32 %v957_v40, 0.0  ;;  %v946_v40 = vpop.f32.mrf.mxu2 }
 0x292   : > { %1122 = vmatmul.bf16.gmra.mxu3 %v1011_v43  ;;  %v3103_v44 = vpack.c.bf16 %v999_v42, %v998_v41  ;;  %v947_v43 = vadd.f32 %v3075_v57, %v946_v40 }
 0x294   : > { %v995_v47 = vmax.f32 %v947_v43, 0.0 }
 0x295   : > { %v959_v46 = vpop.f32.mrf.mxu3 }
 0x296   : > { %v960_v51 = vadd.f32 %v3075_v57, %v959_v46  ;;  %v1016_v53 = vpack.c.bf16 %v995_v47, %v994_v20 }
 0x298   : > { %v1000_v56 = vmax.f32 %v960_v51, 0.0  ;;  %v949_v46 = vpop.f32.mrf.mxu2 }
 0x29d   : > { %v961_v52 = vpop.f32.mrf.mxu3 }
 0x29e   : > { %v962_v54 = vadd.f32 %v3075_v57, %v961_v52 }
 0x2a0   : > { %v1001_v58 = vmax.f32 %v962_v54, 0.0  ;;  %v2379_v54 = vld [vmem:[%s3354_s3 + $0x118] sm:$0xff] }
 0x2a1   : > { %1501 = vmatpush.bf16.msrb.mxu1 %v2379_v54 }
 0x2a2   : > { %1127 = vmatmul.bf16.gmra.mxu3 %v1012_v59  ;;  %v3115_v60 = vpack.c.bf16 %v1001_v58, %v1000_v56  ;;  %v951_v56 = vpop.f32.mrf.mxu2 }
 0x2a3   : > { %v952_v59 = vadd.f32 %v3075_v57, %v951_v56  ;;  %v2388_v56 = vld [vmem:[#allocation7 + $0x20] sm:$0xff] }
 0x2a5   : > { %v964_v61 = vpop.f32.mrf.mxu3  ;;  %v997_v62 = vmax.f32 %v952_v59, 0.0 }
 0x2a6   : > { %v965_v1 = vadd.f32 %v3075_v57, %v964_v61  ;;  %v950_v61 = vadd.f32 %v3075_v57, %v949_v46 }
 0x2a8   : > { %v1002_v5 = vmax.f32 %v965_v1, 0.0  ;;  %v996_v0 = vmax.f32 %v950_v61, 0.0 }
 0x2ad   : > { %v966_v2 = vpop.f32.mrf.mxu3 }
 0x2ae   : > { %v967_v4 = vadd.f32 %v3075_v57, %v966_v2 }
 0x2b0   : > { %v1003_v6 = vmax.f32 %v967_v4, 0.0  ;;  %v1017_v4 = vpack.c.bf16 %v997_v62, %v996_v0 }
 0x2b2   : > { %1132 = vmatmul.bf16.gmra.mxu3 %v1013_v7  ;;  %v3124_v9 = vpack.c.bf16 %v1003_v6, %v1002_v5  ;;  %v2378_v7 = vld [vmem:[%s3354_s3 + $0x110] sm:$0xff] }
 0x2b3   : > { %1502 = vmatpush.bf16.msrb.mxu1 %v2378_v7 }
 0x2b5   : > { %v969_v11 = vpop.f32.mrf.mxu3 }
 0x2b6   : > { %v970_v15 = vadd.f32 %v3075_v57, %v969_v11 }
 0x2b8   : > { %v1004_v22 = vmax.f32 %v970_v15, 0.0  ;;  %v2391_v15 = vld [vmem:[#allocation7 + $0x38] sm:$0xff] }
 0x2b9   : > { %1702 = vmatpush.bf16.msrb.mxu2 %v2391_v15  ;;  %v2387_v15 = vld [vmem:[#allocation7 + $0x18] sm:$0xff] }
 0x2bd   : > { %v971_v18 = vpop.f32.mrf.mxu3 }
 0x2be   : > { %v972_v21 = vadd.f32 %v3075_v57, %v971_v18 }
 0x2c0   : > { %v1005_v23 = vmax.f32 %v972_v21, 0.0 }
 0x2c2   : > { %1137 = vmatmul.bf16.gmra.mxu3 %v1014_v24  ;;  %v3130_v25 = vpack.c.bf16 %v1005_v23, %v1004_v22  ;;  %v2377_v24 = vld [vmem:[%s3354_s3 + $0x108] sm:$0xff] }
 0x2c3   : > { %1503 = vmatpush.bf16.msrb.mxu1 %v2377_v24 }
 0x2c5   : > { %v1098_v26 = vpop.f32.mrf.mxu3 }
 0x2c6   : > { %v1099_v33 = vadd.f32 %v3133_v29, %v1098_v26 }
 0x2c8   : > { %v1178_v37 = vmax.f32 %v1099_v33, 0.0  ;;  %v2390_v33 = vld [vmem:[#allocation7 + $0x30] sm:$0xff] }
 0x2c9   : > { %1703 = vmatpush.bf16.msrb.mxu2 %v2390_v33 }
 0x2cd   : > { %v1100_v34 = vpop.f32.mrf.mxu3  ;;  %1704 = vmatpush.bf16.msrb.mxu2 %v2389_v45 }
 0x2ce   : > { %v1101_v36 = vadd.f32 %v3133_v29, %v1100_v34  ;;  %v2376_v34 = vld [vmem:[%s3354_s3 + $0x100] sm:$0xff] }
 0x2cf   : > { %1504 = vmatpush.bf16.msrb.mxu1 %v2376_v34 }
 0x2d0   : > { %v1179_v38 = vmax.f32 %v1101_v36, 0.0 }
 0x2d1   : > { %1705 = vmatpush.bf16.msrb.mxu2 %v2388_v56 }
 0x2d2   : > { %v1210_v41 = vpack.c.bf16 %v1179_v38, %v1178_v37  ;;  %1142 = vmatmul.bf16.gmra.mxu3 %v1015_v39 }
 0x2d4   : > { %1301 = vmatmul.bf16.vlgmr.msrb.gmra.mxu0 %v1210_v41 }
 0x2d5   : > { %v1103_v42 = vpop.f32.mrf.mxu3  ;;  %1706 = vmatpush.bf16.msrb.mxu2 %v2387_v15 }
 0x2d6   : > { %v1104_v48 = vadd.f32 %v3133_v29, %v1103_v42 }
 0x2d8   : > { %v1180_v51 = vmax.f32 %v1104_v48, 0.0 }
 0x2dd   : > { %v1105_v49 = vpop.f32.mrf.mxu3 }
 0x2de   : > { %v1106_v50 = vadd.f32 %v3133_v29, %v1105_v49 }
 0x2e0   : > { %v1181_v52 = vmax.f32 %v1106_v50, 0.0 }
 0x2e2   : > { %1147 = vmatmul.bf16.gmra.mxu3 %v1016_v53  ;;  %v1211_v55 = vpack.c.bf16 %v1181_v52, %v1180_v51 }
 0x2e4   : > { %1306 = vmatmul.bf16.gmra.mxu0 %v1211_v55  ;;  %v3177_v55 = vld [vmem:[#allocation5 + $0x3] ss:$0 sm:$0xff] }
 0x2e5   : > { %v1108_v58 = vpop.f32.mrf.mxu3 }
 0x2e6   : > { %v1109_v17 = vadd.f32 %v3133_v29, %v1108_v58 }
 0x2e8   : > { %v1182_v2 = vmax.f32 %v1109_v17, 0.0 }
 0x2ed   : > { %v1110_v63 = vpop.f32.mrf.mxu3 }
 0x2ee   : > { %v1111_v1 = vadd.f32 %v3133_v29, %v1110_v63 }
 0x2f0   : > { %v1183_v3 = vmax.f32 %v1111_v1, 0.0 }
 0x2f2   : > { %1152 = vmatmul.bf16.gmra.mxu3 %v1017_v4  ;;  %v1212_v5 = vpack.c.bf16 %v1183_v3, %v1182_v2 }
 0x2f4   : > { %1311 = vmatmul.bf16.gmra.mxu0 %v1212_v5 }
 0x2f5   : > { %v1113_v6 = vpop.f32.mrf.mxu3 }
 0x2f6   : > { %v1114_v57 = vadd.f32 %v3133_v29, %v1113_v6 }
 0x2f8   : > { %v1184_v11 = vmax.f32 %v1114_v57, 0.0 }
 0x2fd   : > { %v1115_v8 = vpop.f32.mrf.mxu3 }
 0x2fe   : > { %v1116_v10 = vadd.f32 %v3133_v29, %v1115_v8 }
 0x300   : > { %v1185_v12 = vmax.f32 %v1116_v10, 0.0 }
 0x302   : > { %1157 = vmatmul.bf16.gmra.mxu3 %v3103_v44  ;;  %v1213_v13 = vpack.c.bf16 %v1185_v12, %v1184_v11 }
 0x304   : > { %1316 = vmatmul.bf16.gmra.mxu0 %v1213_v13 }
 0x305   : > { %v1118_v14 = vpop.f32.mrf.mxu3 }
 0x306   : > { %v1119_v16 = vadd.f32 %v3133_v29, %v1118_v14 }
 0x308   : > { %v1186_v21 = vmax.f32 %v1119_v16, 0.0 }
 0x30d   : > { %v1120_v18 = vpop.f32.mrf.mxu3 }
 0x30e   : > { %v1121_v19 = vadd.f32 %v3133_v29, %v1120_v18 }
 0x310   : > { %v1187_v22 = vmax.f32 %v1121_v19, 0.0 }
 0x312   : > { %v1214_v23 = vpack.c.bf16 %v1187_v22, %v1186_v21  ;;  %1162 = vmatmul.bf16.gmra.mxu3 %v3115_v60 }
 0x314   : > { %1321 = vmatmul.bf16.gmra.mxu0 %v1214_v23 }
 0x315   : > { %v1123_v44 = vpop.f32.mrf.mxu3 }
 0x316   : > { %v1124_v26 = vadd.f32 %v3133_v29, %v1123_v44 }
 0x318   : > { %v1188_v30 = vmax.f32 %v1124_v26, 0.0 }
 0x31d   : > { %v1125_v27 = vpop.f32.mrf.mxu3 }
 0x31e   : > { %v1126_v28 = vadd.f32 %v3133_v29, %v1125_v27 }
 0x320   : > { %v1189_v31 = vmax.f32 %v1126_v28, 0.0 }
 0x322   : > { %v1215_v32 = vpack.c.bf16 %v1189_v31, %v1188_v30  ;;  %1167 = vmatmul.bf16.gmra.mxu3 %v3124_v9 }
 0x324   : > { %1326 = vmatmul.bf16.gmra.mxu0 %v1215_v32 }
 0x325   : > { %v1128_v60 = vpop.f32.mrf.mxu3 }
 0x326   : > { %v1129_v35 = vadd.f32 %v3133_v29, %v1128_v60 }
 0x328   : > { %v1190_v38 = vmax.f32 %v1129_v35, 0.0 }
 0x32d   : > { %v1130_v36 = vpop.f32.mrf.mxu3 }
 0x32e   : > { %v1131_v37 = vadd.f32 %v3133_v29, %v1130_v36 }
 0x330   : > { %v1191_v39 = vmax.f32 %v1131_v37, 0.0 }
 0x332   : > { %v1216_v40 = vpack.c.bf16 %v1191_v39, %v1190_v38  ;;  %1172 = vmatmul.bf16.gmra.mxu3 %v3130_v25  ;;  %v2386_v39 = vld [vmem:[#allocation7 + $0x10] sm:$0xff] }
 0x333   : > { %1707 = vmatpush.bf16.msrb.mxu2 %v2386_v39 }
 0x334   : > { %1331 = vmatmul.bf16.gmra.mxu0 %v1216_v40 }
 0x335   : > { %v1133_v9 = vpop.f32.mrf.mxu3 }
 0x336   : > { %v1134_v41 = vadd.f32 %v3133_v29, %v1133_v9 }
 0x338   : > { %v1192_v46 = vmax.f32 %v1134_v41, 0.0 }
 0x33d   : > { %v1135_v42 = vpop.f32.mrf.mxu3 }
 0x33e   : > { %v1136_v43 = vadd.f32 %v3133_v29, %v1135_v42 }
 0x340   : > { %v1193_v47 = vmax.f32 %v1136_v43, 0.0 }
 0x342   : > { %v1217_v48 = vpack.c.bf16 %v1193_v47, %v1192_v46 }
 0x344   : > { %1336 = vmatmul.bf16.gmra.mxu0 %v1217_v48 }
 0x345   : > { %v1138_v49 = vpop.f32.mrf.mxu3 }
 0x346   : > { %v1139_v20 = vadd.f32 %v3133_v29, %v1138_v49 }
 0x348   : > { %v1194_v25 = vmax.f32 %v1139_v20, 0.0 }
 0x34d   : > { %v1140_v50 = vpop.f32.mrf.mxu3 }
 0x34e   : > { %v1141_v51 = vadd.f32 %v3133_v29, %v1140_v50 }
 0x350   : > { %v1195_v52 = vmax.f32 %v1141_v51, 0.0 }
 0x351   : > { %v1302_v53 = vpop.f32.mrf.mxu0 }
 0x352   : > { %v1218_v54 = vpack.c.bf16 %v1195_v52, %v1194_v25  ;;  %v1303_v59 = vadd.f32 %v3177_v55, %v1302_v53 }
 0x354   : > { %1341 = vmatmul.bf16.gmra.mxu0 %v1218_v54  ;;  %v1382_v17 = vmax.f32 %v1303_v59, 0.0 }
 0x355   : > { %v1143_v58 = vpop.f32.mrf.mxu3 }
 0x356   : > { %v1144_v63 = vadd.f32 %v3133_v29, %v1143_v58 }
 0x358   : > { %v1196_v4 = vmax.f32 %v1144_v63, 0.0 }
 0x359   : > { %v1304_v61 = vpop.f32.mrf.mxu0 }
 0x35a   : > { %v1305_v62 = vadd.f32 %v3177_v55, %v1304_v61 }
 0x35c   : > { %v1383_v0 = vmax.f32 %v1305_v62, 0.0 }
 0x35d   : > { %v1145_v1 = vpop.f32.mrf.mxu3 }
 0x35e   : > { %v1414_v2 = vpack.c.bf16 %v1383_v0, %v1382_v17  ;;  %v1146_v3 = vadd.f32 %v3133_v29, %v1145_v1  ;;  %v2385_v0 = vld [vmem:[#allocation7 + $0x8] sm:$0xff] }
 0x35f   : > { %1708 = vmatpush.bf16.msrb.mxu2 %v2385_v0 }
 0x360   : > { %v1197_v5 = vmax.f32 %v1146_v3, 0.0  ;;  %1505 = vmatmul.bf16.vlgmr.msrb.gmra.mxu1 %v1414_v2 }
 0x361   : > { %v1307_v6 = vpop.f32.mrf.mxu0 }
 0x362   : > { %v1219_v7 = vpack.c.bf16 %v1197_v5, %v1196_v4  ;;  %v1308_v8 = vadd.f32 %v3177_v55, %v1307_v6 }
 0x364   : > { %1346 = vmatmul.bf16.gmra.mxu0 %v1219_v7  ;;  %v1384_v12 = vmax.f32 %v1308_v8, 0.0 }
 0x365   : > { %v1148_v57 = vpop.f32.mrf.mxu3 }
 0x366   : > { %v1149_v13 = vadd.f32 %v3133_v29, %v1148_v57 }
 0x368   : > { %v1198_v21 = vmax.f32 %v1149_v13, 0.0 }
 0x369   : > { %v1309_v10 = vpop.f32.mrf.mxu0 }
 0x36a   : > { %v1310_v11 = vadd.f32 %v3177_v55, %v1309_v10 }
 0x36c   : > { %v1385_v14 = vmax.f32 %v1310_v11, 0.0 }
 0x36d   : > { %v1150_v16 = vpop.f32.mrf.mxu3 }
 0x36e   : > { %v1151_v18 = vadd.f32 %v3133_v29, %v1150_v16  ;;  %v1415_v19 = vpack.c.bf16 %v1385_v14, %v1384_v12 }
 0x370   : > { %v1199_v22 = vmax.f32 %v1151_v18, 0.0  ;;  %1510 = vmatmul.bf16.gmra.mxu1 %v1415_v19 }
 0x371   : > { %v1312_v23 = vpop.f32.mrf.mxu0 }
 0x372   : > { %v1220_v24 = vpack.c.bf16 %v1199_v22, %v1198_v21  ;;  %v1313_v26 = vadd.f32 %v3177_v55, %v1312_v23  ;;  %v2384_v21 = vld [vmem:[#allocation7] sm:$0xff] }
 0x373   : > { %1709 = vmatpush.bf16.msrb.mxu2 %v2384_v21 }
 0x374   : > { %1351 = vmatmul.bf16.gmra.mxu0 %v1220_v24  ;;  %v1386_v30 = vmax.f32 %v1313_v26, 0.0 }
 0x375   : > { %v1153_v44 = vpop.f32.mrf.mxu3 }
 0x376   : > { %v1154_v31 = vadd.f32 %v3133_v29, %v1153_v44 }
 0x378   : > { %v1200_v35 = vmax.f32 %v1154_v31, 0.0 }
 0x379   : > { %v1314_v27 = vpop.f32.mrf.mxu0 }
 0x37a   : > { %v1315_v28 = vadd.f32 %v3177_v55, %v1314_v27 }
 0x37c   : > { %v1387_v32 = vmax.f32 %v1315_v28, 0.0 }
 0x37d   : > { %v1155_v33 = vpop.f32.mrf.mxu3 }
 0x37e   : > { %v1156_v60 = vadd.f32 %v3133_v29, %v1155_v33  ;;  %v1416_v34 = vpack.c.bf16 %v1387_v32, %v1386_v30 }
 0x380   : > { %v1201_v36 = vmax.f32 %v1156_v60, 0.0  ;;  %1515 = vmatmul.bf16.gmra.mxu1 %v1416_v34 }
 0x381   : > { %v1317_v37 = vpop.f32.mrf.mxu0 }
 0x382   : > { %v1221_v38 = vpack.c.bf16 %v1201_v36, %v1200_v35  ;;  %v1318_v9 = vadd.f32 %v3177_v55, %v1317_v37 }
 0x384   : > { %1356 = vmatmul.bf16.gmra.mxu0 %v1221_v38  ;;  %v1388_v43 = vmax.f32 %v1318_v9, 0.0 }
 0x385   : > { %v1158_v40 = vpop.f32.mrf.mxu3 }
 0x386   : > { %v1159_v45 = vadd.f32 %v3133_v29, %v1158_v40 }
 0x388   : > { %v1202_v20 = vmax.f32 %v1159_v45, 0.0 }
 0x389   : > { %v1319_v41 = vpop.f32.mrf.mxu0 }
 0x38a   : > { %v1320_v42 = vadd.f32 %v3177_v55, %v1319_v41 }
 0x38c   : > { %v1389_v46 = vmax.f32 %v1320_v42, 0.0 }
 0x38d   : > { %v1160_v47 = vpop.f32.mrf.mxu3 }
 0x38e   : > { %v1161_v48 = vadd.f32 %v3133_v29, %v1160_v47  ;;  %v1417_v49 = vpack.c.bf16 %v1389_v46, %v1388_v43 }
 0x390   : > { %v1203_v50 = vmax.f32 %v1161_v48, 0.0  ;;  %1520 = vmatmul.bf16.gmra.mxu1 %v1417_v49  ;;  %v3211_v49 = vld [vmem:[#allocation5 + $0x4] ss:$0 sm:$0xff] }
 0x391   : > { %v1322_v51 = vpop.f32.mrf.mxu0 }
 0x392   : > { %v1222_v25 = vpack.c.bf16 %v1203_v50, %v1202_v20  ;;  %v1323_v53 = vadd.f32 %v3177_v55, %v1322_v51 }
 0x394   : > { %1361 = vmatmul.bf16.gmra.mxu0 %v1222_v25  ;;  %v1390_v58 = vmax.f32 %v1323_v53, 0.0 }
 0x395   : > { %v1163_v52 = vpop.f32.mrf.mxu3 }
 0x396   : > { %v1164_v59 = vadd.f32 %v3133_v29, %v1163_v52 }
 0x398   : > { %v1204_v1 = vmax.f32 %v1164_v59, 0.0 }
 0x399   : > { %v1324_v54 = vpop.f32.mrf.mxu0 }
 0x39a   : > { %v1325_v56 = vadd.f32 %v3177_v55, %v1324_v54 }
 0x39c   : > { %v1391_v61 = vmax.f32 %v1325_v56, 0.0 }
 0x39d   : > { %v1165_v62 = vpop.f32.mrf.mxu3 }
 0x39e   : > { %v1418_v17 = vpack.c.bf16 %v1391_v61, %v1390_v58  ;;  %v1166_v63 = vadd.f32 %v3133_v29, %v1165_v62 }
 0x3a0   : > { %v1205_v2 = vmax.f32 %v1166_v63, 0.0  ;;  %1525 = vmatmul.bf16.gmra.mxu1 %v1418_v17 }
 0x3a1   : > { %v1327_v3 = vpop.f32.mrf.mxu0 }
 0x3a2   : > { %v1223_v4 = vpack.c.bf16 %v1205_v2, %v1204_v1  ;;  %v1328_v6 = vadd.f32 %v3177_v55, %v1327_v3 }
 0x3a4   : > { %1366 = vmatmul.bf16.gmra.mxu0 %v1223_v4  ;;  %v1392_v8 = vmax.f32 %v1328_v6, 0.0 }
 0x3a5   : > { %v1168_v5 = vpop.f32.mrf.mxu3 }
 0x3a6   : > { %v1169_v10 = vadd.f32 %v3133_v29, %v1168_v5 }
 0x3a8   : > { %v1206_v15 = vmax.f32 %v1169_v10, 0.0 }
 0x3a9   : > { %v1329_v7 = vpop.f32.mrf.mxu0 }
 0x3aa   : > { %v1330_v57 = vadd.f32 %v3177_v55, %v1329_v7 }
 0x3ac   : > { %v1393_v11 = vmax.f32 %v1330_v57, 0.0 }
 0x3ad   : > { %v1170_v12 = vpop.f32.mrf.mxu3 }
 0x3ae   : > { %v1419_v13 = vpack.c.bf16 %v1393_v11, %v1392_v8  ;;  %v1171_v14 = vadd.f32 %v3133_v29, %v1170_v12 }
 0x3b0   : > { %v1207_v16 = vmax.f32 %v1171_v14, 0.0  ;;  %1530 = vmatmul.bf16.gmra.mxu1 %v1419_v13 }
 0x3b1   : > { %v1332_v18 = vpop.f32.mrf.mxu0 }
 0x3b2   : > { %v1224_v19 = vpack.c.bf16 %v1207_v16, %v1206_v15  ;;  %v1333_v23 = vadd.f32 %v3177_v55, %v1332_v18 }
 0x3b4   : > { %1371 = vmatmul.bf16.gmra.mxu0 %v1224_v19  ;;  %v1394_v26 = vmax.f32 %v1333_v23, 0.0 }
 0x3b5   : > { %v1173_v22 = vpop.f32.mrf.mxu3 }
 0x3b6   : > { %v1174_v27 = vadd.f32 %v3133_v29, %v1173_v22 }
 0x3b8   : > { %v1208_v33 = vmax.f32 %v1174_v27, 0.0 }
 0x3b9   : > { %v1334_v24 = vpop.f32.mrf.mxu0 }
 0x3ba   : > { %v1335_v44 = vadd.f32 %v3177_v55, %v1334_v24 }
 0x3bc   : > { %v1395_v28 = vmax.f32 %v1335_v44, 0.0 }
 0x3bd   : > { %v1175_v30 = vpop.f32.mrf.mxu3 }
 0x3be   : > { %v1420_v31 = vpack.c.bf16 %v1395_v28, %v1394_v26  ;;  %v1176_v32 = vadd.f32 %v3133_v29, %v1175_v30 }
 0x3c0   : > { %v1209_v60 = vmax.f32 %v1176_v32, 0.0  ;;  %1535 = vmatmul.bf16.gmra.mxu1 %v1420_v31 }
 0x3c1   : > { %v1337_v34 = vpop.f32.mrf.mxu0 }
 0x3c2   : > { %v1225_v35 = vpack.c.bf16 %v1209_v60, %v1208_v33  ;;  %v1338_v36 = vadd.f32 %v3177_v55, %v1337_v34 }
 0x3c4   : > { %1376 = vmatmul.bf16.gmra.mxu0 %v1225_v35  ;;  %v1396_v39 = vmax.f32 %v1338_v36, 0.0 }
 0x3c9   : > { %v1339_v37 = vpop.f32.mrf.mxu0 }
 0x3ca   : > { %v1340_v38 = vadd.f32 %v3177_v55, %v1339_v37 }
 0x3cc   : > { %v1397_v40 = vmax.f32 %v1340_v38, 0.0 }
 0x3ce   : > { %v1421_v9 = vpack.c.bf16 %v1397_v40, %v1396_v39 }
 0x3d0   : > { %1540 = vmatmul.bf16.gmra.mxu1 %v1421_v9 }
 0x3d1   : > { %v1342_v41 = vpop.f32.mrf.mxu0 }
 0x3d2   : > { %v1343_v42 = vadd.f32 %v3177_v55, %v1342_v41 }
 0x3d4   : > { %v1398_v45 = vmax.f32 %v1343_v42, 0.0 }
 0x3d9   : > { %v1344_v43 = vpop.f32.mrf.mxu0 }
 0x3da   : > { %v1345_v29 = vadd.f32 %v3177_v55, %v1344_v43 }
 0x3dc   : > { %v1399_v46 = vmax.f32 %v1345_v29, 0.0 }
 0x3dd   : > { %v1506_v47 = vpop.f32.mrf.mxu1 }
 0x3de   : > { %v1422_v48 = vpack.c.bf16 %v1399_v46, %v1398_v45  ;;  %v1507_v50 = vadd.f32 %v3211_v49, %v1506_v47 }
 0x3e0   : > { %1545 = vmatmul.bf16.gmra.mxu1 %v1422_v48  ;;  %v1586_v52 = vmax.f32 %v1507_v50, 0.0 }
 0x3e1   : > { %v1347_v20 = vpop.f32.mrf.mxu0 }
 0x3e2   : > { %v1348_v53 = vadd.f32 %v3177_v55, %v1347_v20 }
 0x3e4   : > { %v1400_v61 = vmax.f32 %v1348_v53, 0.0 }
 0x3e5   : > { %v1508_v51 = vpop.f32.mrf.mxu1 }
 0x3e6   : > { %v1509_v25 = vadd.f32 %v3211_v49, %v1508_v51 }
 0x3e8   : > { %v1587_v54 = vmax.f32 %v1509_v25, 0.0 }
 0x3e9   : > { %v1349_v56 = vpop.f32.mrf.mxu0 }
 0x3ea   : > { %v1618_v58 = vpack.c.bf16 %v1587_v54, %v1586_v52  ;;  %v1350_v59 = vadd.f32 %v3177_v55, %v1349_v56 }
 0x3ec   : > { %v1401_v62 = vmax.f32 %v1350_v59, 0.0  ;;  %1710 = vmatmul.bf16.vlgmr.msrb.gmra.mxu2 %v1618_v58 }
 0x3ed   : > { %v1511_v17 = vpop.f32.mrf.mxu1 }
 0x3ee   : > { %v1423_v63 = vpack.c.bf16 %v1401_v62, %v1400_v61  ;;  %v1512_v1 = vadd.f32 %v3211_v49, %v1511_v17 }
 0x3f0   : > { %1550 = vmatmul.bf16.gmra.mxu1 %v1423_v63  ;;  %v1588_v4 = vmax.f32 %v1512_v1, 0.0 }
 0x3f1   : > { %v1352_v0 = vpop.f32.mrf.mxu0 }
 0x3f2   : > { %v1353_v5 = vadd.f32 %v3177_v55, %v1352_v0 }
 0x3f4   : > { %v1402_v10 = vmax.f32 %v1353_v5, 0.0 }
 0x3f5   : > { %v1513_v2 = vpop.f32.mrf.mxu1 }
 0x3f6   : > { %v1514_v3 = vadd.f32 %v3211_v49, %v1513_v2 }
 0x3f8   : > { %v1589_v6 = vmax.f32 %v1514_v3, 0.0 }
 0x3f9   : > { %v1354_v7 = vpop.f32.mrf.mxu0 }
 0x3fa   : > { %v1355_v57 = vadd.f32 %v3177_v55, %v1354_v7  ;;  %v1619_v8 = vpack.c.bf16 %v1589_v6, %v1588_v4 }
 0x3fc   : > { %v1403_v11 = vmax.f32 %v1355_v57, 0.0  ;;  %1715 = vmatmul.bf16.gmra.mxu2 %v1619_v8 }
 0x3fd   : > { %v1516_v12 = vpop.f32.mrf.mxu1 }
 0x3fe   : > { %v1424_v13 = vpack.c.bf16 %v1403_v11, %v1402_v10  ;;  %v1517_v15 = vadd.f32 %v3211_v49, %v1516_v12 }
 0x400   : > { %1555 = vmatmul.bf16.gmra.mxu1 %v1424_v13  ;;  %v1590_v19 = vmax.f32 %v1517_v15, 0.0 }
 0x401   : > { %v1357_v14 = vpop.f32.mrf.mxu0 }
 0x402   : > { %v1358_v21 = vadd.f32 %v3177_v55, %v1357_v14 }
 0x404   : > { %v1404_v26 = vmax.f32 %v1358_v21, 0.0 }
 0x405   : > { %v1518_v16 = vpop.f32.mrf.mxu1 }
 0x406   : > { %v1519_v18 = vadd.f32 %v3211_v49, %v1518_v16 }
 0x408   : > { %v1591_v22 = vmax.f32 %v1519_v18, 0.0 }
 0x409   : > { %v1359_v23 = vpop.f32.mrf.mxu0 }
 0x40a   : > { %v1360_v24 = vadd.f32 %v3177_v55, %v1359_v23  ;;  %v1620_v44 = vpack.c.bf16 %v1591_v22, %v1590_v19 }
 0x40c   : > { %v1405_v27 = vmax.f32 %v1360_v24, 0.0  ;;  %1720 = vmatmul.bf16.gmra.mxu2 %v1620_v44 }
 0x40d   : > { %v1521_v28 = vpop.f32.mrf.mxu1 }
 0x40e   : > { %v1425_v30 = vpack.c.bf16 %v1405_v27, %v1404_v26  ;;  %v1522_v32 = vadd.f32 %v3211_v49, %v1521_v28 }
 0x410   : > { %1560 = vmatmul.bf16.gmra.mxu1 %v1425_v30  ;;  %v1592_v34 = vmax.f32 %v1522_v32, 0.0 }
 0x411   : > { %v1362_v31 = vpop.f32.mrf.mxu0 }
 0x412   : > { %v1363_v35 = vadd.f32 %v3177_v55, %v1362_v31 }
 0x414   : > { %v1406_v40 = vmax.f32 %v1363_v35, 0.0 }
 0x415   : > { %v1523_v33 = vpop.f32.mrf.mxu1 }
 0x416   : > { %v1524_v60 = vadd.f32 %v3211_v49, %v1523_v33 }
 0x418   : > { %v1593_v36 = vmax.f32 %v1524_v60, 0.0 }
 0x419   : > { %v1364_v37 = vpop.f32.mrf.mxu0 }
 0x41a   : > { %v1365_v38 = vadd.f32 %v3177_v55, %v1364_v37  ;;  %v1621_v39 = vpack.c.bf16 %v1593_v36, %v1592_v34 }
 0x41c   : > { %v1407_v9 = vmax.f32 %v1365_v38, 0.0  ;;  %1725 = vmatmul.bf16.gmra.mxu2 %v1621_v39  ;;  %v3250_v39 = vld [vmem:[%s3357_s6] ss:$0 sm:$0xff] }
 0x41d   : > { %v1526_v41 = vpop.f32.mrf.mxu1 }
 0x41e   : > { %v1426_v42 = vpack.c.bf16 %v1407_v9, %v1406_v40  ;;  %v1527_v29 = vadd.f32 %v3211_v49, %v1526_v41 }
 0x420   : > { %1565 = vmatmul.bf16.gmra.mxu1 %v1426_v42  ;;  %v1594_v47 = vmax.f32 %v1527_v29, 0.0 }
 0x421   : > { %v1367_v43 = vpop.f32.mrf.mxu0 }
 0x422   : > { %v1368_v48 = vadd.f32 %v3177_v55, %v1367_v43 }
 0x424   : > { %v1408_v52 = vmax.f32 %v1368_v48, 0.0 }
 0x425   : > { %v1528_v45 = vpop.f32.mrf.mxu1 }
 0x426   : > { %v1529_v46 = vadd.f32 %v3211_v49, %v1528_v45 }
 0x428   : > { %v1595_v20 = vmax.f32 %v1529_v46, 0.0 }
 0x429   : > { %v1369_v50 = vpop.f32.mrf.mxu0 }
 0x42a   : > { %v1622_v51 = vpack.c.bf16 %v1595_v20, %v1594_v47  ;;  %v1370_v25 = vadd.f32 %v3177_v55, %v1369_v50 }
 0x42c   : > { %v1409_v53 = vmax.f32 %v1370_v25, 0.0  ;;  %1730 = vmatmul.bf16.gmra.mxu2 %v1622_v51 }
 0x42d   : > { %v1531_v54 = vpop.f32.mrf.mxu1 }
 0x42e   : > { %v1427_v56 = vpack.c.bf16 %v1409_v53, %v1408_v52  ;;  %v1532_v59 = vadd.f32 %v3211_v49, %v1531_v54 }
 0x430   : > { %1570 = vmatmul.bf16.gmra.mxu1 %v1427_v56  ;;  %v1596_v17 = vmax.f32 %v1532_v59, 0.0 }
 0x431   : > { %v1372_v58 = vpop.f32.mrf.mxu0 }
 0x432   : > { %v1373_v63 = vadd.f32 %v3177_v55, %v1372_v58 }
 0x434   : > { %v1410_v4 = vmax.f32 %v1373_v63, 0.0 }
 0x435   : > { %v1533_v61 = vpop.f32.mrf.mxu1 }
 0x436   : > { %v1534_v62 = vadd.f32 %v3211_v49, %v1533_v61 }
 0x438   : > { %v1597_v0 = vmax.f32 %v1534_v62, 0.0 }
 0x439   : > { %v1374_v1 = vpop.f32.mrf.mxu0 }
 0x43a   : > { %v1623_v2 = vpack.c.bf16 %v1597_v0, %v1596_v17  ;;  %v1375_v3 = vadd.f32 %v3177_v55, %v1374_v1 }
 0x43c   : > { %v1411_v5 = vmax.f32 %v1375_v3, 0.0  ;;  %1735 = vmatmul.bf16.gmra.mxu2 %v1623_v2 }
 0x43d   : > { %v1536_v6 = vpop.f32.mrf.mxu1 }
 0x43e   : > { %v1428_v7 = vpack.c.bf16 %v1411_v5, %v1410_v4  ;;  %v1537_v8 = vadd.f32 %v3211_v49, %v1536_v6 }
 0x440   : > { %1575 = vmatmul.bf16.gmra.mxu1 %v1428_v7  ;;  %v1598_v12 = vmax.f32 %v1537_v8, 0.0 }
 0x441   : > { %v1377_v57 = vpop.f32.mrf.mxu0 }
 0x442   : > { %v1378_v13 = vadd.f32 %v3177_v55, %v1377_v57 }
 0x444   : > { %v1412_v19 = vmax.f32 %v1378_v13, 0.0 }
 0x445   : > { %v1538_v10 = vpop.f32.mrf.mxu1 }
 0x446   : > { %v1539_v11 = vadd.f32 %v3211_v49, %v1538_v10 }
 0x448   : > { %v1599_v14 = vmax.f32 %v1539_v11, 0.0 }
 0x449   : > { %v1379_v15 = vpop.f32.mrf.mxu0 }
 0x44a   : > { %v1624_v16 = vpack.c.bf16 %v1599_v14, %v1598_v12  ;;  %v1380_v18 = vadd.f32 %v3177_v55, %v1379_v15 }
 0x44c   : > { %v1413_v21 = vmax.f32 %v1380_v18, 0.0  ;;  %1740 = vmatmul.bf16.gmra.mxu2 %v1624_v16 }
 0x44d   : > { %v1541_v22 = vpop.f32.mrf.mxu1 }
 0x44e   : > { %v1429_v23 = vpack.c.bf16 %v1413_v21, %v1412_v19  ;;  %v1542_v24 = vadd.f32 %v3211_v49, %v1541_v22 }
 0x450   : > { %1580 = vmatmul.bf16.gmra.mxu1 %v1429_v23  ;;  %v1600_v27 = vmax.f32 %v1542_v24, 0.0 }
 0x455   : > { %v1543_v44 = vpop.f32.mrf.mxu1 }
 0x456   : > { %v1544_v26 = vadd.f32 %v3211_v49, %v1543_v44 }
 0x458   : > { %v1601_v28 = vmax.f32 %v1544_v26, 0.0 }
 0x45a   : > { %v1625_v30 = vpack.c.bf16 %v1601_v28, %v1600_v27 }
 0x45c   : > { %1745 = vmatmul.bf16.gmra.mxu2 %v1625_v30 }
 0x45d   : > { %v1546_v31 = vpop.f32.mrf.mxu1 }
 0x45e   : > { %v1547_v55 = vadd.f32 %v3211_v49, %v1546_v31 }
 0x460   : > { %v1602_v60 = vmax.f32 %v1547_v55, 0.0 }
 0x465   : > { %v1548_v32 = vpop.f32.mrf.mxu1 }
 0x466   : > { %v1549_v33 = vadd.f32 %v3211_v49, %v1548_v32 }
 0x468   : > { %v1603_v34 = vmax.f32 %v1549_v33, 0.0 }
 0x46a   : > { %v1626_v35 = vpack.c.bf16 %v1603_v34, %v1602_v60 }
 0x46c   : > { %1750 = vmatmul.bf16.gmra.mxu2 %v1626_v35 }
 0x46d   : > { %v1551_v36 = vpop.f32.mrf.mxu1 }
 0x46e   : > { %v1552_v38 = vadd.f32 %v3211_v49, %v1551_v36 }
 0x46f   : > { %v1711_v37 = vpop.f32.mrf.mxu2 }
 0x470   : > { %v1604_v42 = vmax.f32 %v1552_v38, 0.0  ;;  %v1712_v43 = vadd.f32 %v3250_v39, %v1711_v37 }
 0x475   : > { %v1553_v40 = vpop.f32.mrf.mxu1 }
 0x476   : > { %v1554_v9 = vadd.f32 %v3211_v49, %v1553_v40 }
 0x477   : > { %v1713_v41 = vpop.f32.mrf.mxu2 }
 0x478   : > { %v1605_v29 = vmax.f32 %v1554_v9, 0.0  ;;  %v1714_v45 = vadd.f32 %v3250_v39, %v1713_v41 }
 0x47a   : > { %v1627_v46 = vpack.c.bf16 %v1605_v29, %v1604_v42  ;;  %v2396_v47 = vpack.c.bf16 %v1714_v45, %v1712_v43 }
 0x47c   : > { %2397 = vst [vmem:[%s3257_s9] sm:$0xff] %v2396_v47   ;;  %1755 = vmatmul.bf16.gmra.mxu2 %v1627_v46 }
 0x47d   : > { %v1556_v48 = vpop.f32.mrf.mxu1 }
 0x47e   : > { %v1557_v50 = vadd.f32 %v3211_v49, %v1556_v48 }
 0x47f   : > { %v1716_v20 = vpop.f32.mrf.mxu2 }
 0x480   : > { %v1606_v53 = vmax.f32 %v1557_v50, 0.0  ;;  %v1717_v54 = vadd.f32 %v3250_v39, %v1716_v20 }
 0x485   : > { %v1558_v51 = vpop.f32.mrf.mxu1 }
 0x486   : > { %v1559_v25 = vadd.f32 %v3211_v49, %v1558_v51 }
 0x487   : > { %v1718_v52 = vpop.f32.mrf.mxu2 }
 0x488   : > { %v1607_v56 = vmax.f32 %v1559_v25, 0.0  ;;  %v1719_v58 = vadd.f32 %v3250_v39, %v1718_v52 }
 0x48a   : > { %v1628_v59 = vpack.c.bf16 %v1607_v56, %v1606_v53  ;;  %v2401_v61 = vpack.c.bf16 %v1719_v58, %v1717_v54 }
 0x48c   : > { %2473 = vst [vmem:[%s3257_s9 + $0x8] sm:$0xff] %v2401_v61   ;;  %1760 = vmatmul.bf16.gmra.mxu2 %v1628_v59 }
 0x48d   : > { %v1561_v62 = vpop.f32.mrf.mxu1 }
 0x48e   : > { %v1562_v63 = vadd.f32 %v3211_v49, %v1561_v62 }
 0x48f   : > { %v1721_v17 = vpop.f32.mrf.mxu2 }
 0x490   : > { %v1608_v3 = vmax.f32 %v1562_v63, 0.0  ;;  %v1722_v4 = vadd.f32 %v3250_v39, %v1721_v17 }
 0x495   : > { %v1563_v0 = vpop.f32.mrf.mxu1 }
 0x496   : > { %v1564_v1 = vadd.f32 %v3211_v49, %v1563_v0 }
 0x497   : > { %v1723_v2 = vpop.f32.mrf.mxu2 }
 0x498   : > { %v1609_v5 = vmax.f32 %v1564_v1, 0.0  ;;  %v1724_v6 = vadd.f32 %v3250_v39, %v1723_v2 }
 0x49a   : > { %v1629_v7 = vpack.c.bf16 %v1609_v5, %v1608_v3  ;;  %v2406_v57 = vpack.c.bf16 %v1724_v6, %v1722_v4 }
 0x49c   : > { %2474 = vst [vmem:[%s3257_s9 + $0x10] sm:$0xff] %v2406_v57   ;;  %1765 = vmatmul.bf16.gmra.mxu2 %v1629_v7 }
 0x49d   : > { %v1566_v8 = vpop.f32.mrf.mxu1 }
 0x49e   : > { %v1567_v11 = vadd.f32 %v3211_v49, %v1566_v8 }
 0x49f   : > { %v1726_v10 = vpop.f32.mrf.mxu2 }
 0x4a0   : > { %v1610_v15 = vmax.f32 %v1567_v11, 0.0  ;;  %v1727_v16 = vadd.f32 %v3250_v39, %v1726_v10 }
 0x4a5   : > { %v1568_v12 = vpop.f32.mrf.mxu1 }
 0x4a6   : > { %v1569_v13 = vadd.f32 %v3211_v49, %v1568_v12 }
 0x4a7   : > { %v1728_v14 = vpop.f32.mrf.mxu2 }
 0x4a8   : > { %v1611_v18 = vmax.f32 %v1569_v13, 0.0  ;;  %v1729_v19 = vadd.f32 %v3250_v39, %v1728_v14 }
 0x4aa   : > { %v1630_v21 = vpack.c.bf16 %v1611_v18, %v1610_v15  ;;  %v2411_v22 = vpack.c.bf16 %v1729_v19, %v1727_v16 }
 0x4ac   : > { %2475 = vst [vmem:[%s3257_s9 + $0x18] sm:$0xff] %v2411_v22   ;;  %1770 = vmatmul.bf16.gmra.mxu2 %v1630_v21 }
 0x4ad   : > { %v1571_v23 = vpop.f32.mrf.mxu1 }
 0x4ae   : > { %v1572_v44 = vadd.f32 %v3211_v49, %v1571_v23 }
 0x4af   : > { %v1731_v24 = vpop.f32.mrf.mxu2 }
 0x4b0   : > { %v1612_v30 = vmax.f32 %v1572_v44, 0.0  ;;  %v1732_v31 = vadd.f32 %v3250_v39, %v1731_v24 }
 0x4b5   : > { %v1573_v26 = vpop.f32.mrf.mxu1 }
 0x4b6   : > { %v1574_v27 = vadd.f32 %v3211_v49, %v1573_v26 }
 0x4b7   : > { %v1733_v28 = vpop.f32.mrf.mxu2 }
 0x4b8   : > { %v1613_v55 = vmax.f32 %v1574_v27, 0.0  ;;  %v1734_v32 = vadd.f32 %v3250_v39, %v1733_v28 }
 0x4ba   : > { %v1631_v33 = vpack.c.bf16 %v1613_v55, %v1612_v30  ;;  %v2416_v60 = vpack.c.bf16 %v1734_v32, %v1732_v31 }
 0x4bc   : > { %2476 = vst [vmem:[%s3257_s9 + $0x20] sm:$0xff] %v2416_v60   ;;  %1775 = vmatmul.bf16.gmra.mxu2 %v1631_v33 }
 0x4bd   : > { %v1576_v34 = vpop.f32.mrf.mxu1 }
 0x4be   : > { %v1577_v36 = vadd.f32 %v3211_v49, %v1576_v34 }
 0x4bf   : > { %v1736_v35 = vpop.f32.mrf.mxu2 }
 0x4c0   : > { %v1614_v9 = vmax.f32 %v1577_v36, 0.0  ;;  %v1737_v41 = vadd.f32 %v3250_v39, %v1736_v35 }
 0x4c5   : > { %v1578_v37 = vpop.f32.mrf.mxu1 }
 0x4c6   : > { %v1579_v38 = vadd.f32 %v3211_v49, %v1578_v37 }
 0x4c7   : > { %v1738_v40 = vpop.f32.mrf.mxu2 }
 0x4c8   : > { %v1615_v42 = vmax.f32 %v1579_v38, 0.0  ;;  %v1739_v43 = vadd.f32 %v3250_v39, %v1738_v40 }
 0x4ca   : > { %v1632_v29 = vpack.c.bf16 %v1615_v42, %v1614_v9  ;;  %v2421_v45 = vpack.c.bf16 %v1739_v43, %v1737_v41 }
 0x4cc   : > { %2477 = vst [vmem:[%s3257_s9 + $0x28] sm:$0xff] %v2421_v45   ;;  %1780 = vmatmul.bf16.gmra.mxu2 %v1632_v29 }
 0x4cd   : > { %v1581_v46 = vpop.f32.mrf.mxu1 }
 0x4ce   : > { %v1582_v48 = vadd.f32 %v3211_v49, %v1581_v46 }
 0x4cf   : > { %v1741_v47 = vpop.f32.mrf.mxu2 }
 0x4d0   : > { %v1616_v25 = vmax.f32 %v1582_v48, 0.0  ;;  %v1742_v52 = vadd.f32 %v3250_v39, %v1741_v47 }
 0x4d5   : > { %v1583_v20 = vpop.f32.mrf.mxu1 }
 0x4d6   : > { %v1584_v50 = vadd.f32 %v3211_v49, %v1583_v20 }
 0x4d7   : > { %v1743_v51 = vpop.f32.mrf.mxu2 }
 0x4d8   : > { %v1617_v53 = vmax.f32 %v1584_v50, 0.0  ;;  %v1744_v54 = vadd.f32 %v3250_v39, %v1743_v51 }
 0x4da   : > { %v1633_v56 = vpack.c.bf16 %v1617_v53, %v1616_v25  ;;  %v2426_v58 = vpack.c.bf16 %v1744_v54, %v1742_v52 }
 0x4dc   : > { %2478 = vst [vmem:[%s3257_s9 + $0x30] sm:$0xff] %v2426_v58   ;;  %1785 = vmatmul.bf16.gmra.mxu2 %v1633_v56 }
 0x4df   : > { %v1746_v59 = vpop.f32.mrf.mxu2 }
 0x4e0   : > { %v1747_v62 = vadd.f32 %v3250_v39, %v1746_v59 }
 0x4e7   : > { %v1748_v61 = vpop.f32.mrf.mxu2 }
 0x4e8   : > { %v1749_v17 = vadd.f32 %v3250_v39, %v1748_v61 }
 0x4ea   : > { %v2431_v49 = vpack.c.bf16 %v1749_v17, %v1747_v62 }
 0x4ec   : > { %2479 = vst [vmem:[%s3257_s9 + $0x38] sm:$0xff] %v2431_v49  }
 0x4ef   : > { %v1751_v63 = vpop.f32.mrf.mxu2 }
 0x4f0   : > { %v1752_v1 = vadd.f32 %v3250_v39, %v1751_v63 }
 0x4f7   : > { %v1753_v0 = vpop.f32.mrf.mxu2 }
 0x4f8   : > { %v1754_v2 = vadd.f32 %v3250_v39, %v1753_v0 }
 0x4fa   : > { %v2436_v3 = vpack.c.bf16 %v1754_v2, %v1752_v1 }
 0x4fc   : > { %2480 = vst [vmem:[%s3257_s9 + $0x40] sm:$0xff] %v2436_v3  }
 0x4ff   : > { %v1756_v4 = vpop.f32.mrf.mxu2 }
 0x500   : > { %v1757_v6 = vadd.f32 %v3250_v39, %v1756_v4 }
 0x507   : > { %v1758_v5 = vpop.f32.mrf.mxu2 }
 0x508   : > { %v1759_v7 = vadd.f32 %v3250_v39, %v1758_v5 }
 0x50a   : > { %v2441_v57 = vpack.c.bf16 %v1759_v7, %v1757_v6 }
 0x50c   : > { %2481 = vst [vmem:[%s3257_s9 + $0x48] sm:$0xff] %v2441_v57  }
 0x50f   : > { %v1761_v8 = vpop.f32.mrf.mxu2 }
 0x510   : > { %v1762_v11 = vadd.f32 %v3250_v39, %v1761_v8 }
 0x517   : > { %v1763_v10 = vpop.f32.mrf.mxu2 }
 0x518   : > { %v1764_v12 = vadd.f32 %v3250_v39, %v1763_v10 }
 0x51a   : > { %v2446_v13 = vpack.c.bf16 %v1764_v12, %v1762_v11 }
 0x51c   : > { %2482 = vst [vmem:[%s3257_s9 + $0x50] sm:$0xff] %v2446_v13  }
 0x51f   : > { %v1766_v14 = vpop.f32.mrf.mxu2 }
 0x520   : > { %v1767_v16 = vadd.f32 %v3250_v39, %v1766_v14 }
 0x527   : > { %v1768_v15 = vpop.f32.mrf.mxu2 }
 0x528   : > { %v1769_v18 = vadd.f32 %v3250_v39, %v1768_v15 }
 0x52a   : > { %v2451_v19 = vpack.c.bf16 %v1769_v18, %v1767_v16 }
 0x52c   : > { %2483 = vst [vmem:[%s3257_s9 + $0x58] sm:$0xff] %v2451_v19  }
 0x52f   : > { %v1771_v21 = vpop.f32.mrf.mxu2 }
 0x530   : > { %v1772_v23 = vadd.f32 %v3250_v39, %v1771_v21 }
 0x537   : > { %v1773_v22 = vpop.f32.mrf.mxu2 }
 0x538   : > { %v1774_v24 = vadd.f32 %v3250_v39, %v1773_v22 }
 0x53a   : > { %v2456_v44 = vpack.c.bf16 %v1774_v24, %v1772_v23 }
 0x53c   : > { %2484 = vst [vmem:[%s3257_s9 + $0x60] sm:$0xff] %v2456_v44  }
 0x53f   : > { %v1776_v26 = vpop.f32.mrf.mxu2 }
 0x540   : > { %v1777_v28 = vadd.f32 %v3250_v39, %v1776_v26 }
 0x547   : > { %v1778_v27 = vpop.f32.mrf.mxu2 }
 0x548   : > { %v1779_v30 = vadd.f32 %v3250_v39, %v1778_v27 }
 0x54a   : > { %v2461_v31 = vpack.c.bf16 %v1779_v30, %v1777_v28 }
 0x54c   : > { %2485 = vst [vmem:[%s3257_s9 + $0x68] sm:$0xff] %v2461_v31  }
 0x54f   : > { %v1781_v55 = vpop.f32.mrf.mxu2 }
 0x550   : > { %v1782_v33 = vadd.f32 %v3250_v39, %v1781_v55 }
 0x557   : > { %v1783_v32 = vpop.f32.mrf.mxu2 }
 0x558   : > { %v1784_v60 = vadd.f32 %v3250_v39, %v1783_v32 }
 0x55a   : > { %v2466_v34 = vpack.c.bf16 %v1784_v60, %v1782_v33 }
 0x55c   : > { %2486 = vst [vmem:[%s3257_s9 + $0x70] sm:$0xff] %v2466_v34  }
 0x55f   : > { %v1786_v35 = vpop.f32.mrf.mxu2 }
 0x560   : > { %v1787_v37 = vadd.f32 %v3250_v39, %v1786_v35 }
 0x567   : > { %v1788_v36 = vpop.f32.mrf.mxu2 }
 0x568   : > { %v1789_v38 = vadd.f32 %v3250_v39, %v1788_v36 }
 0x56a   : > { %v2471_v40 = vpack.c.bf16 %v1789_v38, %v1787_v37 }
 0x56c   : > { %2487 = vst [vmem:[%s3257_s9 + $0x78] sm:$0xff] %v2471_v40  }
 0x56d   : > { %2704 = shalt.err (!%p2701_p8)
}
 0x56e   : > { %s2754_s21 = smov 64   ;;  %s2755_s9 = smov 4  }
 0x56f   : > { %2518 = dma.vmem_to_hbm [thread:$0]  (%p2834_p5), %s1869_s19, 2048, %s1871_s20, %s1856_s16, %s2754_s21, %s2754_s21, %s2755_s9  }
 0x570 PF: > { %p2540_p9 = scmp.ge.s32.totalorder %s2747_s27, 2  ;;  %s1885_s15 = sand.u32 1, %s2735_s24  }
 0x571   : > { %s1886_s17 = scalar_lea.sflag [#allocation4], %s1885_s15 }
 0x572   : > { %p2531_p10 = pnand %p2540_p9, %p2838_p6 }
 0x574   : > { %p2532_p11 = pneg %p2531_p10 }
 0x576   : > { %2730 = dma.done.wait (%p2532_p11), %s1886_s17, 2048  }
 0x577   : > { %2732 = vsyncadd (%p2532_p11), %s1886_s17, 4294965248  ;;  %p19_p12 = scmp.ge.s32.totalorder %s2821_s30, 4   ;;  %s3363_s24 = smov %s2739_s25 }
 0x578   : > { %s3364_s25 = smov %s2743_s26  ;;  %s3365_s26 = smov %s2832_s10 }
 0x579   : > { %s3366_s27 = smov %s2821_s30  ;;  %21 = sbr.rel (!%p19_p12) target bundleno = 5 (0x5), region = 100 }
 0x57e   :  { %1892 = vsyncpa [#allocation3], 1 }
 0x57f   :  { %1894 = vsyncpa [#allocation3 + $0x1], 1 }
 0x580   :  { %1895 = vsyncpa [#allocation6], 1 }
 0x581   :  { %1896 = vsyncpa [#allocation4], 1 }
 0x582   :  { %1898 = vsyncpa [#allocation4 + $0x1], 1 }

// kernel: tpu_custom_call.1
= control target key start
LH: loop header
LB: loop body
LE: loop exit
PB: predicated region body
PF: predicated region fallthrough
CT: control target
= control target key end

     0   :  { %12 = vsyncpa [#allocation3], 0  ;;  %s3351_s0 = inlined_call_operand.vmem [shape: bf16[512,32], index: 0, kind: input, shape index: {}]   ;;  %s3352_s1 = inlined_call_operand.hbm [shape: bf16[32,128], index: 1, kind: input, shape index: {}]   ;;  %s3353_s2 = inlined_call_operand.vmem [shape: f32[1,128], index: 2, kind: input, shape index: {}]   ;;  %s3354_s3 = inlined_call_operand.vmem [shape: bf16[5,128,128], index: 3, kind: input, shape index: {}]   ;;  %s3355_s4 = inlined_call_operand.hbm [shape: f32[5,128], index: 4, kind: input, shape index: {}]   ;;  %s3356_s5 = inlined_call_operand.hbm [shape: bf16[128,128], index: 5, kind: input, shape index: {}]   ;;  %s3357_s6 = inlined_call_operand.vmem [shape: f32[1,128], index: 6, kind: input, shape index: {}]   ;;  %s3358_s7 = inlined_call_operand.hbm [shape: bf16[512,128], index: 7, kind: output, shape index: {}]  }
   0x1   :  { %13 = vsyncpa [#allocation6], 0 }
   0x2   :  { %14 = vsyncpa [#allocation4], 0 }
   0x3   :  { %16 = vsyncpa [#allocation4 + $0x1], 0  ;;  %s2796_s24 = smov 0   ;;  %s2798_s25 = smov 0  }
   0x4   :  { %s2800_s26 = smov 0   ;;  %s2802_s27 = smov 0  }
   0x5 LB: > { %s2817_s28 = sadd.s32 4294967295, %s2747_s27   ;;  %s1964_s29 = sadd.s32 4294967294, %s2747_s27   ;;  %s2747_s27 = sphi %s2802_s27, %s3366_s27   ;;  %s2743_s26 = sphi %s2800_s26, %s3365_s26   ;;  %s2739_s25 = sphi %s2798_s25, %s3364_s25   ;;  %s2735_s24 = sphi %s2796_s24, %s3363_s24  }
   0x6   : > { %s2821_s30 = sadd.s32 1, %s2747_s27   ;;  %s181_s8 = sadd.s32 1, %s2743_s26 }
   0x7   : > { %s178_s9 = ssub.s32 %s2747_s27, %s2821_s30  ;;  %p191_p0 = scmp.ne.s32.totalorder %s2743_s26, %s2739_s25 }
   0x8   : > { %p179_p1 = scmp.eq.s32.totalorder %s178_s9, 0  ;;  %p192_p2 = scmp.eq.s32.totalorder %s2817_s28, 1 }
   0x9   : > { %p197_p3 = scmp.ne.s32.totalorder %s2739_s25, %s2735_s24  ;;  %p198_p4 = scmp.eq.s32.totalorder %s1964_s29, 1 }
   0xa   : > { %s2832_s10 = scalar_select %p179_p1, %s2743_s26, %s181_s8  }
   0xb   : > { %p2834_p5 = por %p192_p2, %p191_p0  ;;  %p2838_p6 = por %p198_p4, %p197_p3 }
   0xc   : > { %p1965_p7 = scmp.ge.s32.totalorder %s2747_s27, 1  ;;  %p205_p8 = scmp.lt.s32.totalorder %s2747_s27, 3 }
   0xd   : > { %p2534_p9 = scmp.eq.s32.totalorder %s2817_s28, 0  ;;  %s237_s16 = sshll.u32 %s3355_s4, 4  ;;  %s238_s16 = int_to_ptr.hbm [resolvable:$true] %s237_s16 }
   0xe   : > { %p2845_p10 = pnand %p1965_p7, %p205_p8  ;;  %s2749_s17 = smov [#allocation5]  }
   0xf   : > { %s239_s18 = sshll.u32 %s2749_s17, 4  ;;  %s216_s21 = sshll.u32 %s3352_s1, 4  ;;  %s240_s18 = int_to_ptr.vmem [resolvable:$true] %s239_s18  ;;  %s217_s21 = int_to_ptr.hbm [resolvable:$true] %s216_s21 }
  0x10   : > { %p2520_p11 = pneg %p2845_p10  ;;  %s2750_s23 = smov [#allocation2]  }
  0x11   : > { %s218_s29 = sshll.u32 %s2750_s23, 4  ;;  %s2751_s8 = smov 64   ;;  %s219_s29 = int_to_ptr.vmem [resolvable:$true] %s218_s29 }
  0x12   : > { %p2859_p12 = pnand %p2534_p9, %p2520_p11  ;;  %s2752_s9 = smov 4  }
  0x13   : > { %s248_s17 = sshll.u32 %s3356_s5, 4  ;;  %s2753_s19 = smov [#allocation7]   ;;  %s249_s17 = int_to_ptr.hbm [resolvable:$true] %s248_s17 }
  0x14   : > { %2526 = dma.hbm_to_vmem [thread:$0]  (!%p2859_p12), %s238_s16, 128, %s240_s18, [#allocation6]  }
  0x15   : > { %2523 = dma.hbm_to_vmem [thread:$0]  (!%p2859_p12), %s217_s21, 256, %s219_s29, [#allocation3], %s2751_s8, %s2751_s8, %s2752_s9  }
  0x16   : > { %s250_s20 = sshll.u32 %s2753_s19, 4  ;;  %278 = sbr.rel (%p2845_p10) target bundleno = 1392 (0x570), region = 48  ;;  %s251_s20 = int_to_ptr.vmem [resolvable:$true] %s250_s20 }
  0x17   : > { %2529 = dma.hbm_to_vmem [thread:$0]  (!%p2859_p12), %s249_s17, 1024, %s251_s20, [#allocation6], %s2751_s8, %s2751_s8, %s2752_s9  }
  0x1b   : > { %2722 = dma.done.wait (%p2534_p9), [#allocation3], 256  }
  0x1c   : > { %2724 = vsyncadd (%p2534_p9), [#allocation3], 4294967040 }
  0x1d   : > { %2726 = dma.done.wait (%p2534_p9), [#allocation6], 1152  }
  0x1e   : > { %2728 = vsyncadd (%p2534_p9), [#allocation6], 4294966144  ;;  %s1975_s16 = sshll.u32 %s2817_s28, 5  ;;  %v2343_v0 = vld [vmem:[#allocation2 + $0x8] sm:$0xff]  ;;  %v2342_v1 = vld [vmem:[#allocation2] sm:$0xff]  ;;  %vm461_vm0 = vcmask 261120  }
  0x1f   : > { %p322_p13 = scmp.lt.s32.totalorder %s1975_s16, 63  ;;  %516 = vmatpush.bf16.msra.mxu0 %v2343_v0  ;;  %2488 = vmatpush.bf16.msra.mxu3 %v2343_v0  ;;  %v2351_v7 = vld [vmem:[%s3354_s3 + $0x38] sm:$0xff]  ;;  %v2350_v8 = vld [vmem:[%s3354_s3 + $0x30] sm:$0xff]  ;;  %v2349_v10 = vld [vmem:[%s3354_s3 + $0x28] sm:$0xff]  ;;  %s318_s21 = sand.u32 1, %s2739_s25  }
  0x20   : > { %681 = vmatpush.bf16.msra.mxu1 %v2351_v7  ;;  %v2348_v11 = vld [vmem:[%s3354_s3 + $0x20] sm:$0xff]  ;;  %v2347_v12 = vld [vmem:[%s3354_s3 + $0x18] sm:$0xff]  ;;  %v2346_v14 = vld [vmem:[%s3354_s3 + $0x10] sm:$0xff]  ;;  %s1974_s8 = sshll.u32 %s318_s21, 7  ;;  %s2392_s14 = sshll.u32 %s2817_s28, 7 }
  0x21   : > { %s3368_s16 = smov (!%p322_p13, %s1975_s16), 63  ;;  %v2345_v15 = vld [vmem:[%s3354_s3 + $0x8] sm:$0xff]  ;;  %v2344_v16 = vld [vmem:[%s3354_s3] sm:$0xff]  ;;  %v2359_v54 = vld [vmem:[%s3354_s3 + $0x78] sm:$0xff]  ;;  %s3257_s9 = scalar_lea.vmem [#allocation8], %s1974_s8 }
  0x22   : > { %s1976_s18 = sshll.u32 %s3368_s16, 2  ;;  %v2933_v20 = vld [vmem:[%s3353_s2] ss:$0 sm:$0xff]  ;;  %885 = vmatpush.bf16.msra.mxu2 %v2359_v54  ;;  %v2358_v58 = vld [vmem:[%s3354_s3 + $0x70] sm:$0xff]  ;;  %v2357_v60 = vld [vmem:[%s3354_s3 + $0x68] sm:$0xff]  ;;  %s1868_s19 = sshll.u32 %s3257_s9, 4  ;;  %s1869_s19 = int_to_ptr.vmem [resolvable:$true] %s1868_s19 }
  0x23   : > { %s2886_s22 = scalar_lea.vmem %s3351_s0, %s1976_s18  ;;  %517 = vmatpush.bf16.msra.mxu0 %v2342_v1  ;;  %2489 = vmatpush.bf16.msra.mxu3 %v2342_v1  ;;  %v2356_v61 = vld [vmem:[%s3354_s3 + $0x60] sm:$0xff]  ;;  %v2355_v63 = vld [vmem:[%s3354_s3 + $0x58] sm:$0xff]  ;;  %s1856_s16 = scalar_lea.sflag [#allocation4], %s318_s21 }
  0x24   : > { %v2326_v2 = vld [vmem:[%s2886_s22] sm:$0xff]  ;;  %v2327_v3 = vld [vmem:[%s2886_s22 + $0x8] sm:$0xff]  ;;  %v2328_v4 = vld [vmem:[%s2886_s22 + $0x10] sm:$0xff]  ;;  %682 = vmatpush.bf16.msra.mxu1 %v2350_v8  ;;  %s2697_s29 = scalar_lea.hbm %s3358_s7, 256 }
  0x25   : > { %v2329_v5 = vld [vmem:[%s2886_s22 + $0x18] sm:$0xff]  ;;  %v2330_v6 = vld [vmem:[%s2886_s22 + $0x20] sm:$0xff]  ;;  %v2331_v9 = vld [vmem:[%s2886_s22 + $0x28] sm:$0xff] }
  0x26   : > { %2049 = vmatmul.msk.bf16.vlgmr.msra.gmra.mxu0 %vm461_vm0, %v2326_v2  ;;  %v2332_v13 = vld [vmem:[%s2886_s22 + $0x30] sm:$0xff]  ;;  %v2333_v17 = vld [vmem:[%s2886_s22 + $0x38] sm:$0xff]  ;;  %v2334_v18 = vld [vmem:[%s2886_s22 + $0x40] sm:$0xff]  ;;  %886 = vmatpush.bf16.msra.mxu2 %v2358_v58 }
  0x27   : > { %2490 = vmatpush.bf16.msrb.mxu3 %v2351_v7  ;;  %v2335_v25 = vld [vmem:[%s2886_s22 + $0x48] sm:$0xff]  ;;  %v2336_v31 = vld [vmem:[%s2886_s22 + $0x50] sm:$0xff]  ;;  %v2337_v38 = vld [vmem:[%s2886_s22 + $0x58] sm:$0xff] }
  0x28   : > { %683 = vmatpush.bf16.msra.mxu1 %v2349_v10  ;;  %v2339_v33 = vld [vmem:[%s2886_s22 + $0x68] sm:$0xff]  ;;  %v2340_v40 = vld [vmem:[%s2886_s22 + $0x70] sm:$0xff]  ;;  %v2338_v45 = vld [vmem:[%s2886_s22 + $0x60] sm:$0xff] }
  0x29   : > { %2062 = vmatmul.msk.bf16.vlgmr.msra.gmra.mxu3 %vm461_vm0, %v2339_v33  ;;  %v2341_v47 = vld [vmem:[%s2886_s22 + $0x78] sm:$0xff]  ;;  %s1867_s22 = scalar_lea.hbm %s3358_s7, %s2392_s14 }
  0x2a   : > { %887 = vmatpush.bf16.msra.mxu2 %v2357_v60  ;;  %s1870_s20 = sshll.u32 %s1867_s22, 4  ;;  %s1871_s20 = int_to_ptr.hbm [resolvable:$true] %s1870_s20 }
  0x2b   : > { %2491 = vmatpush.bf16.msrb.mxu3 %v2350_v8  ;;  %s2691_s18 = sshra.s32 %s1871_s20, 4  ;;  %s2692_s18 = int_to_ptr.hbm [resolvable:$true] %s2691_s18 }
  0x2c   : > { %684 = vmatpush.bf16.msra.mxu1 %v2348_v11  ;;  %s2693_s28 = scalar_lea.hbm %s2692_s18, 128  ;;  %p2698_p3 = scmp.lt.s32.totalorder %s2692_s18, %s3358_s7 }
  0x2d   : > { %p2694_p0 = scmp.ne.s32.totalorder %s2692_s18, %s2693_s28  ;;  %p2699_p4 = scmp.lt.s32.totalorder %s2697_s29, %s2693_s28 }
  0x2e   : > { %888 = vmatpush.bf16.msra.mxu2 %v2356_v61 }
  0x2f   : > { %2492 = vmatpush.bf16.msrb.mxu3 %v2349_v10  ;;  %p2695_p1 = pnand %p2694_p0, %p2834_p5  ;;  %p2700_p7 = por %p2699_p4, %p2698_p3 }
  0x30   : > { %685 = vmatpush.bf16.msra.mxu1 %v2347_v12 }
  0x31   : > { %p2696_p2 = pneg %p2695_p1 }
  0x32   : > { %889 = vmatpush.bf16.msra.mxu2 %v2355_v63 }
  0x33   : > { %2493 = vmatpush.bf16.msrb.mxu3 %v2348_v11  ;;  %p2701_p8 = pnand %p2700_p7, %p2696_p2 }
  0x34   : > { %686 = vmatpush.bf16.msra.mxu1 %v2346_v14 }
  0x36   : > { %2050 = vmatmul.msk.bf16.gmra.mxu0 %vm461_vm0, %v2327_v3  ;;  %v2354_v3 = vld [vmem:[%s3354_s3 + $0x50] sm:$0xff] }
  0x37   : > { %2494 = vmatpush.bf16.msrb.mxu3 %v2347_v12  ;;  %890 = vmatpush.bf16.msra.mxu2 %v2354_v3 }
  0x38   : > { %687 = vmatpush.bf16.msra.mxu1 %v2345_v15 }
  0x39   : > { %2063 = vmatmul.msk.bf16.gmra.mxu3 %vm461_vm0, %v2340_v40 }
  0x3b   : > { %2495 = vmatpush.bf16.msrb.mxu3 %v2346_v14 }
  0x3c   : > { %688 = vmatpush.bf16.msra.mxu1 %v2344_v16 }
  0x3f   : > { %2496 = vmatpush.bf16.msrb.mxu3 %v2345_v15 }
  0x43   : > { %2497 = vmatpush.bf16.msrb.mxu3 %v2344_v16 }
  0x46   : > { %2051 = vmatmul.msk.bf16.gmra.mxu0 %vm461_vm0, %v2328_v4 }
  0x47   : > { %2498 = vmatpush.bf16.msra.mxu3 %v2359_v54 }
  0x49   : > { %2064 = vmatmul.msk.bf16.gmra.mxu3 %vm461_vm0, %v2341_v47 }
  0x4b   : > { %2499 = vmatpush.bf16.msra.mxu3 %v2358_v58 }
  0x4f   : > { %2500 = vmatpush.bf16.msra.mxu3 %v2357_v60 }
  0x53   : > { %2501 = vmatpush.bf16.msra.mxu3 %v2356_v61 }
  0x56   : > { %2052 = vmatmul.msk.bf16.gmra.mxu0 %vm461_vm0, %v2329_v5  ;;  %v2353_v5 = vld [vmem:[%s3354_s3 + $0x48] sm:$0xff] }
  0x57   : > { %2502 = vmatpush.bf16.msra.mxu3 %v2355_v63  ;;  %891 = vmatpush.bf16.msra.mxu2 %v2353_v5 }
  0x5b   : > { %2503 = vmatpush.bf16.msra.mxu3 %v2354_v3 }
  0x5f   : > { %2504 = vmatpush.bf16.msra.mxu3 %v2353_v5 }
  0x66   : > { %2053 = vmatmul.msk.bf16.gmra.mxu0 %vm461_vm0, %v2330_v6  ;;  %v2352_v6 = vld [vmem:[%s3354_s3 + $0x40] sm:$0xff] }
  0x67   : > { %892 = vmatpush.bf16.msra.mxu2 %v2352_v6  ;;  %2505 = vmatpush.bf16.msra.mxu3 %v2352_v6 }
  0x76   : > { %2054 = vmatmul.msk.bf16.gmra.mxu0 %vm461_vm0, %v2331_v9 }
  0x86   : > { %2055 = vmatmul.msk.bf16.gmra.mxu0 %vm461_vm0, %v2332_v13 }
  0x96   : > { %2056 = vmatmul.msk.bf16.gmra.mxu0 %vm461_vm0, %v2333_v17  ;;  %v2991_v17 = vld [vmem:[#allocation5] ss:$0 sm:$0xff] }
  0xa3   : > { %v519_v19 = vpop.f32.mrf.mxu0 }
  0xa4   : > { %v520_v22 = vadd.f32 %v2933_v20, %v519_v19 }
  0xa6   : > { %2057 = vmatmul.msk.bf16.gmra.mxu0 %vm461_vm0, %v2334_v18 }
  0xab   : > { %v521_v21 = vpop.f32.mrf.mxu0 }
  0xac   : > { %v522_v23 = vadd.f32 %v2933_v20, %v521_v21  ;;  %v584_v58 = vpop.f32.mrf.mxu3 }
  0xae   : > { %v599_v24 = vpack.c.bf16 %v522_v23, %v520_v22 }
  0xb0   : > { %689 = vmatmul.bf16.vlgmr.msra.gmra.mxu1 %v599_v24 }
  0xb3   : > { %v524_v26 = vpop.f32.mrf.mxu0 }
  0xb4   : > { %v525_v28 = vadd.f32 %v2933_v20, %v524_v26 }
  0xb6   : > { %2058 = vmatmul.msk.bf16.gmra.mxu0 %vm461_vm0, %v2335_v25 }
  0xbb   : > { %v526_v27 = vpop.f32.mrf.mxu0 }
  0xbc   : > { %v527_v29 = vadd.f32 %v2933_v20, %v526_v27 }
  0xbe   : > { %v600_v30 = vpack.c.bf16 %v527_v29, %v525_v28 }
  0xc0   : > { %694 = vmatmul.bf16.gmra.mxu1 %v600_v30 }
  0xc3   : > { %v529_v32 = vpop.f32.mrf.mxu0 }
  0xc4   : > { %v530_v35 = vadd.f32 %v2933_v20, %v529_v32 }
  0xc6   : > { %2059 = vmatmul.msk.bf16.gmra.mxu0 %vm461_vm0, %v2336_v31 }
  0xcb   : > { %v531_v34 = vpop.f32.mrf.mxu0 }
  0xcc   : > { %v532_v36 = vadd.f32 %v2933_v20, %v531_v34 }
  0xce   : > { %v601_v37 = vpack.c.bf16 %v532_v36, %v530_v35 }
  0xd0   : > { %699 = vmatmul.bf16.gmra.mxu1 %v601_v37 }
  0xd3   : > { %v534_v39 = vpop.f32.mrf.mxu0 }
  0xd4   : > { %v535_v42 = vadd.f32 %v2933_v20, %v534_v39 }
  0xd6   : > { %2060 = vmatmul.msk.bf16.gmra.mxu0 %vm461_vm0, %v2337_v38 }
  0xdb   : > { %v536_v41 = vpop.f32.mrf.mxu0 }
  0xdc   : > { %v537_v43 = vadd.f32 %v2933_v20, %v536_v41 }
  0xde   : > { %v602_v44 = vpack.c.bf16 %v537_v43, %v535_v42 }
  0xe0   : > { %704 = vmatmul.bf16.gmra.mxu1 %v602_v44 }
  0xe3   : > { %v539_v46 = vpop.f32.mrf.mxu0 }
  0xe4   : > { %v540_v49 = vadd.f32 %v2933_v20, %v539_v46 }
  0xe6   : > { %2061 = vmatmul.msk.bf16.gmra.mxu0 %vm461_vm0, %v2338_v45 }
  0xeb   : > { %v541_v48 = vpop.f32.mrf.mxu0 }
  0xec   : > { %v542_v50 = vadd.f32 %v2933_v20, %v541_v48 }
  0xee   : > { %v603_v51 = vpack.c.bf16 %v542_v50, %v540_v49 }
  0xf0   : > { %709 = vmatmul.bf16.gmra.mxu1 %v603_v51 }
  0xf3   : > { %v544_v52 = vpop.f32.mrf.mxu0 }
  0xf4   : > { %v545_v55 = vadd.f32 %v2933_v20, %v544_v52 }
  0xfb   : > { %v546_v53 = vpop.f32.mrf.mxu0 }
  0xfc   : > { %v547_v56 = vadd.f32 %v2933_v20, %v546_v53 }
  0xfe   : > { %v604_v57 = vpack.c.bf16 %v547_v56, %v545_v55 }
 0x100   : > { %714 = vmatmul.bf16.gmra.mxu1 %v604_v57 }
 0x103   : > { %v549_v59 = vpop.f32.mrf.mxu0 }
 0x104   : > { %v550_v0 = vadd.f32 %v2933_v20, %v549_v59 }
 0x10b   : > { %v551_v62 = vpop.f32.mrf.mxu0 }
 0x10c   : > { %v552_v1 = vadd.f32 %v2933_v20, %v551_v62 }
 0x10e   : > { %v605_v2 = vpack.c.bf16 %v552_v1, %v550_v0 }
 0x110   : > { %719 = vmatmul.bf16.gmra.mxu1 %v605_v2 }
 0x113   : > { %v554_v4 = vpop.f32.mrf.mxu0 }
 0x114   : > { %v555_v8 = vadd.f32 %v2933_v20, %v554_v4  ;;  %v586_v4 = vpop.f32.mrf.mxu3 }
 0x11b   : > { %v556_v7 = vpop.f32.mrf.mxu0 }
 0x11c   : > { %v557_v9 = vadd.f32 %v2933_v20, %v556_v7 }
 0x11e   : > { %v606_v10 = vpack.c.bf16 %v557_v9, %v555_v8 }
 0x120   : > { %724 = vmatmul.bf16.gmra.mxu1 %v606_v10  ;;  %v589_v10 = vpop.f32.mrf.mxu3 }
 0x123   : > { %v559_v11 = vpop.f32.mrf.mxu0 }
 0x124   : > { %v560_v13 = vadd.f32 %v2933_v20, %v559_v11  ;;  %v585_v11 = vadd.f32 %v2933_v20, %v584_v58 }
 0x12b   : > { %v561_v12 = vpop.f32.mrf.mxu0 }
 0x12c   : > { %v562_v14 = vadd.f32 %v2933_v20, %v561_v12  ;;  %v587_v12 = vadd.f32 %v2933_v20, %v586_v4  ;;  %v2367_v4 = vld [vmem:[%s3354_s3 + $0xb8] sm:$0xff] }
 0x12d   : > { %v690_v15 = vpop.f32.mrf.mxu1 }
 0x12e   : > { %v607_v16 = vpack.c.bf16 %v562_v14, %v560_v13  ;;  %v691_v19 = vadd.f32 %v2991_v17, %v690_v15  ;;  %v612_v15 = vpack.c.bf16 %v587_v12, %v585_v11  ;;  %v2366_v12 = vld [vmem:[%s3354_s3 + $0xb0] sm:$0xff] }
 0x130   : > { %729 = vmatmul.bf16.gmra.mxu1 %v607_v16  ;;  %v770_v23 = vmax.f32 %v691_v19, 0.0  ;;  %v591_v16 = vpop.f32.mrf.mxu3 }
 0x133   : > { %v564_v18 = vpop.f32.mrf.mxu0 }
 0x134   : > { %v565_v27 = vadd.f32 %v2933_v20, %v564_v18 }
 0x135   : > { %v692_v21 = vpop.f32.mrf.mxu1 }
 0x136   : > { %v693_v22 = vadd.f32 %v2991_v17, %v692_v21 }
 0x138   : > { %v771_v24 = vmax.f32 %v693_v22, 0.0 }
 0x13a   : > { %v802_v25 = vpack.c.bf16 %v771_v24, %v770_v23  ;;  %v590_v24 = vadd.f32 %v2933_v20, %v589_v10 }
 0x13b   : > { %v566_v26 = vpop.f32.mrf.mxu0 }
 0x13c   : > { %v567_v28 = vadd.f32 %v2933_v20, %v566_v26  ;;  %893 = vmatmul.bf16.vlgmr.msra.gmra.mxu2 %v802_v25  ;;  %v592_v25 = vadd.f32 %v2933_v20, %v591_v16  ;;  %v2364_v16 = vld [vmem:[%s3354_s3 + $0xa0] sm:$0xff] }
 0x13d   : > { %v695_v29 = vpop.f32.mrf.mxu1 }
 0x13e   : > { %v608_v30 = vpack.c.bf16 %v567_v28, %v565_v27  ;;  %v696_v32 = vadd.f32 %v2991_v17, %v695_v29  ;;  %v594_v27 = vpop.f32.mrf.mxu3  ;;  %v613_v29 = vpack.c.bf16 %v592_v25, %v590_v24 }
 0x140   : > { %734 = vmatmul.bf16.gmra.mxu1 %v608_v30  ;;  %v772_v35 = vmax.f32 %v696_v32, 0.0 }
 0x143   : > { %v569_v31 = vpop.f32.mrf.mxu0 }
 0x144   : > { %v570_v39 = vadd.f32 %v2933_v20, %v569_v31 }
 0x145   : > { %v697_v33 = vpop.f32.mrf.mxu1 }
 0x146   : > { %v698_v34 = vadd.f32 %v2991_v17, %v697_v33  ;;  %v596_v33 = vpop.f32.mrf.mxu3 }
 0x148   : > { %v773_v36 = vmax.f32 %v698_v34, 0.0 }
 0x14a   : > { %v803_v37 = vpack.c.bf16 %v773_v36, %v772_v35  ;;  %v595_v36 = vadd.f32 %v2933_v20, %v594_v27 }
 0x14b   : > { %v571_v38 = vpop.f32.mrf.mxu0 }
 0x14c   : > { %v572_v40 = vadd.f32 %v2933_v20, %v571_v38  ;;  %898 = vmatmul.bf16.gmra.mxu2 %v803_v37  ;;  %v597_v37 = vadd.f32 %v2933_v20, %v596_v33 }
 0x14d   : > { %v700_v41 = vpop.f32.mrf.mxu1 }
 0x14e   : > { %v609_v42 = vpack.c.bf16 %v572_v40, %v570_v39  ;;  %v701_v44 = vadd.f32 %v2991_v17, %v700_v41  ;;  %v614_v40 = vpack.c.bf16 %v597_v37, %v595_v36  ;;  %v2361_v36 = vld [vmem:[%s3354_s3 + $0x88] sm:$0xff] }
 0x150   : > { %739 = vmatmul.bf16.gmra.mxu1 %v609_v42  ;;  %v774_v47 = vmax.f32 %v701_v44, 0.0 }
 0x153   : > { %v574_v43 = vpop.f32.mrf.mxu0 }
 0x154   : > { %v575_v51 = vadd.f32 %v2933_v20, %v574_v43 }
 0x155   : > { %v702_v45 = vpop.f32.mrf.mxu1 }
 0x156   : > { %v703_v46 = vadd.f32 %v2991_v17, %v702_v45 }
 0x158   : > { %v775_v48 = vmax.f32 %v703_v46, 0.0 }
 0x15a   : > { %v804_v49 = vpack.c.bf16 %v775_v48, %v774_v47 }
 0x15b   : > { %v576_v50 = vpop.f32.mrf.mxu0 }
 0x15c   : > { %v577_v52 = vadd.f32 %v2933_v20, %v576_v50  ;;  %903 = vmatmul.bf16.gmra.mxu2 %v804_v49 }
 0x15d   : > { %v705_v53 = vpop.f32.mrf.mxu1 }
 0x15e   : > { %v610_v54 = vpack.c.bf16 %v577_v52, %v575_v51  ;;  %v706_v56 = vadd.f32 %v2991_v17, %v705_v53 }
 0x160   : > { %744 = vmatmul.bf16.gmra.mxu1 %v610_v54  ;;  %v776_v60 = vmax.f32 %v706_v56, 0.0 }
 0x163   : > { %v579_v55 = vpop.f32.mrf.mxu0 }
 0x164   : > { %v580_v0 = vadd.f32 %v2933_v20, %v579_v55 }
 0x165   : > { %v707_v57 = vpop.f32.mrf.mxu1 }
 0x166   : > { %v708_v59 = vadd.f32 %v2991_v17, %v707_v57 }
 0x168   : > { %v777_v61 = vmax.f32 %v708_v59, 0.0 }
 0x16a   : > { %v805_v62 = vpack.c.bf16 %v777_v61, %v776_v60 }
 0x16b   : > { %v581_v63 = vpop.f32.mrf.mxu0 }
 0x16c   : > { %v582_v1 = vadd.f32 %v2933_v20, %v581_v63  ;;  %908 = vmatmul.bf16.gmra.mxu2 %v805_v62 }
 0x16d   : > { %v710_v2 = vpop.f32.mrf.mxu1 }
 0x16e   : > { %v611_v3 = vpack.c.bf16 %v582_v1, %v580_v0  ;;  %v711_v5 = vadd.f32 %v2991_v17, %v710_v2 }
 0x170   : > { %749 = vmatmul.bf16.vlgmr.msrb.gmra.mxu3 %v611_v3  ;;  %v778_v8 = vmax.f32 %v711_v5, 0.0 }
 0x171   : > { %1089 = vmatpush.bf16.msrb.mxu3 %v2367_v4 }
 0x175   : > { %v712_v6 = vpop.f32.mrf.mxu1  ;;  %1090 = vmatpush.bf16.msrb.mxu3 %v2366_v12 }
 0x176   : > { %v713_v7 = vadd.f32 %v2991_v17, %v712_v6 }
 0x178   : > { %v779_v9 = vmax.f32 %v713_v7, 0.0 }
 0x17a   : > { %v806_v13 = vpack.c.bf16 %v779_v9, %v778_v8  ;;  %v2375_v8 = vld [vmem:[%s3354_s3 + $0xf8] sm:$0xff] }
 0x17b   : > { %1293 = vmatpush.bf16.msrb.mxu0 %v2375_v8 }
 0x17c   : > { %913 = vmatmul.bf16.gmra.mxu2 %v806_v13  ;;  %v2365_v13 = vld [vmem:[%s3354_s3 + $0xa8] sm:$0xff] }
 0x17d   : > { %v715_v14 = vpop.f32.mrf.mxu1  ;;  %1091 = vmatpush.bf16.msrb.mxu3 %v2365_v13 }
 0x17e   : > { %v716_v18 = vadd.f32 %v2991_v17, %v715_v14 }
 0x180   : > { %754 = vmatmul.bf16.gmra.mxu3 %v612_v15  ;;  %v780_v22 = vmax.f32 %v716_v18, 0.0 }
 0x181   : > { %1092 = vmatpush.bf16.msrb.mxu3 %v2364_v16 }
 0x185   : > { %v717_v19 = vpop.f32.mrf.mxu1 }
 0x186   : > { %v718_v21 = vadd.f32 %v2991_v17, %v717_v19 }
 0x188   : > { %v781_v23 = vmax.f32 %v718_v21, 0.0 }
 0x18a   : > { %v807_v26 = vpack.c.bf16 %v781_v23, %v780_v22  ;;  %v2374_v23 = vld [vmem:[%s3354_s3 + $0xf0] sm:$0xff] }
 0x18b   : > { %1294 = vmatpush.bf16.msrb.mxu0 %v2374_v23 }
 0x18c   : > { %918 = vmatmul.bf16.gmra.mxu2 %v807_v26  ;;  %v2363_v26 = vld [vmem:[%s3354_s3 + $0x98] sm:$0xff] }
 0x18d   : > { %v720_v28 = vpop.f32.mrf.mxu1  ;;  %1093 = vmatpush.bf16.msrb.mxu3 %v2363_v26 }
 0x18e   : > { %v721_v30 = vadd.f32 %v2991_v17, %v720_v28 }
 0x190   : > { %759 = vmatmul.bf16.gmra.mxu3 %v613_v29  ;;  %v782_v34 = vmax.f32 %v721_v30, 0.0  ;;  %v2362_v30 = vld [vmem:[%s3354_s3 + $0x90] sm:$0xff] }
 0x191   : > { %1094 = vmatpush.bf16.msrb.mxu3 %v2362_v30  ;;  %v2383_v30 = vld [vmem:[%s3354_s3 + $0x138] sm:$0xff] }
 0x192   : > { %1497 = vmatpush.bf16.msrb.mxu1 %v2383_v30  ;;  %v2380_v30 = vld [vmem:[%s3354_s3 + $0x120] sm:$0xff] }
 0x195   : > { %v722_v31 = vpop.f32.mrf.mxu1  ;;  %1095 = vmatpush.bf16.msrb.mxu3 %v2361_v36 }
 0x196   : > { %v723_v32 = vadd.f32 %v2991_v17, %v722_v31 }
 0x198   : > { %v783_v35 = vmax.f32 %v723_v32, 0.0 }
 0x19a   : > { %v808_v38 = vpack.c.bf16 %v783_v35, %v782_v34 }
 0x19c   : > { %923 = vmatmul.bf16.gmra.mxu2 %v808_v38 }
 0x19d   : > { %v725_v39 = vpop.f32.mrf.mxu1 }
 0x19e   : > { %v726_v41 = vadd.f32 %v2991_v17, %v725_v39 }
 0x1a0   : > { %764 = vmatmul.bf16.gmra.mxu3 %v614_v40  ;;  %v784_v44 = vmax.f32 %v726_v41, 0.0  ;;  %v2373_v40 = vld [vmem:[%s3354_s3 + $0xe8] sm:$0xff]  ;;  %v2360_v41 = vld [vmem:[%s3354_s3 + $0x80] sm:$0xff] }
 0x1a1   : > { %1295 = vmatpush.bf16.msrb.mxu0 %v2373_v40  ;;  %1096 = vmatpush.bf16.msrb.mxu3 %v2360_v41 }
 0x1a5   : > { %v727_v42 = vpop.f32.mrf.mxu1 }
 0x1a6   : > { %v728_v43 = vadd.f32 %v2991_v17, %v727_v42 }
 0x1a8   : > { %v785_v45 = vmax.f32 %v728_v43, 0.0 }
 0x1aa   : > { %v809_v46 = vpack.c.bf16 %v785_v45, %v784_v44 }
 0x1ac   : > { %928 = vmatmul.bf16.gmra.mxu2 %v809_v46 }
 0x1ad   : > { %v730_v47 = vpop.f32.mrf.mxu1 }
 0x1ae   : > { %v731_v48 = vadd.f32 %v2991_v17, %v730_v47 }
 0x1b0   : > { %v786_v50 = vmax.f32 %v731_v48, 0.0 }
 0x1b5   : > { %v732_v49 = vpop.f32.mrf.mxu1 }
 0x1b6   : > { %v733_v20 = vadd.f32 %v2991_v17, %v732_v49 }
 0x1b8   : > { %v787_v51 = vmax.f32 %v733_v20, 0.0 }
 0x1ba   : > { %v810_v52 = vpack.c.bf16 %v787_v51, %v786_v50 }
 0x1bc   : > { %933 = vmatmul.bf16.gmra.mxu2 %v810_v52 }
 0x1bd   : > { %v735_v53 = vpop.f32.mrf.mxu1 }
 0x1be   : > { %v736_v54 = vadd.f32 %v2991_v17, %v735_v53 }
 0x1bf   : > { %v894_v24 = vpop.f32.mrf.mxu2 }
 0x1c0   : > { %v788_v57 = vmax.f32 %v736_v54, 0.0 }
 0x1c5   : > { %v737_v55 = vpop.f32.mrf.mxu1 }
 0x1c6   : > { %v738_v56 = vadd.f32 %v2991_v17, %v737_v55 }
 0x1c7   : > { %v896_v28 = vpop.f32.mrf.mxu2 }
 0x1c8   : > { %v789_v58 = vmax.f32 %v738_v56, 0.0  ;;  %v2372_v56 = vld [vmem:[%s3354_s3 + $0xe0] sm:$0xff] }
 0x1c9   : > { %1296 = vmatpush.bf16.msrb.mxu0 %v2372_v56 }
 0x1ca   : > { %v811_v59 = vpack.c.bf16 %v789_v58, %v788_v57  ;;  %v3075_v57 = vld [vmem:[#allocation5 + $0x1] ss:$0 sm:$0xff] }
 0x1cb   : > { %v897_v58 = vadd.f32 %v3075_v57, %v896_v28 }
 0x1cc   : > { %938 = vmatmul.bf16.gmra.mxu2 %v811_v59  ;;  %v895_v59 = vadd.f32 %v3075_v57, %v894_v24 }
 0x1cd   : > { %v740_v60 = vpop.f32.mrf.mxu1 }
 0x1ce   : > { %v741_v61 = vadd.f32 %v2991_v17, %v740_v60 }
 0x1cf   : > { %v899_v37 = vpop.f32.mrf.mxu2 }
 0x1d0   : > { %v790_v0 = vmax.f32 %v741_v61, 0.0  ;;  %v975_v61 = vmax.f32 %v897_v58, 0.0 }
 0x1d5   : > { %v742_v62 = vpop.f32.mrf.mxu1 }
 0x1d6   : > { %v743_v63 = vadd.f32 %v2991_v17, %v742_v62  ;;  %v974_v62 = vmax.f32 %v895_v59, 0.0 }
 0x1d7   : > { %v901_v44 = vpop.f32.mrf.mxu2 }
 0x1d8   : > { %v791_v1 = vmax.f32 %v743_v63, 0.0 }
 0x1da   : > { %v812_v2 = vpack.c.bf16 %v791_v1, %v790_v0  ;;  %v902_v0 = vadd.f32 %v3075_v57, %v901_v44  ;;  %v900_v1 = vadd.f32 %v3075_v57, %v899_v37 }
 0x1dc   : > { %943 = vmatmul.bf16.gmra.mxu2 %v812_v2  ;;  %v2371_v2 = vld [vmem:[%s3354_s3 + $0xd8] sm:$0xff]  ;;  %v976_v4 = vmax.f32 %v900_v1, 0.0 }
 0x1dd   : > { %v745_v3 = vpop.f32.mrf.mxu1  ;;  %1297 = vmatpush.bf16.msrb.mxu0 %v2371_v2 }
 0x1de   : > { %v746_v5 = vadd.f32 %v2991_v17, %v745_v3  ;;  %v977_v3 = vmax.f32 %v902_v0, 0.0 }
 0x1df   : > { %v904_v49 = vpop.f32.mrf.mxu2 }
 0x1e0   : > { %v792_v9 = vmax.f32 %v746_v5, 0.0 }
 0x1e5   : > { %v747_v6 = vpop.f32.mrf.mxu1 }
 0x1e6   : > { %v748_v7 = vadd.f32 %v2991_v17, %v747_v6  ;;  %v1007_v6 = vpack.c.bf16 %v977_v3, %v976_v4 }
 0x1e7   : > { %v906_v55 = vpop.f32.mrf.mxu2 }
 0x1e8   : > { %v793_v10 = vmax.f32 %v748_v7, 0.0  ;;  %v907_v7 = vadd.f32 %v3075_v57, %v906_v55 }
 0x1ea   : > { %v813_v11 = vpack.c.bf16 %v793_v10, %v792_v9  ;;  %v905_v9 = vadd.f32 %v3075_v57, %v904_v49  ;;  %v979_v10 = vmax.f32 %v907_v7, 0.0  ;;  %v2368_v49 = vld [vmem:[%s3354_s3 + $0xc0] sm:$0xff] }
 0x1ec   : > { %948 = vmatmul.bf16.gmra.mxu2 %v813_v11  ;;  %v978_v11 = vmax.f32 %v905_v9, 0.0 }
 0x1ee   : > { %v1008_v12 = vpack.c.bf16 %v979_v10, %v978_v11 }
 0x1ef   : > { %v909_v60 = vpop.f32.mrf.mxu2 }
 0x1f0   : > { %v910_v16 = vadd.f32 %v3075_v57, %v909_v60 }
 0x1f3   : > { %v750_v14 = vpop.f32.mrf.mxu3 }
 0x1f4   : > { %v751_v15 = vadd.f32 %v2991_v17, %v750_v14 }
 0x1f6   : > { %v794_v21 = vmax.f32 %v751_v15, 0.0  ;;  %v2370_v15 = vld [vmem:[%s3354_s3 + $0xd0] sm:$0xff] }
 0x1f7   : > { %v911_v63 = vpop.f32.mrf.mxu2  ;;  %1298 = vmatpush.bf16.msrb.mxu0 %v2370_v15 }
 0x1f8   : > { %v912_v14 = vadd.f32 %v3075_v57, %v911_v63 }
 0x1fb   : > { %v752_v18 = vpop.f32.mrf.mxu3 }
 0x1fc   : > { %v753_v19 = vadd.f32 %v2991_v17, %v752_v18  ;;  %v981_v18 = vmax.f32 %v912_v14, 0.0 }
 0x1fe   : > { %v795_v22 = vmax.f32 %v753_v19, 0.0 }
 0x1ff   : > { %v914_v5 = vpop.f32.mrf.mxu2 }
 0x200   : > { %v814_v25 = vpack.c.bf16 %v795_v22, %v794_v21  ;;  %v980_v21 = vmax.f32 %v910_v16, 0.0 }
 0x202   : > { %953 = vmatmul.bf16.vlgmr.msra.gmra.mxu3 %v814_v25  ;;  %v1009_v22 = vpack.c.bf16 %v981_v18, %v980_v21  ;;  %v915_v25 = vadd.f32 %v3075_v57, %v914_v5 }
 0x203   : > { %v755_v27 = vpop.f32.mrf.mxu3 }
 0x204   : > { %v756_v29 = vadd.f32 %v2991_v17, %v755_v27  ;;  %v982_v27 = vmax.f32 %v915_v25, 0.0 }
 0x206   : > { %v796_v33 = vmax.f32 %v756_v29, 0.0  ;;  %v2369_v29 = vld [vmem:[%s3354_s3 + $0xc8] sm:$0xff] }
 0x207   : > { %v916_v8 = vpop.f32.mrf.mxu2  ;;  %1299 = vmatpush.bf16.msrb.mxu0 %v2369_v29  ;;  %v3133_v29 = vld [vmem:[#allocation5 + $0x2] ss:$0 sm:$0xff] }
 0x208   : > { %v917_v24 = vadd.f32 %v3075_v57, %v916_v8  ;;  %v2381_v8 = vld [vmem:[%s3354_s3 + $0x128] sm:$0xff] }
 0x20a   : > { %v983_v26 = vmax.f32 %v917_v24, 0.0 }
 0x20b   : > { %v757_v31 = vpop.f32.mrf.mxu3  ;;  %1300 = vmatpush.bf16.msrb.mxu0 %v2368_v49 }
 0x20c   : > { %v758_v32 = vadd.f32 %v2991_v17, %v757_v31  ;;  %v1010_v28 = vpack.c.bf16 %v983_v26, %v982_v27 }
 0x20e   : > { %v797_v34 = vmax.f32 %v758_v32, 0.0 }
 0x20f   : > { %v919_v13 = vpop.f32.mrf.mxu2 }
 0x210   : > { %v815_v35 = vpack.c.bf16 %v797_v34, %v796_v33  ;;  %v920_v34 = vadd.f32 %v3075_v57, %v919_v13 }
 0x212   : > { %958 = vmatmul.bf16.gmra.mxu3 %v815_v35 }
 0x213   : > { %v760_v38 = vpop.f32.mrf.mxu3 }
 0x214   : > { %v761_v39 = vadd.f32 %v2991_v17, %v760_v38 }
 0x216   : > { %v798_v45 = vmax.f32 %v761_v39, 0.0  ;;  %v984_v39 = vmax.f32 %v920_v34, 0.0 }
 0x217   : > { %v921_v19 = vpop.f32.mrf.mxu2 }
 0x218   : > { %v922_v33 = vadd.f32 %v3075_v57, %v921_v19 }
 0x21a   : > { %v985_v36 = vmax.f32 %v922_v33, 0.0 }
 0x21b   : > { %v762_v42 = vpop.f32.mrf.mxu3 }
 0x21c   : > { %v763_v43 = vadd.f32 %v2991_v17, %v762_v42 }
 0x21e   : > { %v799_v46 = vmax.f32 %v763_v43, 0.0  ;;  %v1011_v43 = vpack.c.bf16 %v985_v36, %v984_v39 }
 0x21f   : > { %v924_v23 = vpop.f32.mrf.mxu2 }
 0x220   : > { %v816_v47 = vpack.c.bf16 %v799_v46, %v798_v45 }
 0x222   : > { %963 = vmatmul.bf16.gmra.mxu3 %v816_v47 }
 0x223   : > { %v765_v48 = vpop.f32.mrf.mxu3 }
 0x224   : > { %v766_v20 = vadd.f32 %v2991_v17, %v765_v48  ;;  %v2382_v48 = vld [vmem:[%s3354_s3 + $0x130] sm:$0xff] }
 0x225   : > { %1498 = vmatpush.bf16.msrb.mxu1 %v2382_v48 }
 0x226   : > { %v800_v52 = vmax.f32 %v766_v20, 0.0  ;;  %v925_v20 = vadd.f32 %v3075_v57, %v924_v23 }
 0x227   : > { %v926_v31 = vpop.f32.mrf.mxu2 }
 0x228   : > { %v927_v47 = vadd.f32 %v3075_v57, %v926_v31 }
 0x229   : > { %1499 = vmatpush.bf16.msrb.mxu1 %v2381_v8 }
 0x22b   : > { %v767_v50 = vpop.f32.mrf.mxu3 }
 0x22c   : > { %v768_v51 = vadd.f32 %v2991_v17, %v767_v50  ;;  %v1006_v17 = vpack.c.bf16 %v975_v61, %v974_v62  ;;  %v987_v50 = vmax.f32 %v927_v47, 0.0 }
 0x22d   : > { %1500 = vmatpush.bf16.msrb.mxu1 %v2380_v30 }
 0x22e   : > { %v801_v53 = vmax.f32 %v768_v51, 0.0 }
 0x22f   : > { %v929_v35 = vpop.f32.mrf.mxu2 }
 0x230   : > { %v817_v54 = vpack.c.bf16 %v801_v53, %v800_v52  ;;  %v986_v53 = vmax.f32 %v925_v20, 0.0  ;;  %v930_v63 = vadd.f32 %v3075_v57, %v929_v35 }
 0x232   : > { %968 = vmatmul.bf16.gmra.mxu3 %v817_v54  ;;  %v1012_v59 = vpack.c.bf16 %v987_v50, %v986_v53  ;;  %v988_v3 = vmax.f32 %v930_v63, 0.0 }
 0x237   : > { %v931_v45 = vpop.f32.mrf.mxu2 }
 0x238   : > { %v932_v62 = vadd.f32 %v3075_v57, %v931_v45 }
 0x23a   : > { %v989_v0 = vmax.f32 %v932_v62, 0.0 }
 0x23c   : > { %v1013_v7 = vpack.c.bf16 %v989_v0, %v988_v3 }
 0x23f   : > { %v934_v55 = vpop.f32.mrf.mxu2 }
 0x240   : > { %v935_v13 = vadd.f32 %v3075_v57, %v934_v55 }
 0x242   : > { %1097 = vmatmul.bf16.vlgmr.msrb.gmra.mxu3 %v1006_v17  ;;  %v990_v19 = vmax.f32 %v935_v13, 0.0 }
 0x247   : > { %v936_v17 = vpop.f32.mrf.mxu2 }
 0x24f   : > { %v939_v10 = vpop.f32.mrf.mxu2 }
 0x250   : > { %v940_v31 = vadd.f32 %v3075_v57, %v939_v10 }
 0x252   : > { %1102 = vmatmul.bf16.gmra.mxu3 %v1007_v6  ;;  %v992_v35 = vmax.f32 %v940_v31, 0.0 }
 0x257   : > { %v941_v16 = vpop.f32.mrf.mxu2 }
 0x25f   : > { %v944_v27 = vpop.f32.mrf.mxu2 }
 0x260   : > { %v945_v45 = vadd.f32 %v3075_v57, %v944_v27 }
 0x262   : > { %1107 = vmatmul.bf16.gmra.mxu3 %v1008_v12  ;;  %v937_v12 = vadd.f32 %v3075_v57, %v936_v17  ;;  %v994_v20 = vmax.f32 %v945_v45, 0.0  ;;  %v2389_v45 = vld [vmem:[#allocation7 + $0x28] sm:$0xff] }
 0x264   : > { %v991_v14 = vmax.f32 %v937_v12, 0.0 }
 0x266   : > { %v1014_v24 = vpack.c.bf16 %v991_v14, %v990_v19 }
 0x272   : > { %1112 = vmatmul.bf16.gmra.mxu3 %v1009_v22 }
 0x282   : > { %1117 = vmatmul.bf16.gmra.mxu3 %v1010_v28  ;;  %v942_v28 = vadd.f32 %v3075_v57, %v941_v16 }
 0x285   : > { %v954_v32 = vpop.f32.mrf.mxu3 }
 0x286   : > { %v955_v37 = vadd.f32 %v3075_v57, %v954_v32  ;;  %v993_v32 = vmax.f32 %v942_v28, 0.0 }
 0x288   : > { %v998_v41 = vmax.f32 %v955_v37, 0.0  ;;  %v1015_v39 = vpack.c.bf16 %v993_v32, %v992_v35 }
 0x28d   : > { %v956_v38 = vpop.f32.mrf.mxu3 }
 0x28e   : > { %v957_v40 = vadd.f32 %v3075_v57, %v956_v38 }
 0x290   : > { %v999_v42 = vmax.f32 %v957_v40, 0.0  ;;  %v946_v40 = vpop.f32.mrf.mxu2 }
 0x292   : > { %1122 = vmatmul.bf16.gmra.mxu3 %v1011_v43  ;;  %v3103_v44 = vpack.c.bf16 %v999_v42, %v998_v41  ;;  %v947_v43 = vadd.f32 %v3075_v57, %v946_v40 }
 0x294   : > { %v995_v47 = vmax.f32 %v947_v43, 0.0 }
 0x295   : > { %v959_v46 = vpop.f32.mrf.mxu3 }
 0x296   : > { %v960_v51 = vadd.f32 %v3075_v57, %v959_v46  ;;  %v1016_v53 = vpack.c.bf16 %v995_v47, %v994_v20 }
 0x298   : > { %v1000_v56 = vmax.f32 %v960_v51, 0.0  ;;  %v949_v46 = vpop.f32.mrf.mxu2 }
 0x29d   : > { %v961_v52 = vpop.f32.mrf.mxu3 }
 0x29e   : > { %v962_v54 = vadd.f32 %v3075_v57, %v961_v52 }
 0x2a0   : > { %v1001_v58 = vmax.f32 %v962_v54, 0.0  ;;  %v2379_v54 = vld [vmem:[%s3354_s3 + $0x118] sm:$0xff] }
 0x2a1   : > { %1501 = vmatpush.bf16.msrb.mxu1 %v2379_v54 }
 0x2a2   : > { %1127 = vmatmul.bf16.gmra.mxu3 %v1012_v59  ;;  %v3115_v60 = vpack.c.bf16 %v1001_v58, %v1000_v56  ;;  %v951_v56 = vpop.f32.mrf.mxu2 }
 0x2a3   : > { %v952_v59 = vadd.f32 %v3075_v57, %v951_v56  ;;  %v2388_v56 = vld [vmem:[#allocation7 + $0x20] sm:$0xff] }
 0x2a5   : > { %v964_v61 = vpop.f32.mrf.mxu3  ;;  %v997_v62 = vmax.f32 %v952_v59, 0.0 }
 0x2a6   : > { %v965_v1 = vadd.f32 %v3075_v57, %v964_v61  ;;  %v950_v61 = vadd.f32 %v3075_v57, %v949_v46 }
 0x2a8   : > { %v1002_v5 = vmax.f32 %v965_v1, 0.0  ;;  %v996_v0 = vmax.f32 %v950_v61, 0.0 }
 0x2ad   : > { %v966_v2 = vpop.f32.mrf.mxu3 }
 0x2ae   : > { %v967_v4 = vadd.f32 %v3075_v57, %v966_v2 }
 0x2b0   : > { %v1003_v6 = vmax.f32 %v967_v4, 0.0  ;;  %v1017_v4 = vpack.c.bf16 %v997_v62, %v996_v0 }
 0x2b2   : > { %1132 = vmatmul.bf16.gmra.mxu3 %v1013_v7  ;;  %v3124_v9 = vpack.c.bf16 %v1003_v6, %v1002_v5  ;;  %v2378_v7 = vld [vmem:[%s3354_s3 + $0x110] sm:$0xff] }
 0x2b3   : > { %1502 = vmatpush.bf16.msrb.mxu1 %v2378_v7 }
 0x2b5   : > { %v969_v11 = vpop.f32.mrf.mxu3 }
 0x2b6   : > { %v970_v15 = vadd.f32 %v3075_v57, %v969_v11 }
 0x2b8   : > { %v1004_v22 = vmax.f32 %v970_v15, 0.0  ;;  %v2391_v15 = vld [vmem:[#allocation7 + $0x38] sm:$0xff] }
 0x2b9   : > { %1702 = vmatpush.bf16.msrb.mxu2 %v2391_v15  ;;  %v2387_v15 = vld [vmem:[#allocation7 + $0x18] sm:$0xff] }
 0x2bd   : > { %v971_v18 = vpop.f32.mrf.mxu3 }
 0x2be   : > { %v972_v21 = vadd.f32 %v3075_v57, %v971_v18 }
 0x2c0   : > { %v1005_v23 = vmax.f32 %v972_v21, 0.0 }
 0x2c2   : > { %1137 = vmatmul.bf16.gmra.mxu3 %v1014_v24  ;;  %v3130_v25 = vpack.c.bf16 %v1005_v23, %v1004_v22  ;;  %v2377_v24 = vld [vmem:[%s3354_s3 + $0x108] sm:$0xff] }
 0x2c3   : > { %1503 = vmatpush.bf16.msrb.mxu1 %v2377_v24 }
 0x2c5   : > { %v1098_v26 = vpop.f32.mrf.mxu3 }
 0x2c6   : > { %v1099_v33 = vadd.f32 %v3133_v29, %v1098_v26 }
 0x2c8   : > { %v1178_v37 = vmax.f32 %v1099_v33, 0.0  ;;  %v2390_v33 = vld [vmem:[#allocation7 + $0x30] sm:$0xff] }
 0x2c9   : > { %1703 = vmatpush.bf16.msrb.mxu2 %v2390_v33 }
 0x2cd   : > { %v1100_v34 = vpop.f32.mrf.mxu3  ;;  %1704 = vmatpush.bf16.msrb.mxu2 %v2389_v45 }
 0x2ce   : > { %v1101_v36 = vadd.f32 %v3133_v29, %v1100_v34  ;;  %v2376_v34 = vld [vmem:[%s3354_s3 + $0x100] sm:$0xff] }
 0x2cf   : > { %1504 = vmatpush.bf16.msrb.mxu1 %v2376_v34 }
 0x2d0   : > { %v1179_v38 = vmax.f32 %v1101_v36, 0.0 }
 0x2d1   : > { %1705 = vmatpush.bf16.msrb.mxu2 %v2388_v56 }
 0x2d2   : > { %v1210_v41 = vpack.c.bf16 %v1179_v38, %v1178_v37  ;;  %1142 = vmatmul.bf16.gmra.mxu3 %v1015_v39 }
 0x2d4   : > { %1301 = vmatmul.bf16.vlgmr.msrb.gmra.mxu0 %v1210_v41 }
 0x2d5   : > { %v1103_v42 = vpop.f32.mrf.mxu3  ;;  %1706 = vmatpush.bf16.msrb.mxu2 %v2387_v15 }
 0x2d6   : > { %v1104_v48 = vadd.f32 %v3133_v29, %v1103_v42 }
 0x2d8   : > { %v1180_v51 = vmax.f32 %v1104_v48, 0.0 }
 0x2dd   : > { %v1105_v49 = vpop.f32.mrf.mxu3 }
 0x2de   : > { %v1106_v50 = vadd.f32 %v3133_v29, %v1105_v49 }
 0x2e0   : > { %v1181_v52 = vmax.f32 %v1106_v50, 0.0 }
 0x2e2   : > { %1147 = vmatmul.bf16.gmra.mxu3 %v1016_v53  ;;  %v1211_v55 = vpack.c.bf16 %v1181_v52, %v1180_v51 }
 0x2e4   : > { %1306 = vmatmul.bf16.gmra.mxu0 %v1211_v55  ;;  %v3177_v55 = vld [vmem:[#allocation5 + $0x3] ss:$0 sm:$0xff] }
 0x2e5   : > { %v1108_v58 = vpop.f32.mrf.mxu3 }
 0x2e6   : > { %v1109_v17 = vadd.f32 %v3133_v29, %v1108_v58 }
 0x2e8   : > { %v1182_v2 = vmax.f32 %v1109_v17, 0.0 }
 0x2ed   : > { %v1110_v63 = vpop.f32.mrf.mxu3 }
 0x2ee   : > { %v1111_v1 = vadd.f32 %v3133_v29, %v1110_v63 }
 0x2f0   : > { %v1183_v3 = vmax.f32 %v1111_v1, 0.0 }
 0x2f2   : > { %1152 = vmatmul.bf16.gmra.mxu3 %v1017_v4  ;;  %v1212_v5 = vpack.c.bf16 %v1183_v3, %v1182_v2 }
 0x2f4   : > { %1311 = vmatmul.bf16.gmra.mxu0 %v1212_v5 }
 0x2f5   : > { %v1113_v6 = vpop.f32.mrf.mxu3 }
 0x2f6   : > { %v1114_v57 = vadd.f32 %v3133_v29, %v1113_v6 }
 0x2f8   : > { %v1184_v11 = vmax.f32 %v1114_v57, 0.0 }
 0x2fd   : > { %v1115_v8 = vpop.f32.mrf.mxu3 }
 0x2fe   : > { %v1116_v10 = vadd.f32 %v3133_v29, %v1115_v8 }
 0x300   : > { %v1185_v12 = vmax.f32 %v1116_v10, 0.0 }
 0x302   : > { %1157 = vmatmul.bf16.gmra.mxu3 %v3103_v44  ;;  %v1213_v13 = vpack.c.bf16 %v1185_v12, %v1184_v11 }
 0x304   : > { %1316 = vmatmul.bf16.gmra.mxu0 %v1213_v13 }
 0x305   : > { %v1118_v14 = vpop.f32.mrf.mxu3 }
 0x306   : > { %v1119_v16 = vadd.f32 %v3133_v29, %v1118_v14 }
 0x308   : > { %v1186_v21 = vmax.f32 %v1119_v16, 0.0 }
 0x30d   : > { %v1120_v18 = vpop.f32.mrf.mxu3 }
 0x30e   : > { %v1121_v19 = vadd.f32 %v3133_v29, %v1120_v18 }
 0x310   : > { %v1187_v22 = vmax.f32 %v1121_v19, 0.0 }
 0x312   : > { %v1214_v23 = vpack.c.bf16 %v1187_v22, %v1186_v21  ;;  %1162 = vmatmul.bf16.gmra.mxu3 %v3115_v60 }
 0x314   : > { %1321 = vmatmul.bf16.gmra.mxu0 %v1214_v23 }
 0x315   : > { %v1123_v44 = vpop.f32.mrf.mxu3 }
 0x316   : > { %v1124_v26 = vadd.f32 %v3133_v29, %v1123_v44 }
 0x318   : > { %v1188_v30 = vmax.f32 %v1124_v26, 0.0 }
 0x31d   : > { %v1125_v27 = vpop.f32.mrf.mxu3 }
 0x31e   : > { %v1126_v28 = vadd.f32 %v3133_v29, %v1125_v27 }
 0x320   : > { %v1189_v31 = vmax.f32 %v1126_v28, 0.0 }
 0x322   : > { %v1215_v32 = vpack.c.bf16 %v1189_v31, %v1188_v30  ;;  %1167 = vmatmul.bf16.gmra.mxu3 %v3124_v9 }
 0x324   : > { %1326 = vmatmul.bf16.gmra.mxu0 %v1215_v32 }
 0x325   : > { %v1128_v60 = vpop.f32.mrf.mxu3 }
 0x326   : > { %v1129_v35 = vadd.f32 %v3133_v29, %v1128_v60 }
 0x328   : > { %v1190_v38 = vmax.f32 %v1129_v35, 0.0 }
 0x32d   : > { %v1130_v36 = vpop.f32.mrf.mxu3 }
 0x32e   : > { %v1131_v37 = vadd.f32 %v3133_v29, %v1130_v36 }
 0x330   : > { %v1191_v39 = vmax.f32 %v1131_v37, 0.0 }
 0x332   : > { %v1216_v40 = vpack.c.bf16 %v1191_v39, %v1190_v38  ;;  %1172 = vmatmul.bf16.gmra.mxu3 %v3130_v25  ;;  %v2386_v39 = vld [vmem:[#allocation7 + $0x10] sm:$0xff] }
 0x333   : > { %1707 = vmatpush.bf16.msrb.mxu2 %v2386_v39 }
 0x334   : > { %1331 = vmatmul.bf16.gmra.mxu0 %v1216_v40 }
 0x335   : > { %v1133_v9 = vpop.f32.mrf.mxu3 }
 0x336   : > { %v1134_v41 = vadd.f32 %v3133_v29, %v1133_v9 }
 0x338   : > { %v1192_v46 = vmax.f32 %v1134_v41, 0.0 }
 0x33d   : > { %v1135_v42 = vpop.f32.mrf.mxu3 }
 0x33e   : > { %v1136_v43 = vadd.f32 %v3133_v29, %v1135_v42 }
 0x340   : > { %v1193_v47 = vmax.f32 %v1136_v43, 0.0 }
 0x342   : > { %v1217_v48 = vpack.c.bf16 %v1193_v47, %v1192_v46 }
 0x344   : > { %1336 = vmatmul.bf16.gmra.mxu0 %v1217_v48 }
 0x345   : > { %v1138_v49 = vpop.f32.mrf.mxu3 }
 0x346   : > { %v1139_v20 = vadd.f32 %v3133_v29, %v1138_v49 }
 0x348   : > { %v1194_v25 = vmax.f32 %v1139_v20, 0.0 }
 0x34d   : > { %v1140_v50 = vpop.f32.mrf.mxu3 }
 0x34e   : > { %v1141_v51 = vadd.f32 %v3133_v29, %v1140_v50 }
 0x350   : > { %v1195_v52 = vmax.f32 %v1141_v51, 0.0 }
 0x351   : > { %v1302_v53 = vpop.f32.mrf.mxu0 }
 0x352   : > { %v1218_v54 = vpack.c.bf16 %v1195_v52, %v1194_v25  ;;  %v1303_v59 = vadd.f32 %v3177_v55, %v1302_v53 }
 0x354   : > { %1341 = vmatmul.bf16.gmra.mxu0 %v1218_v54  ;;  %v1382_v17 = vmax.f32 %v1303_v59, 0.0 }
 0x355   : > { %v1143_v58 = vpop.f32.mrf.mxu3 }
 0x356   : > { %v1144_v63 = vadd.f32 %v3133_v29, %v1143_v58 }
 0x358   : > { %v1196_v4 = vmax.f32 %v1144_v63, 0.0 }
 0x359   : > { %v1304_v61 = vpop.f32.mrf.mxu0 }
 0x35a   : > { %v1305_v62 = vadd.f32 %v3177_v55, %v1304_v61 }
 0x35c   : > { %v1383_v0 = vmax.f32 %v1305_v62, 0.0 }
 0x35d   : > { %v1145_v1 = vpop.f32.mrf.mxu3 }
 0x35e   : > { %v1414_v2 = vpack.c.bf16 %v1383_v0, %v1382_v17  ;;  %v1146_v3 = vadd.f32 %v3133_v29, %v1145_v1  ;;  %v2385_v0 = vld [vmem:[#allocation7 + $0x8] sm:$0xff] }
 0x35f   : > { %1708 = vmatpush.bf16.msrb.mxu2 %v2385_v0 }
 0x360   : > { %v1197_v5 = vmax.f32 %v1146_v3, 0.0  ;;  %1505 = vmatmul.bf16.vlgmr.msrb.gmra.mxu1 %v1414_v2 }
 0x361   : > { %v1307_v6 = vpop.f32.mrf.mxu0 }
 0x362   : > { %v1219_v7 = vpack.c.bf16 %v1197_v5, %v1196_v4  ;;  %v1308_v8 = vadd.f32 %v3177_v55, %v1307_v6 }
 0x364   : > { %1346 = vmatmul.bf16.gmra.mxu0 %v1219_v7  ;;  %v1384_v12 = vmax.f32 %v1308_v8, 0.0 }
 0x365   : > { %v1148_v57 = vpop.f32.mrf.mxu3 }
 0x366   : > { %v1149_v13 = vadd.f32 %v3133_v29, %v1148_v57 }
 0x368   : > { %v1198_v21 = vmax.f32 %v1149_v13, 0.0 }
 0x369   : > { %v1309_v10 = vpop.f32.mrf.mxu0 }
 0x36a   : > { %v1310_v11 = vadd.f32 %v3177_v55, %v1309_v10 }
 0x36c   : > { %v1385_v14 = vmax.f32 %v1310_v11, 0.0 }
 0x36d   : > { %v1150_v16 = vpop.f32.mrf.mxu3 }
 0x36e   : > { %v1151_v18 = vadd.f32 %v3133_v29, %v1150_v16  ;;  %v1415_v19 = vpack.c.bf16 %v1385_v14, %v1384_v12 }
 0x370   : > { %v1199_v22 = vmax.f32 %v1151_v18, 0.0  ;;  %1510 = vmatmul.bf16.gmra.mxu1 %v1415_v19 }
 0x371   : > { %v1312_v23 = vpop.f32.mrf.mxu0 }
 0x372   : > { %v1220_v24 = vpack.c.bf16 %v1199_v22, %v1198_v21  ;;  %v1313_v26 = vadd.f32 %v3177_v55, %v1312_v23  ;;  %v2384_v21 = vld [vmem:[#allocation7] sm:$0xff] }
 0x373   : > { %1709 = vmatpush.bf16.msrb.mxu2 %v2384_v21 }
 0x374   : > { %1351 = vmatmul.bf16.gmra.mxu0 %v1220_v24  ;;  %v1386_v30 = vmax.f32 %v1313_v26, 0.0 }
 0x375   : > { %v1153_v44 = vpop.f32.mrf.mxu3 }
 0x376   : > { %v1154_v31 = vadd.f32 %v3133_v29, %v1153_v44 }
 0x378   : > { %v1200_v35 = vmax.f32 %v1154_v31, 0.0 }
 0x379   : > { %v1314_v27 = vpop.f32.mrf.mxu0 }
 0x37a   : > { %v1315_v28 = vadd.f32 %v3177_v55, %v1314_v27 }
 0x37c   : > { %v1387_v32 = vmax.f32 %v1315_v28, 0.0 }
 0x37d   : > { %v1155_v33 = vpop.f32.mrf.mxu3 }
 0x37e   : > { %v1156_v60 = vadd.f32 %v3133_v29, %v1155_v33  ;;  %v1416_v34 = vpack.c.bf16 %v1387_v32, %v1386_v30 }
 0x380   : > { %v1201_v36 = vmax.f32 %v1156_v60, 0.0  ;;  %1515 = vmatmul.bf16.gmra.mxu1 %v1416_v34 }
 0x381   : > { %v1317_v37 = vpop.f32.mrf.mxu0 }
 0x382   : > { %v1221_v38 = vpack.c.bf16 %v1201_v36, %v1200_v35  ;;  %v1318_v9 = vadd.f32 %v3177_v55, %v1317_v37 }
 0x384   : > { %1356 = vmatmul.bf16.gmra.mxu0 %v1221_v38  ;;  %v1388_v43 = vmax.f32 %v1318_v9, 0.0 }
 0x385   : > { %v1158_v40 = vpop.f32.mrf.mxu3 }
 0x386   : > { %v1159_v45 = vadd.f32 %v3133_v29, %v1158_v40 }
 0x388   : > { %v1202_v20 = vmax.f32 %v1159_v45, 0.0 }
 0x389   : > { %v1319_v41 = vpop.f32.mrf.mxu0 }
 0x38a   : > { %v1320_v42 = vadd.f32 %v3177_v55, %v1319_v41 }
 0x38c   : > { %v1389_v46 = vmax.f32 %v1320_v42, 0.0 }
 0x38d   : > { %v1160_v47 = vpop.f32.mrf.mxu3 }
 0x38e   : > { %v1161_v48 = vadd.f32 %v3133_v29, %v1160_v47  ;;  %v1417_v49 = vpack.c.bf16 %v1389_v46, %v1388_v43 }
 0x390   : > { %v1203_v50 = vmax.f32 %v1161_v48, 0.0  ;;  %1520 = vmatmul.bf16.gmra.mxu1 %v1417_v49  ;;  %v3211_v49 = vld [vmem:[#allocation5 + $0x4] ss:$0 sm:$0xff] }
 0x391   : > { %v1322_v51 = vpop.f32.mrf.mxu0 }
 0x392   : > { %v1222_v25 = vpack.c.bf16 %v1203_v50, %v1202_v20  ;;  %v1323_v53 = vadd.f32 %v3177_v55, %v1322_v51 }
 0x394   : > { %1361 = vmatmul.bf16.gmra.mxu0 %v1222_v25  ;;  %v1390_v58 = vmax.f32 %v1323_v53, 0.0 }
 0x395   : > { %v1163_v52 = vpop.f32.mrf.mxu3 }
 0x396   : > { %v1164_v59 = vadd.f32 %v3133_v29, %v1163_v52 }
 0x398   : > { %v1204_v1 = vmax.f32 %v1164_v59, 0.0 }
 0x399   : > { %v1324_v54 = vpop.f32.mrf.mxu0 }
 0x39a   : > { %v1325_v56 = vadd.f32 %v3177_v55, %v1324_v54 }
 0x39c   : > { %v1391_v61 = vmax.f32 %v1325_v56, 0.0 }
 0x39d   : > { %v1165_v62 = vpop.f32.mrf.mxu3 }
 0x39e   : > { %v1418_v17 = vpack.c.bf16 %v1391_v61, %v1390_v58  ;;  %v1166_v63 = vadd.f32 %v3133_v29, %v1165_v62 }
 0x3a0   : > { %v1205_v2 = vmax.f32 %v1166_v63, 0.0  ;;  %1525 = vmatmul.bf16.gmra.mxu1 %v1418_v17 }
 0x3a1   : > { %v1327_v3 = vpop.f32.mrf.mxu0 }
 0x3a2   : > { %v1223_v4 = vpack.c.bf16 %v1205_v2, %v1204_v1  ;;  %v1328_v6 = vadd.f32 %v3177_v55, %v1327_v3 }
 0x3a4   : > { %1366 = vmatmul.bf16.gmra.mxu0 %v1223_v4  ;;  %v1392_v8 = vmax.f32 %v1328_v6, 0.0 }
 0x3a5   : > { %v1168_v5 = vpop.f32.mrf.mxu3 }
 0x3a6   : > { %v1169_v10 = vadd.f32 %v3133_v29, %v1168_v5 }
 0x3a8   : > { %v1206_v15 = vmax.f32 %v1169_v10, 0.0 }
 0x3a9   : > { %v1329_v7 = vpop.f32.mrf.mxu0 }
 0x3aa   : > { %v1330_v57 = vadd.f32 %v3177_v55, %v1329_v7 }
 0x3ac   : > { %v1393_v11 = vmax.f32 %v1330_v57, 0.0 }
 0x3ad   : > { %v1170_v12 = vpop.f32.mrf.mxu3 }
 0x3ae   : > { %v1419_v13 = vpack.c.bf16 %v1393_v11, %v1392_v8  ;;  %v1171_v14 = vadd.f32 %v3133_v29, %v1170_v12 }
 0x3b0   : > { %v1207_v16 = vmax.f32 %v1171_v14, 0.0  ;;  %1530 = vmatmul.bf16.gmra.mxu1 %v1419_v13 }
 0x3b1   : > { %v1332_v18 = vpop.f32.mrf.mxu0 }
 0x3b2   : > { %v1224_v19 = vpack.c.bf16 %v1207_v16, %v1206_v15  ;;  %v1333_v23 = vadd.f32 %v3177_v55, %v1332_v18 }
 0x3b4   : > { %1371 = vmatmul.bf16.gmra.mxu0 %v1224_v19  ;;  %v1394_v26 = vmax.f32 %v1333_v23, 0.0 }
 0x3b5   : > { %v1173_v22 = vpop.f32.mrf.mxu3 }
 0x3b6   : > { %v1174_v27 = vadd.f32 %v3133_v29, %v1173_v22 }
 0x3b8   : > { %v1208_v33 = vmax.f32 %v1174_v27, 0.0 }
 0x3b9   : > { %v1334_v24 = vpop.f32.mrf.mxu0 }
 0x3ba   : > { %v1335_v44 = vadd.f32 %v3177_v55, %v1334_v24 }
 0x3bc   : > { %v1395_v28 = vmax.f32 %v1335_v44, 0.0 }
 0x3bd   : > { %v1175_v30 = vpop.f32.mrf.mxu3 }
 0x3be   : > { %v1420_v31 = vpack.c.bf16 %v1395_v28, %v1394_v26  ;;  %v1176_v32 = vadd.f32 %v3133_v29, %v1175_v30 }
 0x3c0   : > { %v1209_v60 = vmax.f32 %v1176_v32, 0.0  ;;  %1535 = vmatmul.bf16.gmra.mxu1 %v1420_v31 }
 0x3c1   : > { %v1337_v34 = vpop.f32.mrf.mxu0 }
 0x3c2   : > { %v1225_v35 = vpack.c.bf16 %v1209_v60, %v1208_v33  ;;  %v1338_v36 = vadd.f32 %v3177_v55, %v1337_v34 }
 0x3c4   : > { %1376 = vmatmul.bf16.gmra.mxu0 %v1225_v35  ;;  %v1396_v39 = vmax.f32 %v1338_v36, 0.0 }
 0x3c9   : > { %v1339_v37 = vpop.f32.mrf.mxu0 }
 0x3ca   : > { %v1340_v38 = vadd.f32 %v3177_v55, %v1339_v37 }
 0x3cc   : > { %v1397_v40 = vmax.f32 %v1340_v38, 0.0 }
 0x3ce   : > { %v1421_v9 = vpack.c.bf16 %v1397_v40, %v1396_v39 }
 0x3d0   : > { %1540 = vmatmul.bf16.gmra.mxu1 %v1421_v9 }
 0x3d1   : > { %v1342_v41 = vpop.f32.mrf.mxu0 }
 0x3d2   : > { %v1343_v42 = vadd.f32 %v3177_v55, %v1342_v41 }
 0x3d4   : > { %v1398_v45 = vmax.f32 %v1343_v42, 0.0 }
 0x3d9   : > { %v1344_v43 = vpop.f32.mrf.mxu0 }
 0x3da   : > { %v1345_v29 = vadd.f32 %v3177_v55, %v1344_v43 }
 0x3dc   : > { %v1399_v46 = vmax.f32 %v1345_v29, 0.0 }
 0x3dd   : > { %v1506_v47 = vpop.f32.mrf.mxu1 }
 0x3de   : > { %v1422_v48 = vpack.c.bf16 %v1399_v46, %v1398_v45  ;;  %v1507_v50 = vadd.f32 %v3211_v49, %v1506_v47 }
 0x3e0   : > { %1545 = vmatmul.bf16.gmra.mxu1 %v1422_v48  ;;  %v1586_v52 = vmax.f32 %v1507_v50, 0.0 }
 0x3e1   : > { %v1347_v20 = vpop.f32.mrf.mxu0 }
 0x3e2   : > { %v1348_v53 = vadd.f32 %v3177_v55, %v1347_v20 }
 0x3e4   : > { %v1400_v61 = vmax.f32 %v1348_v53, 0.0 }
 0x3e5   : > { %v1508_v51 = vpop.f32.mrf.mxu1 }
 0x3e6   : > { %v1509_v25 = vadd.f32 %v3211_v49, %v1508_v51 }
 0x3e8   : > { %v1587_v54 = vmax.f32 %v1509_v25, 0.0 }
 0x3e9   : > { %v1349_v56 = vpop.f32.mrf.mxu0 }
 0x3ea   : > { %v1618_v58 = vpack.c.bf16 %v1587_v54, %v1586_v52  ;;  %v1350_v59 = vadd.f32 %v3177_v55, %v1349_v56 }
 0x3ec   : > { %v1401_v62 = vmax.f32 %v1350_v59, 0.0  ;;  %1710 = vmatmul.bf16.vlgmr.msrb.gmra.mxu2 %v1618_v58 }
 0x3ed   : > { %v1511_v17 = vpop.f32.mrf.mxu1 }
 0x3ee   : > { %v1423_v63 = vpack.c.bf16 %v1401_v62, %v1400_v61  ;;  %v1512_v1 = vadd.f32 %v3211_v49, %v1511_v17 }
 0x3f0   : > { %1550 = vmatmul.bf16.gmra.mxu1 %v1423_v63  ;;  %v1588_v4 = vmax.f32 %v1512_v1, 0.0 }
 0x3f1   : > { %v1352_v0 = vpop.f32.mrf.mxu0 }
 0x3f2   : > { %v1353_v5 = vadd.f32 %v3177_v55, %v1352_v0 }
 0x3f4   : > { %v1402_v10 = vmax.f32 %v1353_v5, 0.0 }
 0x3f5   : > { %v1513_v2 = vpop.f32.mrf.mxu1 }
 0x3f6   : > { %v1514_v3 = vadd.f32 %v3211_v49, %v1513_v2 }
 0x3f8   : > { %v1589_v6 = vmax.f32 %v1514_v3, 0.0 }
 0x3f9   : > { %v1354_v7 = vpop.f32.mrf.mxu0 }
 0x3fa   : > { %v1355_v57 = vadd.f32 %v3177_v55, %v1354_v7  ;;  %v1619_v8 = vpack.c.bf16 %v1589_v6, %v1588_v4 }
 0x3fc   : > { %v1403_v11 = vmax.f32 %v1355_v57, 0.0  ;;  %1715 = vmatmul.bf16.gmra.mxu2 %v1619_v8 }
 0x3fd   : > { %v1516_v12 = vpop.f32.mrf.mxu1 }
 0x3fe   : > { %v1424_v13 = vpack.c.bf16 %v1403_v11, %v1402_v10  ;;  %v1517_v15 = vadd.f32 %v3211_v49, %v1516_v12 }
 0x400   : > { %1555 = vmatmul.bf16.gmra.mxu1 %v1424_v13  ;;  %v1590_v19 = vmax.f32 %v1517_v15, 0.0 }
 0x401   : > { %v1357_v14 = vpop.f32.mrf.mxu0 }
 0x402   : > { %v1358_v21 = vadd.f32 %v3177_v55, %v1357_v14 }
 0x404   : > { %v1404_v26 = vmax.f32 %v1358_v21, 0.0 }
 0x405   : > { %v1518_v16 = vpop.f32.mrf.mxu1 }
 0x406   : > { %v1519_v18 = vadd.f32 %v3211_v49, %v1518_v16 }
 0x408   : > { %v1591_v22 = vmax.f32 %v1519_v18, 0.0 }
 0x409   : > { %v1359_v23 = vpop.f32.mrf.mxu0 }
 0x40a   : > { %v1360_v24 = vadd.f32 %v3177_v55, %v1359_v23  ;;  %v1620_v44 = vpack.c.bf16 %v1591_v22, %v1590_v19 }
 0x40c   : > { %v1405_v27 = vmax.f32 %v1360_v24, 0.0  ;;  %1720 = vmatmul.bf16.gmra.mxu2 %v1620_v44 }
 0x40d   : > { %v1521_v28 = vpop.f32.mrf.mxu1 }
 0x40e   : > { %v1425_v30 = vpack.c.bf16 %v1405_v27, %v1404_v26  ;;  %v1522_v32 = vadd.f32 %v3211_v49, %v1521_v28 }
 0x410   : > { %1560 = vmatmul.bf16.gmra.mxu1 %v1425_v30  ;;  %v1592_v34 = vmax.f32 %v1522_v32, 0.0 }
 0x411   : > { %v1362_v31 = vpop.f32.mrf.mxu0 }
 0x412   : > { %v1363_v35 = vadd.f32 %v3177_v55, %v1362_v31 }
 0x414   : > { %v1406_v40 = vmax.f32 %v1363_v35, 0.0 }
 0x415   : > { %v1523_v33 = vpop.f32.mrf.mxu1 }
 0x416   : > { %v1524_v60 = vadd.f32 %v3211_v49, %v1523_v33 }
 0x418   : > { %v1593_v36 = vmax.f32 %v1524_v60, 0.0 }
 0x419   : > { %v1364_v37 = vpop.f32.mrf.mxu0 }
 0x41a   : > { %v1365_v38 = vadd.f32 %v3177_v55, %v1364_v37  ;;  %v1621_v39 = vpack.c.bf16 %v1593_v36, %v1592_v34 }
 0x41c   : > { %v1407_v9 = vmax.f32 %v1365_v38, 0.0  ;;  %1725 = vmatmul.bf16.gmra.mxu2 %v1621_v39  ;;  %v3250_v39 = vld [vmem:[%s3357_s6] ss:$0 sm:$0xff] }
 0x41d   : > { %v1526_v41 = vpop.f32.mrf.mxu1 }
 0x41e   : > { %v1426_v42 = vpack.c.bf16 %v1407_v9, %v1406_v40  ;;  %v1527_v29 = vadd.f32 %v3211_v49, %v1526_v41 }
 0x420   : > { %1565 = vmatmul.bf16.gmra.mxu1 %v1426_v42  ;;  %v1594_v47 = vmax.f32 %v1527_v29, 0.0 }
 0x421   : > { %v1367_v43 = vpop.f32.mrf.mxu0 }
 0x422   : > { %v1368_v48 = vadd.f32 %v3177_v55, %v1367_v43 }
 0x424   : > { %v1408_v52 = vmax.f32 %v1368_v48, 0.0 }
 0x425   : > { %v1528_v45 = vpop.f32.mrf.mxu1 }
 0x426   : > { %v1529_v46 = vadd.f32 %v3211_v49, %v1528_v45 }
 0x428   : > { %v1595_v20 = vmax.f32 %v1529_v46, 0.0 }
 0x429   : > { %v1369_v50 = vpop.f32.mrf.mxu0 }
 0x42a   : > { %v1622_v51 = vpack.c.bf16 %v1595_v20, %v1594_v47  ;;  %v1370_v25 = vadd.f32 %v3177_v55, %v1369_v50 }
 0x42c   : > { %v1409_v53 = vmax.f32 %v1370_v25, 0.0  ;;  %1730 = vmatmul.bf16.gmra.mxu2 %v1622_v51 }
 0x42d   : > { %v1531_v54 = vpop.f32.mrf.mxu1 }
 0x42e   : > { %v1427_v56 = vpack.c.bf16 %v1409_v53, %v1408_v52  ;;  %v1532_v59 = vadd.f32 %v3211_v49, %v1531_v54 }
 0x430   : > { %1570 = vmatmul.bf16.gmra.mxu1 %v1427_v56  ;;  %v1596_v17 = vmax.f32 %v1532_v59, 0.0 }
 0x431   : > { %v1372_v58 = vpop.f32.mrf.mxu0 }
 0x432   : > { %v1373_v63 = vadd.f32 %v3177_v55, %v1372_v58 }
 0x434   : > { %v1410_v4 = vmax.f32 %v1373_v63, 0.0 }
 0x435   : > { %v1533_v61 = vpop.f32.mrf.mxu1 }
 0x436   : > { %v1534_v62 = vadd.f32 %v3211_v49, %v1533_v61 }
 0x438   : > { %v1597_v0 = vmax.f32 %v1534_v62, 0.0 }
 0x439   : > { %v1374_v1 = vpop.f32.mrf.mxu0 }
 0x43a   : > { %v1623_v2 = vpack.c.bf16 %v1597_v0, %v1596_v17  ;;  %v1375_v3 = vadd.f32 %v3177_v55, %v1374_v1 }
 0x43c   : > { %v1411_v5 = vmax.f32 %v1375_v3, 0.0  ;;  %1735 = vmatmul.bf16.gmra.mxu2 %v1623_v2 }
 0x43d   : > { %v1536_v6 = vpop.f32.mrf.mxu1 }
 0x43e   : > { %v1428_v7 = vpack.c.bf16 %v1411_v5, %v1410_v4  ;;  %v1537_v8 = vadd.f32 %v3211_v49, %v1536_v6 }
 0x440   : > { %1575 = vmatmul.bf16.gmra.mxu1 %v1428_v7  ;;  %v1598_v12 = vmax.f32 %v1537_v8, 0.0 }
 0x441   : > { %v1377_v57 = vpop.f32.mrf.mxu0 }
 0x442   : > { %v1378_v13 = vadd.f32 %v3177_v55, %v1377_v57 }
 0x444   : > { %v1412_v19 = vmax.f32 %v1378_v13, 0.0 }
 0x445   : > { %v1538_v10 = vpop.f32.mrf.mxu1 }
 0x446   : > { %v1539_v11 = vadd.f32 %v3211_v49, %v1538_v10 }
 0x448   : > { %v1599_v14 = vmax.f32 %v1539_v11, 0.0 }
 0x449   : > { %v1379_v15 = vpop.f32.mrf.mxu0 }
 0x44a   : > { %v1624_v16 = vpack.c.bf16 %v1599_v14, %v1598_v12  ;;  %v1380_v18 = vadd.f32 %v3177_v55, %v1379_v15 }
 0x44c   : > { %v1413_v21 = vmax.f32 %v1380_v18, 0.0  ;;  %1740 = vmatmul.bf16.gmra.mxu2 %v1624_v16 }
 0x44d   : > { %v1541_v22 = vpop.f32.mrf.mxu1 }
 0x44e   : > { %v1429_v23 = vpack.c.bf16 %v1413_v21, %v1412_v19  ;;  %v1542_v24 = vadd.f32 %v3211_v49, %v1541_v22 }
 0x450   : > { %1580 = vmatmul.bf16.gmra.mxu1 %v1429_v23  ;;  %v1600_v27 = vmax.f32 %v1542_v24, 0.0 }
 0x455   : > { %v1543_v44 = vpop.f32.mrf.mxu1 }
 0x456   : > { %v1544_v26 = vadd.f32 %v3211_v49, %v1543_v44 }
 0x458   : > { %v1601_v28 = vmax.f32 %v1544_v26, 0.0 }
 0x45a   : > { %v1625_v30 = vpack.c.bf16 %v1601_v28, %v1600_v27 }
 0x45c   : > { %1745 = vmatmul.bf16.gmra.mxu2 %v1625_v30 }
 0x45d   : > { %v1546_v31 = vpop.f32.mrf.mxu1 }
 0x45e   : > { %v1547_v55 = vadd.f32 %v3211_v49, %v1546_v31 }
 0x460   : > { %v1602_v60 = vmax.f32 %v1547_v55, 0.0 }
 0x465   : > { %v1548_v32 = vpop.f32.mrf.mxu1 }
 0x466   : > { %v1549_v33 = vadd.f32 %v3211_v49, %v1548_v32 }
 0x468   : > { %v1603_v34 = vmax.f32 %v1549_v33, 0.0 }
 0x46a   : > { %v1626_v35 = vpack.c.bf16 %v1603_v34, %v1602_v60 }
 0x46c   : > { %1750 = vmatmul.bf16.gmra.mxu2 %v1626_v35 }
 0x46d   : > { %v1551_v36 = vpop.f32.mrf.mxu1 }
 0x46e   : > { %v1552_v38 = vadd.f32 %v3211_v49, %v1551_v36 }
 0x46f   : > { %v1711_v37 = vpop.f32.mrf.mxu2 }
 0x470   : > { %v1604_v42 = vmax.f32 %v1552_v38, 0.0  ;;  %v1712_v43 = vadd.f32 %v3250_v39, %v1711_v37 }
 0x475   : > { %v1553_v40 = vpop.f32.mrf.mxu1 }
 0x476   : > { %v1554_v9 = vadd.f32 %v3211_v49, %v1553_v40 }
 0x477   : > { %v1713_v41 = vpop.f32.mrf.mxu2 }
 0x478   : > { %v1605_v29 = vmax.f32 %v1554_v9, 0.0  ;;  %v1714_v45 = vadd.f32 %v3250_v39, %v1713_v41 }
 0x47a   : > { %v1627_v46 = vpack.c.bf16 %v1605_v29, %v1604_v42  ;;  %v2396_v47 = vpack.c.bf16 %v1714_v45, %v1712_v43 }
 0x47c   : > { %2397 = vst [vmem:[%s3257_s9] sm:$0xff] %v2396_v47   ;;  %1755 = vmatmul.bf16.gmra.mxu2 %v1627_v46 }
 0x47d   : > { %v1556_v48 = vpop.f32.mrf.mxu1 }
 0x47e   : > { %v1557_v50 = vadd.f32 %v3211_v49, %v1556_v48 }
 0x47f   : > { %v1716_v20 = vpop.f32.mrf.mxu2 }
 0x480   : > { %v1606_v53 = vmax.f32 %v1557_v50, 0.0  ;;  %v1717_v54 = vadd.f32 %v3250_v39, %v1716_v20 }
 0x485   : > { %v1558_v51 = vpop.f32.mrf.mxu1 }
 0x486   : > { %v1559_v25 = vadd.f32 %v3211_v49, %v1558_v51 }
 0x487   : > { %v1718_v52 = vpop.f32.mrf.mxu2 }
 0x488   : > { %v1607_v56 = vmax.f32 %v1559_v25, 0.0  ;;  %v1719_v58 = vadd.f32 %v3250_v39, %v1718_v52 }
 0x48a   : > { %v1628_v59 = vpack.c.bf16 %v1607_v56, %v1606_v53  ;;  %v2401_v61 = vpack.c.bf16 %v1719_v58, %v1717_v54 }
 0x48c   : > { %2473 = vst [vmem:[%s3257_s9 + $0x8] sm:$0xff] %v2401_v61   ;;  %1760 = vmatmul.bf16.gmra.mxu2 %v1628_v59 }
 0x48d   : > { %v1561_v62 = vpop.f32.mrf.mxu1 }
 0x48e   : > { %v1562_v63 = vadd.f32 %v3211_v49, %v1561_v62 }
 0x48f   : > { %v1721_v17 = vpop.f32.mrf.mxu2 }
 0x490   : > { %v1608_v3 = vmax.f32 %v1562_v63, 0.0  ;;  %v1722_v4 = vadd.f32 %v3250_v39, %v1721_v17 }
 0x495   : > { %v1563_v0 = vpop.f32.mrf.mxu1 }
 0x496   : > { %v1564_v1 = vadd.f32 %v3211_v49, %v1563_v0 }
 0x497   : > { %v1723_v2 = vpop.f32.mrf.mxu2 }
 0x498   : > { %v1609_v5 = vmax.f32 %v1564_v1, 0.0  ;;  %v1724_v6 = vadd.f32 %v3250_v39, %v1723_v2 }
 0x49a   : > { %v1629_v7 = vpack.c.bf16 %v1609_v5, %v1608_v3  ;;  %v2406_v57 = vpack.c.bf16 %v1724_v6, %v1722_v4 }
 0x49c   : > { %2474 = vst [vmem:[%s3257_s9 + $0x10] sm:$0xff] %v2406_v57   ;;  %1765 = vmatmul.bf16.gmra.mxu2 %v1629_v7 }
 0x49d   : > { %v1566_v8 = vpop.f32.mrf.mxu1 }
 0x49e   : > { %v1567_v11 = vadd.f32 %v3211_v49, %v1566_v8 }
 0x49f   : > { %v1726_v10 = vpop.f32.mrf.mxu2 }
 0x4a0   : > { %v1610_v15 = vmax.f32 %v1567_v11, 0.0  ;;  %v1727_v16 = vadd.f32 %v3250_v39, %v1726_v10 }
 0x4a5   : > { %v1568_v12 = vpop.f32.mrf.mxu1 }
 0x4a6   : > { %v1569_v13 = vadd.f32 %v3211_v49, %v1568_v12 }
 0x4a7   : > { %v1728_v14 = vpop.f32.mrf.mxu2 }
 0x4a8   : > { %v1611_v18 = vmax.f32 %v1569_v13, 0.0  ;;  %v1729_v19 = vadd.f32 %v3250_v39, %v1728_v14 }
 0x4aa   : > { %v1630_v21 = vpack.c.bf16 %v1611_v18, %v1610_v15  ;;  %v2411_v22 = vpack.c.bf16 %v1729_v19, %v1727_v16 }
 0x4ac   : > { %2475 = vst [vmem:[%s3257_s9 + $0x18] sm:$0xff] %v2411_v22   ;;  %1770 = vmatmul.bf16.gmra.mxu2 %v1630_v21 }
 0x4ad   : > { %v1571_v23 = vpop.f32.mrf.mxu1 }
 0x4ae   : > { %v1572_v44 = vadd.f32 %v3211_v49, %v1571_v23 }
 0x4af   : > { %v1731_v24 = vpop.f32.mrf.mxu2 }
 0x4b0   : > { %v1612_v30 = vmax.f32 %v1572_v44, 0.0  ;;  %v1732_v31 = vadd.f32 %v3250_v39, %v1731_v24 }
 0x4b5   : > { %v1573_v26 = vpop.f32.mrf.mxu1 }
 0x4b6   : > { %v1574_v27 = vadd.f32 %v3211_v49, %v1573_v26 }
 0x4b7   : > { %v1733_v28 = vpop.f32.mrf.mxu2 }
 0x4b8   : > { %v1613_v55 = vmax.f32 %v1574_v27, 0.0  ;;  %v1734_v32 = vadd.f32 %v3250_v39, %v1733_v28 }
 0x4ba   : > { %v1631_v33 = vpack.c.bf16 %v1613_v55, %v1612_v30  ;;  %v2416_v60 = vpack.c.bf16 %v1734_v32, %v1732_v31 }
 0x4bc   : > { %2476 = vst [vmem:[%s3257_s9 + $0x20] sm:$0xff] %v2416_v60   ;;  %1775 = vmatmul.bf16.gmra.mxu2 %v1631_v33 }
 0x4bd   : > { %v1576_v34 = vpop.f32.mrf.mxu1 }
 0x4be   : > { %v1577_v36 = vadd.f32 %v3211_v49, %v1576_v34 }
 0x4bf   : > { %v1736_v35 = vpop.f32.mrf.mxu2 }
 0x4c0   : > { %v1614_v9 = vmax.f32 %v1577_v36, 0.0  ;;  %v1737_v41 = vadd.f32 %v3250_v39, %v1736_v35 }
 0x4c5   : > { %v1578_v37 = vpop.f32.mrf.mxu1 }
 0x4c6   : > { %v1579_v38 = vadd.f32 %v3211_v49, %v1578_v37 }
 0x4c7   : > { %v1738_v40 = vpop.f32.mrf.mxu2 }
 0x4c8   : > { %v1615_v42 = vmax.f32 %v1579_v38, 0.0  ;;  %v1739_v43 = vadd.f32 %v3250_v39, %v1738_v40 }
 0x4ca   : > { %v1632_v29 = vpack.c.bf16 %v1615_v42, %v1614_v9  ;;  %v2421_v45 = vpack.c.bf16 %v1739_v43, %v1737_v41 }
 0x4cc   : > { %2477 = vst [vmem:[%s3257_s9 + $0x28] sm:$0xff] %v2421_v45   ;;  %1780 = vmatmul.bf16.gmra.mxu2 %v1632_v29 }
 0x4cd   : > { %v1581_v46 = vpop.f32.mrf.mxu1 }
 0x4ce   : > { %v1582_v48 = vadd.f32 %v3211_v49, %v1581_v46 }
 0x4cf   : > { %v1741_v47 = vpop.f32.mrf.mxu2 }
 0x4d0   : > { %v1616_v25 = vmax.f32 %v1582_v48, 0.0  ;;  %v1742_v52 = vadd.f32 %v3250_v39, %v1741_v47 }
 0x4d5   : > { %v1583_v20 = vpop.f32.mrf.mxu1 }
 0x4d6   : > { %v1584_v50 = vadd.f32 %v3211_v49, %v1583_v20 }
 0x4d7   : > { %v1743_v51 = vpop.f32.mrf.mxu2 }
 0x4d8   : > { %v1617_v53 = vmax.f32 %v1584_v50, 0.0  ;;  %v1744_v54 = vadd.f32 %v3250_v39, %v1743_v51 }
 0x4da   : > { %v1633_v56 = vpack.c.bf16 %v1617_v53, %v1616_v25  ;;  %v2426_v58 = vpack.c.bf16 %v1744_v54, %v1742_v52 }
 0x4dc   : > { %2478 = vst [vmem:[%s3257_s9 + $0x30] sm:$0xff] %v2426_v58   ;;  %1785 = vmatmul.bf16.gmra.mxu2 %v1633_v56 }
 0x4df   : > { %v1746_v59 = vpop.f32.mrf.mxu2 }
 0x4e0   : > { %v1747_v62 = vadd.f32 %v3250_v39, %v1746_v59 }
 0x4e7   : > { %v1748_v61 = vpop.f32.mrf.mxu2 }
 0x4e8   : > { %v1749_v17 = vadd.f32 %v3250_v39, %v1748_v61 }
 0x4ea   : > { %v2431_v49 = vpack.c.bf16 %v1749_v17, %v1747_v62 }
 0x4ec   : > { %2479 = vst [vmem:[%s3257_s9 + $0x38] sm:$0xff] %v2431_v49  }
 0x4ef   : > { %v1751_v63 = vpop.f32.mrf.mxu2 }
 0x4f0   : > { %v1752_v1 = vadd.f32 %v3250_v39, %v1751_v63 }
 0x4f7   : > { %v1753_v0 = vpop.f32.mrf.mxu2 }
 0x4f8   : > { %v1754_v2 = vadd.f32 %v3250_v39, %v1753_v0 }
 0x4fa   : > { %v2436_v3 = vpack.c.bf16 %v1754_v2, %v1752_v1 }
 0x4fc   : > { %2480 = vst [vmem:[%s3257_s9 + $0x40] sm:$0xff] %v2436_v3  }
 0x4ff   : > { %v1756_v4 = vpop.f32.mrf.mxu2 }
 0x500   : > { %v1757_v6 = vadd.f32 %v3250_v39, %v1756_v4 }
 0x507   : > { %v1758_v5 = vpop.f32.mrf.mxu2 }
 0x508   : > { %v1759_v7 = vadd.f32 %v3250_v39, %v1758_v5 }
 0x50a   : > { %v2441_v57 = vpack.c.bf16 %v1759_v7, %v1757_v6 }
 0x50c   : > { %2481 = vst [vmem:[%s3257_s9 + $0x48] sm:$0xff] %v2441_v57  }
 0x50f   : > { %v1761_v8 = vpop.f32.mrf.mxu2 }
 0x510   : > { %v1762_v11 = vadd.f32 %v3250_v39, %v1761_v8 }
 0x517   : > { %v1763_v10 = vpop.f32.mrf.mxu2 }
 0x518   : > { %v1764_v12 = vadd.f32 %v3250_v39, %v1763_v10 }
 0x51a   : > { %v2446_v13 = vpack.c.bf16 %v1764_v12, %v1762_v11 }
 0x51c   : > { %2482 = vst [vmem:[%s3257_s9 + $0x50] sm:$0xff] %v2446_v13  }
 0x51f   : > { %v1766_v14 = vpop.f32.mrf.mxu2 }
 0x520   : > { %v1767_v16 = vadd.f32 %v3250_v39, %v1766_v14 }
 0x527   : > { %v1768_v15 = vpop.f32.mrf.mxu2 }
 0x528   : > { %v1769_v18 = vadd.f32 %v3250_v39, %v1768_v15 }
 0x52a   : > { %v2451_v19 = vpack.c.bf16 %v1769_v18, %v1767_v16 }
 0x52c   : > { %2483 = vst [vmem:[%s3257_s9 + $0x58] sm:$0xff] %v2451_v19  }
 0x52f   : > { %v1771_v21 = vpop.f32.mrf.mxu2 }
 0x530   : > { %v1772_v23 = vadd.f32 %v3250_v39, %v1771_v21 }
 0x537   : > { %v1773_v22 = vpop.f32.mrf.mxu2 }
 0x538   : > { %v1774_v24 = vadd.f32 %v3250_v39, %v1773_v22 }
 0x53a   : > { %v2456_v44 = vpack.c.bf16 %v1774_v24, %v1772_v23 }
 0x53c   : > { %2484 = vst [vmem:[%s3257_s9 + $0x60] sm:$0xff] %v2456_v44  }
 0x53f   : > { %v1776_v26 = vpop.f32.mrf.mxu2 }
 0x540   : > { %v1777_v28 = vadd.f32 %v3250_v39, %v1776_v26 }
 0x547   : > { %v1778_v27 = vpop.f32.mrf.mxu2 }
 0x548   : > { %v1779_v30 = vadd.f32 %v3250_v39, %v1778_v27 }
 0x54a   : > { %v2461_v31 = vpack.c.bf16 %v1779_v30, %v1777_v28 }
 0x54c   : > { %2485 = vst [vmem:[%s3257_s9 + $0x68] sm:$0xff] %v2461_v31  }
 0x54f   : > { %v1781_v55 = vpop.f32.mrf.mxu2 }
 0x550   : > { %v1782_v33 = vadd.f32 %v3250_v39, %v1781_v55 }
 0x557   : > { %v1783_v32 = vpop.f32.mrf.mxu2 }
 0x558   : > { %v1784_v60 = vadd.f32 %v3250_v39, %v1783_v32 }
 0x55a   : > { %v2466_v34 = vpack.c.bf16 %v1784_v60, %v1782_v33 }
 0x55c   : > { %2486 = vst [vmem:[%s3257_s9 + $0x70] sm:$0xff] %v2466_v34  }
 0x55f   : > { %v1786_v35 = vpop.f32.mrf.mxu2 }
 0x560   : > { %v1787_v37 = vadd.f32 %v3250_v39, %v1786_v35 }
 0x567   : > { %v1788_v36 = vpop.f32.mrf.mxu2 }
 0x568   : > { %v1789_v38 = vadd.f32 %v3250_v39, %v1788_v36 }
 0x56a   : > { %v2471_v40 = vpack.c.bf16 %v1789_v38, %v1787_v37 }
 0x56c   : > { %2487 = vst [vmem:[%s3257_s9 + $0x78] sm:$0xff] %v2471_v40  }
 0x56d   : > { %2704 = shalt.err (!%p2701_p8)
}
 0x56e   : > { %s2754_s21 = smov 64   ;;  %s2755_s9 = smov 4  }
 0x56f   : > { %2518 = dma.vmem_to_hbm [thread:$0]  (%p2834_p5), %s1869_s19, 2048, %s1871_s20, %s1856_s16, %s2754_s21, %s2754_s21, %s2755_s9  }
 0x570 PF: > { %p2540_p9 = scmp.ge.s32.totalorder %s2747_s27, 2  ;;  %s1885_s15 = sand.u32 1, %s2735_s24  }
 0x571   : > { %s1886_s17 = scalar_lea.sflag [#allocation4], %s1885_s15 }
 0x572   : > { %p2531_p10 = pnand %p2540_p9, %p2838_p6 }
 0x574   : > { %p2532_p11 = pneg %p2531_p10 }
 0x576   : > { %2730 = dma.done.wait (%p2532_p11), %s1886_s17, 2048  }
 0x577   : > { %2732 = vsyncadd (%p2532_p11), %s1886_s17, 4294965248  ;;  %p19_p12 = scmp.ge.s32.totalorder %s2821_s30, 4   ;;  %s3363_s24 = smov %s2739_s25 }
 0x578   : > { %s3364_s25 = smov %s2743_s26  ;;  %s3365_s26 = smov %s2832_s10 }
 0x579   : > { %s3366_s27 = smov %s2821_s30  ;;  %21 = sbr.rel (!%p19_p12) target bundleno = 5 (0x5), region = 100 }
 0x57e   :  { %1892 = vsyncpa [#allocation3], 1 }
 0x57f   :  { %1894 = vsyncpa [#allocation3 + $0x1], 1 }
 0x580   :  { %1895 = vsyncpa [#allocation6], 1 }
 0x581   :  { %1896 = vsyncpa [#allocation4], 1 }
 0x582   :  { %1898 = vsyncpa [#allocation4 + $0x1], 1 }

</bundles_post_ra>
